<compile_context>
chip_gen: v7x
topology: tpu7x:2x2x1
jax: 0.10.0
libtpu: 0.0.40
codegen_flags: <defaults>
</compile_context>

<pallas_src>
import functools

import jax
import jax.numpy as jnp
from jax.experimental import pallas as pl
from jax.experimental.pallas import tpu as pltpu

_BN_EPS = 1e-5
_VMEM_LIMIT = 48 * 1024 * 1024   # <= v7x's 64 MiB/TC; huge headroom at these tile sizes


# ----------------------------- Pallas kernel -----------------------------

def _conv3x3_kernel(x_ref, w_ref, s_ref, t_ref, o_ref, stat_ref, *, apply_bn_relu):
    """Fused [optional BN+ReLU of the raw input] -> zero-pad -> im2col -> 3x3 conv.

    One image per grid step.

    x_ref   : (1, H, W, Cin)   raw (pre-BN) activation, f32 or bf16
    w_ref   : (9*Cin, Cout)    bf16 weights, tap-major (row index = (3*ky + kx)*Cin + c)
    s_ref   : (1, Cin)         per-channel BN scale  (unused if apply_bn_relu=False)
    t_ref   : (1, Cin)         per-channel BN shift  (unused if apply_bn_relu=False)
    o_ref   : (1, H, W, Cout)  raw conv output (pre-BN)
    stat_ref: (1, 2, Cout)     per-image [channel sums; channel sums of squares] of the
                               conv output, for the *next* BatchNorm (no HBM re-read).
    """
    h, w, cin = x_ref.shape[1], x_ref.shape[2], x_ref.shape[3]
    cout = o_ref.shape[3]

    x = x_ref[0].astype(jnp.float32)                     # (H, W, Cin)

    if apply_bn_relu:
        scale = s_ref[...].reshape(1, 1, cin)
        shift = t_ref[...].reshape(1, 1, cin)
        x = jnp.maximum(x * scale + shift, 0.0)          # BN+ReLU fused into the load

    # Build the zero halo entirely in VMEM (torch pads the post-ReLU activation with zeros).
    zc = jnp.zeros((h, 1, cin), jnp.float32)
    xp = jnp.concatenate([zc, x, zc], axis=1)            # (H, W+2, Cin)
    zr = jnp.zeros((1, w + 2, cin), jnp.float32)
    xp = jnp.concatenate([zr, xp, zr], axis=0)           # (H+2, W+2, Cin)

    # im2col: nine shifted taps concatenated along the lane (channel) axis -> one MXU matmul
    # with contraction depth K = 9*Cin instead of nine K=Cin dots.
    taps = [xp[ky:ky + h, kx:kx + w, :] for ky in range(3) for kx in range(3)]
    patch = jnp.concatenate(taps, axis=-1)               # (H, W, 9*Cin)
    patch = patch.reshape(h * w, 9 * cin).astype(jnp.bfloat16)

    acc = jnp.dot(patch, w_ref[...], preferred_element_type=jnp.float32)   # (H*W, Cout) f32

    o_ref[0] = acc.reshape(h, w, cout).astype(o_ref.dtype)

    # Partial BN statistics for the *next* BatchNorm, packed into one output.
    s = jnp.sum(acc, axis=0, keepdims=True)              # (1, Cout)
    q = jnp.sum(acc * acc, axis=0, keepdims=True)        # (1, Cout)
    stat_ref[0] = jnp.concatenate([s, q], axis=0)        # (2, Cout)


# ----------------------------- Pallas wrapper -----------------------------

def _fused_conv3x3(x, w_flat, scale, shift, *, apply_bn_relu, out_dtype):
    """x: (N, H, W, Cin) raw activation; w_flat: (9*Cin, Cout) bf16."""
    n, h, w, cin = x.shape
    cout = w_flat.shape[1]
    kern = functools.partial(_conv3x3_kernel, apply_bn_relu=apply_bn_relu)

    flops = 2 * n * h * w * 9 * cin * cout + 4 * n * h * w * max(cin, cout)
    bytes_accessed = (x.size * x.dtype.itemsize
                      + w_flat.size * w_flat.dtype.itemsize
                      + n * h * w * cout * jnp.dtype(out_dtype).itemsize
                      + n * 2 * cout * 4)

    y, stats = pl.pallas_call(
        kern,
        out_shape=(jax.ShapeDtypeStruct((n, h, w, cout), out_dtype),
                   jax.ShapeDtypeStruct((n, 2, cout), jnp.float32)),
        grid=(n,),
        in_specs=[pl.BlockSpec((1, h, w, cin), lambda i: (i, 0, 0, 0)),
                  pl.BlockSpec((9 * cin, cout), lambda i: (0, 0)),
                  pl.BlockSpec((1, cin), lambda i: (0, 0)),
                  pl.BlockSpec((1, cin), lambda i: (0, 0))],
        out_specs=(pl.BlockSpec((1, h, w, cout), lambda i: (i, 0, 0, 0)),
                   pl.BlockSpec((1, 2, cout), lambda i: (i, 0, 0))),
        compiler_params=pltpu.CompilerParams(
            dimension_semantics=("parallel",),
            vmem_limit_bytes=_VMEM_LIMIT),
        cost_estimate=pl.CostEstimate(flops=flops, transcendentals=0,
                                      bytes_accessed=bytes_accessed),
    )(x, w_flat, scale, shift)
    return y, stats


def _bn_affine(stats, gamma, beta, count):
    """Per-channel training-mode BN (batch mean, biased variance) folded into scale/shift."""
    total = jnp.sum(stats[:, 0, :], axis=0)                   # (C,)
    total_sq = jnp.sum(stats[:, 1, :], axis=0)                # (C,)
    mean = total / count
    var = jnp.maximum(total_sq / count - mean * mean, 0.0)    # biased variance
    scale = gamma * jax.lax.rsqrt(var + _BN_EPS)
    shift = beta - mean * scale
    return scale.reshape(1, -1), shift.reshape(1, -1)


# ----------------------------- Module forward -----------------------------

def conv_block_forward(x_nchw, params):
    """ConvBlock forward: conv3x3 -> BN -> ReLU -> conv3x3 -> BN -> ReLU (training-mode BN)."""
    x = jnp.transpose(x_nchw, (0, 2, 3, 1)).astype(jnp.float32)   # NCHW -> NHWC
    n, h, w, cin = x.shape
    cout = params["w1"].shape[-1]
    count = n * h * w

    # (3,3,Cin,Cout) HWIO -> (9*Cin, Cout), tap-major: row = (3*ky+kx)*Cin + c.
    w1 = params["w1"].reshape(9 * cin, cout).astype(jnp.bfloat16)
    w2 = params["w2"].reshape(9 * cout, cout).astype(jnp.bfloat16)
    dummy = jnp.zeros((1, cin), jnp.float32)

    # conv1: raw conv (f32 MXU accumulation) -> bf16 activation + per-image BN1 stats.
    y1, st1 = _fused_conv3x3(x, w1, dummy, dummy,
                             apply_bn_relu=False, out_dtype=jnp.bfloat16)
    scale1, shift1 = _bn_affine(st1, params["g1"], params["b1"], count)

    # conv2: BN1+ReLU fused into the input load; raw conv output (f32) + BN2 stats.
    y2, st2 = _fused_conv3x3(y1, w2, scale1, shift1,
                             apply_bn_relu=True, out_dtype=jnp.float32)
    scale2, shift2 = _bn_affine(st2, params["g2"], params["b2"], count)

    # Final BN2 + ReLU as plain jnp so XLA fuses it with the NHWC->NCHW transpose
    # (no standalone kernel, no extra HBM round-trip of the output activation).
    out = jnp.maximum(y2 * scale2.reshape(1, 1, 1, cout)
                      + shift2.reshape(1, 1, 1, cout), 0.0)
    return jnp.transpose(out, (0, 3, 1, 2))                  # back to NCHW


# ----------------------------- Reference (pure JAX, f32) -----------------------------

def _reference_forward(x_nchw, params):
    x = jnp.transpose(x_nchw, (0, 2, 3, 1)).astype(jnp.float32)

    def conv(v, w):
        return jax.lax.conv_general_dilated(
            v, w, window_strides=(1, 1), padding="SAME",
            dimension_numbers=("NHWC", "HWIO", "NHWC"),
            precision=jax.lax.Precision.HIGHEST)

    def bn_relu(v, g, b):
        mean = jnp.mean(v, axis=(0, 1, 2))
        var = jnp.mean((v - mean) ** 2, axis=(0, 1, 2))
        return jnp.maximum((v - mean) * jax.lax.rsqrt(var + _BN_EPS) * g + b, 0.0)

    y = bn_relu(conv(x, params["w1"]), params["g1"], params["b1"])
    y = bn_relu(conv(y, params["w2"]), params["g2"], params["b2"])
    return jnp.transpose(y, (0, 3, 1, 2))


# ----------------------------- Parameter init -----------------------------

def init_params(key, in_channels, out_channels):
    # TODO(synk): torch's default Conv2d init is kaiming_uniform(a=sqrt(5)); a simple scaled
    # normal is used here (init does not affect the forward-pass kernel semantics).
    k1, k2 = jax.random.split(key)

    def conv_w(k, cin, cout):
        std = (2.0 / (cout * 9)) ** 0.5
        return std * jax.random.normal(k, (3, 3, cin, cout), jnp.float32)

    return {
        "w1": conv_w(k1, in_channels, out_channels),
        "g1": jnp.ones((out_channels,), jnp.float32),
        "b1": jnp.zeros((out_channels,), jnp.float32),
        "w2": conv_w(k2, out_channels, out_channels),
        "g2": jnp.ones((out_channels,), jnp.float32),
        "b2": jnp.zeros((out_channels,), jnp.float32),
    }


# ----------------------------- Main -----------------------------

if __name__ == "__main__":
    key = jax.random.PRNGKey(0)
    kp, kx = jax.random.split(key)

    in_ch, out_ch = 4, 32
    params = init_params(kp, in_ch, out_ch)
    x = jax.random.normal(kx, (2, in_ch, 16, 16), jnp.float32)

    fwd = jax.jit(conv_block_forward)
    out = jax.block_until_ready(fwd(x, params))

    assert out.shape == (2, out_ch, 16, 16), out.shape
    assert bool(jnp.all(jnp.isfinite(out)))

    # Check vs an f32 XLA reference (kernel uses bf16 MXU operands + bf16 intermediate):
    # loose max-abs tolerance plus a tighter mean-abs check so small regressions surface.
    ref = jax.block_until_ready(jax.jit(_reference_forward)(x, params))
    max_err = float(jnp.max(jnp.abs(out - ref)))
    mean_err = float(jnp.mean(jnp.abs(out - ref)))
    assert max_err < 0.2, f"max abs diff vs f32 reference too large: {max_err}"
    assert mean_err < 0.02, f"mean abs diff vs f32 reference too large: {mean_err}"

    print("KERNEL_OK")
</pallas_src>

<mosaic_0001>
module attributes {stable_mosaic.version = 11 : i64} {
  func.func @_conv3x3_kernel(%arg0: i32, %arg1: memref<1x16x16x4xf32, #tpu.memory_space<vmem>>, %arg2: memref<36x32xbf16, #tpu.memory_space<vmem>>, %arg3: memref<1x4xf32, #tpu.memory_space<vmem>>, %arg4: memref<1x4xf32, #tpu.memory_space<vmem>>, %arg5: memref<1x16x16x32xbf16, #tpu.memory_space<vmem>>, %arg6: memref<1x2x32xf32, #tpu.memory_space<vmem>>) attributes {dimension_semantics = [#tpu.dimension_semantics<parallel>], iteration_bounds = array<i64: 2>, scalar_prefetch = 0 : i64, scratch_operands = 0 : i64, tpu.core_type = #tpu.core_type<tc>, window_params = [{transform_indices = @transform_0, window_bounds = array<i64: 1, 16, 16, 4>}, {pipeline_mode = #tpu.pipeline_mode<synchronous>, transform_indices = @transform_1, window_bounds = array<i64: 36, 32>}, {pipeline_mode = #tpu.pipeline_mode<synchronous>, transform_indices = @transform_2, window_bounds = array<i64: 1, 4>}, {pipeline_mode = #tpu.pipeline_mode<synchronous>, transform_indices = @transform_3, window_bounds = array<i64: 1, 4>}, {transform_indices = @transform_4, window_bounds = array<i64: 1, 16, 16, 32>}, {transform_indices = @transform_5, window_bounds = array<i64: 1, 2, 32>}]} {
    %c0 = arith.constant 0 : index
    %c0_0 = arith.constant 0 : index
    %c0_1 = arith.constant 0 : index
    %c0_2 = arith.constant 0 : index
    %0 = vector.load %arg1[%c0, %c0_0, %c0_1, %c0_2] : memref<1x16x16x4xf32, #tpu.memory_space<vmem>>, vector<1x16x16x4xf32>
    %1 = vector.shape_cast %0 : vector<1x16x16x4xf32> to vector<16x16x4xf32>
    %cst = arith.constant 0.000000e+00 : f32
    %2 = vector.broadcast %cst : f32 to vector<16x1x4xf32>
    %3 = tpu.concatenate %2, %1, %2 in 1 : vector<16x1x4xf32>, vector<16x16x4xf32>, vector<16x1x4xf32> -> vector<16x18x4xf32>
    %cst_3 = arith.constant 0.000000e+00 : f32
    %4 = vector.broadcast %cst_3 : f32 to vector<1x18x4xf32>
    %5 = tpu.concatenate %4, %3, %4 in 0 : vector<1x18x4xf32>, vector<16x18x4xf32>, vector<1x18x4xf32> -> vector<18x18x4xf32>
    %6 = vector.extract_strided_slice %5 {offsets = [0, 0, 0], sizes = [16, 16, 4], strides = [1, 1, 1]} : vector<18x18x4xf32> to vector<16x16x4xf32>
    %7 = vector.extract_strided_slice %5 {offsets = [0, 1, 0], sizes = [16, 16, 4], strides = [1, 1, 1]} : vector<18x18x4xf32> to vector<16x16x4xf32>
    %8 = vector.extract_strided_slice %5 {offsets = [0, 2, 0], sizes = [16, 16, 4], strides = [1, 1, 1]} : vector<18x18x4xf32> to vector<16x16x4xf32>
    %9 = vector.extract_strided_slice %5 {offsets = [1, 0, 0], sizes = [16, 16, 4], strides = [1, 1, 1]} : vector<18x18x4xf32> to vector<16x16x4xf32>
    %10 = vector.extract_strided_slice %5 {offsets = [1, 1, 0], sizes = [16, 16, 4], strides = [1, 1, 1]} : vector<18x18x4xf32> to vector<16x16x4xf32>
    %11 = vector.extract_strided_slice %5 {offsets = [1, 2, 0], sizes = [16, 16, 4], strides = [1, 1, 1]} : vector<18x18x4xf32> to vector<16x16x4xf32>
    %12 = vector.extract_strided_slice %5 {offsets = [2, 0, 0], sizes = [16, 16, 4], strides = [1, 1, 1]} : vector<18x18x4xf32> to vector<16x16x4xf32>
    %13 = vector.extract_strided_slice %5 {offsets = [2, 1, 0], sizes = [16, 16, 4], strides = [1, 1, 1]} : vector<18x18x4xf32> to vector<16x16x4xf32>
    %14 = vector.extract_strided_slice %5 {offsets = [2, 2, 0], sizes = [16, 16, 4], strides = [1, 1, 1]} : vector<18x18x4xf32> to vector<16x16x4xf32>
    %15 = tpu.concatenate %6, %7, %8, %9, %10, %11, %12, %13, %14 in 2 : vector<16x16x4xf32>, vector<16x16x4xf32>, vector<16x16x4xf32>, vector<16x16x4xf32>, vector<16x16x4xf32>, vector<16x16x4xf32>, vector<16x16x4xf32>, vector<16x16x4xf32>, vector<16x16x4xf32> -> vector<16x16x36xf32>
    %16 = vector.shape_cast %15 : vector<16x16x36xf32> to vector<256x36xf32>
    %17 = arith.truncf %16 : vector<256x36xf32> to vector<256x36xbf16>
    %c0_4 = arith.constant 0 : index
    %c0_5 = arith.constant 0 : index
    %18 = vector.load %arg2[%c0_4, %c0_5] : memref<36x32xbf16, #tpu.memory_space<vmem>>, vector<36x32xbf16>
    %cst_6 = arith.constant dense<0.000000e+00> : vector<256x32xf32>
    %19 = tpu.matmul %17, %18, %cst_6 {dimension_numbers = #tpu.dot_dimension_numbers<[1], [0], [0], [1], [0, 0, 1, 1], [], []>} : vector<256x36xbf16>, vector<36x32xbf16>, vector<256x32xf32> -> vector<256x32xf32>
    %20 = vector.shape_cast %19 : vector<256x32xf32> to vector<16x16x32xf32>
    %21 = arith.truncf %20 : vector<16x16x32xf32> to vector<16x16x32xbf16>
    %c0_7 = arith.constant 0 : index
    %c0_8 = arith.constant 0 : index
    %c0_9 = arith.constant 0 : index
    %c0_10 = arith.constant 0 : index
    %22 = vector.load %arg5[%c0_7, %c0_8, %c0_9, %c0_10] : memref<1x16x16x32xbf16, #tpu.memory_space<vmem>>, vector<1x16x16x32xbf16>
    %23 = vector.shape_cast %22 : vector<1x16x16x32xbf16> to vector<16x16x32xbf16>
    %24 = vector.shape_cast %21 : vector<16x16x32xbf16> to vector<1x16x16x32xbf16>
    tpu.vector_store %arg5[%c0_7, %c0_8, %c0_9, %c0_10], %24 {strides = array<i32>} : memref<1x16x16x32xbf16, #tpu.memory_space<vmem>>, vector<1x16x16x32xbf16>,
    %cst_11 = arith.constant dense<0.000000e+00> : vector<32xf32>
    %25 = vector.multi_reduction <add>, %19, %cst_11 [0] : vector<256x32xf32> to vector<32xf32>
    %26 = vector.shape_cast %25 : vector<32xf32> to vector<1x32xf32>
    %27 = arith.mulf %19, %19 : vector<256x32xf32>
    %cst_12 = arith.constant dense<0.000000e+00> : vector<32xf32>
    %28 = vector.multi_reduction <add>, %27, %cst_12 [0] : vector<256x32xf32> to vector<32xf32>
    %29 = vector.shape_cast %28 : vector<32xf32> to vector<1x32xf32>
    %30 = tpu.concatenate %26, %29 in 0 : vector<1x32xf32>, vector<1x32xf32> -> vector<2x32xf32>
    %c0_13 = arith.constant 0 : index
    %c0_14 = arith.constant 0 : index
    %c0_15 = arith.constant 0 : index
    %31 = vector.load %arg6[%c0_13, %c0_14, %c0_15] : memref<1x2x32xf32, #tpu.memory_space<vmem>>, vector<1x2x32xf32>
    %32 = vector.shape_cast %31 : vector<1x2x32xf32> to vector<2x32xf32>
    %33 = vector.shape_cast %30 : vector<2x32xf32> to vector<1x2x32xf32>
    tpu.vector_store %arg6[%c0_13, %c0_14, %c0_15], %33 {strides = array<i32>} : memref<1x2x32xf32, #tpu.memory_space<vmem>>, vector<1x2x32xf32>,
    return
  }
  func.func @transform_0(%arg0: i32) -> (i32, i32, i32, i32) {
    %c0_i32 = arith.constant 0 : i32
    %c0_i32_0 = arith.constant 0 : i32
    %c0_i32_1 = arith.constant 0 : i32
    %c0_i32_2 = arith.constant 0 : i32
    return %arg0, %c0_i32, %c0_i32_0, %c0_i32_1 : i32, i32, i32, i32
  }
  func.func @transform_1(%arg0: i32) -> (i32, i32) {
    %c0_i32 = arith.constant 0 : i32
    %c0_i32_0 = arith.constant 0 : i32
    %c0_i32_1 = arith.constant 0 : i32
    return %c0_i32, %c0_i32_0 : i32, i32
  }
  func.func @transform_2(%arg0: i32) -> (i32, i32) {
    %c0_i32 = arith.constant 0 : i32
    %c0_i32_0 = arith.constant 0 : i32
    %c0_i32_1 = arith.constant 0 : i32
    return %c0_i32, %c0_i32_0 : i32, i32
  }
  func.func @transform_3(%arg0: i32) -> (i32, i32) {
    %c0_i32 = arith.constant 0 : i32
    %c0_i32_0 = arith.constant 0 : i32
    %c0_i32_1 = arith.constant 0 : i32
    return %c0_i32, %c0_i32_0 : i32, i32
  }
  func.func @transform_4(%arg0: i32) -> (i32, i32, i32, i32) {
    %c0_i32 = arith.constant 0 : i32
    %c0_i32_0 = arith.constant 0 : i32
    %c0_i32_1 = arith.constant 0 : i32
    %c0_i32_2 = arith.constant 0 : i32
    return %arg0, %c0_i32, %c0_i32_0, %c0_i32_1 : i32, i32, i32, i32
  }
  func.func @transform_5(%arg0: i32) -> (i32, i32, i32) {
    %c0_i32 = arith.constant 0 : i32
    %c0_i32_0 = arith.constant 0 : i32
    %c0_i32_1 = arith.constant 0 : i32
    return %arg0, %c0_i32, %c0_i32_0 : i32, i32, i32
  }
}

module attributes {stable_mosaic.version = 11 : i64} {
  func.func @_conv3x3_kernel(%arg0: i32, %arg1: memref<1x16x16x32xbf16, #tpu.memory_space<vmem>>, %arg2: memref<288x32xbf16, #tpu.memory_space<vmem>>, %arg3: memref<1x32xf32, #tpu.memory_space<vmem>>, %arg4: memref<1x32xf32, #tpu.memory_space<vmem>>, %arg5: memref<1x16x16x32xf32, #tpu.memory_space<vmem>>, %arg6: memref<1x2x32xf32, #tpu.memory_space<vmem>>) attributes {dimension_semantics = [#tpu.dimension_semantics<parallel>], iteration_bounds = array<i64: 2>, scalar_prefetch = 0 : i64, scratch_operands = 0 : i64, tpu.core_type = #tpu.core_type<tc>, window_params = [{transform_indices = @transform_0, window_bounds = array<i64: 1, 16, 16, 32>}, {pipeline_mode = #tpu.pipeline_mode<synchronous>, transform_indices = @transform_1, window_bounds = array<i64: 288, 32>}, {pipeline_mode = #tpu.pipeline_mode<synchronous>, transform_indices = @transform_2, window_bounds = array<i64: 1, 32>}, {pipeline_mode = #tpu.pipeline_mode<synchronous>, transform_indices = @transform_3, window_bounds = array<i64: 1, 32>}, {transform_indices = @transform_4, window_bounds = array<i64: 1, 16, 16, 32>}, {transform_indices = @transform_5, window_bounds = array<i64: 1, 2, 32>}]} {
    %c0 = arith.constant 0 : index
    %c0_0 = arith.constant 0 : index
    %c0_1 = arith.constant 0 : index
    %c0_2 = arith.constant 0 : index
    %0 = vector.load %arg1[%c0, %c0_0, %c0_1, %c0_2] : memref<1x16x16x32xbf16, #tpu.memory_space<vmem>>, vector<1x16x16x32xbf16>
    %1 = vector.shape_cast %0 : vector<1x16x16x32xbf16> to vector<16x16x32xbf16>
    %2 = arith.extf %1 : vector<16x16x32xbf16> to vector<16x16x32xf32>
    %c0_3 = arith.constant 0 : index
    %c0_4 = arith.constant 0 : index
    %3 = vector.load %arg3[%c0_3, %c0_4] : memref<1x32xf32, #tpu.memory_space<vmem>>, vector<1x32xf32>
    %4 = vector.shape_cast %3 : vector<1x32xf32> to vector<1x1x32xf32>
    %c0_5 = arith.constant 0 : index
    %c0_6 = arith.constant 0 : index
    %5 = vector.load %arg4[%c0_5, %c0_6] : memref<1x32xf32, #tpu.memory_space<vmem>>, vector<1x32xf32>
    %6 = vector.shape_cast %5 : vector<1x32xf32> to vector<1x1x32xf32>
    %7 = vector.broadcast %4 : vector<1x1x32xf32> to vector<16x16x32xf32>
    %8 = arith.mulf %2, %7 : vector<16x16x32xf32>
    %9 = vector.broadcast %6 : vector<1x1x32xf32> to vector<16x16x32xf32>
    %10 = arith.addf %8, %9 : vector<16x16x32xf32>
    %cst = arith.constant 0.000000e+00 : f32
    %11 = vector.broadcast %cst : f32 to vector<16x16x32xf32>
    %12 = arith.maximumf %10, %11 : vector<16x16x32xf32>
    %cst_7 = arith.constant 0.000000e+00 : f32
    %13 = vector.broadcast %cst_7 : f32 to vector<16x1x32xf32>
    %14 = tpu.concatenate %13, %12, %13 in 1 : vector<16x1x32xf32>, vector<16x16x32xf32>, vector<16x1x32xf32> -> vector<16x18x32xf32>
    %cst_8 = arith.constant 0.000000e+00 : f32
    %15 = vector.broadcast %cst_8 : f32 to vector<1x18x32xf32>
    %16 = tpu.concatenate %15, %14, %15 in 0 : vector<1x18x32xf32>, vector<16x18x32xf32>, vector<1x18x32xf32> -> vector<18x18x32xf32>
    %17 = vector.extract_strided_slice %16 {offsets = [0, 0, 0], sizes = [16, 16, 32], strides = [1, 1, 1]} : vector<18x18x32xf32> to vector<16x16x32xf32>
    %18 = vector.extract_strided_slice %16 {offsets = [0, 1, 0], sizes = [16, 16, 32], strides = [1, 1, 1]} : vector<18x18x32xf32> to vector<16x16x32xf32>
    %19 = vector.extract_strided_slice %16 {offsets = [0, 2, 0], sizes = [16, 16, 32], strides = [1, 1, 1]} : vector<18x18x32xf32> to vector<16x16x32xf32>
    %20 = vector.extract_strided_slice %16 {offsets = [1, 0, 0], sizes = [16, 16, 32], strides = [1, 1, 1]} : vector<18x18x32xf32> to vector<16x16x32xf32>
    %21 = vector.extract_strided_slice %16 {offsets = [1, 1, 0], sizes = [16, 16, 32], strides = [1, 1, 1]} : vector<18x18x32xf32> to vector<16x16x32xf32>
    %22 = vector.extract_strided_slice %16 {offsets = [1, 2, 0], sizes = [16, 16, 32], strides = [1, 1, 1]} : vector<18x18x32xf32> to vector<16x16x32xf32>
    %23 = vector.extract_strided_slice %16 {offsets = [2, 0, 0], sizes = [16, 16, 32], strides = [1, 1, 1]} : vector<18x18x32xf32> to vector<16x16x32xf32>
    %24 = vector.extract_strided_slice %16 {offsets = [2, 1, 0], sizes = [16, 16, 32], strides = [1, 1, 1]} : vector<18x18x32xf32> to vector<16x16x32xf32>
    %25 = vector.extract_strided_slice %16 {offsets = [2, 2, 0], sizes = [16, 16, 32], strides = [1, 1, 1]} : vector<18x18x32xf32> to vector<16x16x32xf32>
    %26 = tpu.concatenate %17, %18, %19, %20, %21, %22, %23, %24, %25 in 2 : vector<16x16x32xf32>, vector<16x16x32xf32>, vector<16x16x32xf32>, vector<16x16x32xf32>, vector<16x16x32xf32>, vector<16x16x32xf32>, vector<16x16x32xf32>, vector<16x16x32xf32>, vector<16x16x32xf32> -> vector<16x16x288xf32>
    %27 = vector.shape_cast %26 : vector<16x16x288xf32> to vector<256x288xf32>
    %28 = arith.truncf %27 : vector<256x288xf32> to vector<256x288xbf16>
    %c0_9 = arith.constant 0 : index
    %c0_10 = arith.constant 0 : index
    %29 = vector.load %arg2[%c0_9, %c0_10] : memref<288x32xbf16, #tpu.memory_space<vmem>>, vector<288x32xbf16>
    %cst_11 = arith.constant dense<0.000000e+00> : vector<256x32xf32>
    %30 = tpu.matmul %28, %29, %cst_11 {dimension_numbers = #tpu.dot_dimension_numbers<[1], [0], [0], [1], [0, 0, 1, 1], [], []>} : vector<256x288xbf16>, vector<288x32xbf16>, vector<256x32xf32> -> vector<256x32xf32>
    %31 = vector.shape_cast %30 : vector<256x32xf32> to vector<16x16x32xf32>
    %c0_12 = arith.constant 0 : index
    %c0_13 = arith.constant 0 : index
    %c0_14 = arith.constant 0 : index
    %c0_15 = arith.constant 0 : index
    %32 = vector.load %arg5[%c0_12, %c0_13, %c0_14, %c0_15] : memref<1x16x16x32xf32, #tpu.memory_space<vmem>>, vector<1x16x16x32xf32>
    %33 = vector.shape_cast %32 : vector<1x16x16x32xf32> to vector<16x16x32xf32>
    %34 = vector.shape_cast %31 : vector<16x16x32xf32> to vector<1x16x16x32xf32>
    tpu.vector_store %arg5[%c0_12, %c0_13, %c0_14, %c0_15], %34 {strides = array<i32>} : memref<1x16x16x32xf32, #tpu.memory_space<vmem>>, vector<1x16x16x32xf32>,
    %cst_16 = arith.constant dense<0.000000e+00> : vector<32xf32>
    %35 = vector.multi_reduction <add>, %30, %cst_16 [0] : vector<256x32xf32> to vector<32xf32>
    %36 = vector.shape_cast %35 : vector<32xf32> to vector<1x32xf32>
    %37 = arith.mulf %30, %30 : vector<256x32xf32>
    %cst_17 = arith.constant dense<0.000000e+00> : vector<32xf32>
    %38 = vector.multi_reduction <add>, %37, %cst_17 [0] : vector<256x32xf32> to vector<32xf32>
    %39 = vector.shape_cast %38 : vector<32xf32> to vector<1x32xf32>
    %40 = tpu.concatenate %36, %39 in 0 : vector<1x32xf32>, vector<1x32xf32> -> vector<2x32xf32>
    %c0_18 = arith.constant 0 : index
    %c0_19 = arith.constant 0 : index
    %c0_20 = arith.constant 0 : index
    %41 = vector.load %arg6[%c0_18, %c0_19, %c0_20] : memref<1x2x32xf32, #tpu.memory_space<vmem>>, vector<1x2x32xf32>
    %42 = vector.shape_cast %41 : vector<1x2x32xf32> to vector<2x32xf32>
    %43 = vector.shape_cast %40 : vector<2x32xf32> to vector<1x2x32xf32>
    tpu.vector_store %arg6[%c0_18, %c0_19, %c0_20], %43 {strides = array<i32>} : memref<1x2x32xf32, #tpu.memory_space<vmem>>, vector<1x2x32xf32>,
    return
  }
  func.func @transform_0(%arg0: i32) -> (i32, i32, i32, i32) {
    %c0_i32 = arith.constant 0 : i32
    %c0_i32_0 = arith.constant 0 : i32
    %c0_i32_1 = arith.constant 0 : i32
    %c0_i32_2 = arith.constant 0 : i32
    return %arg0, %c0_i32, %c0_i32_0, %c0_i32_1 : i32, i32, i32, i32
  }
  func.func @transform_1(%arg0: i32) -> (i32, i32) {
    %c0_i32 = arith.constant 0 : i32
    %c0_i32_0 = arith.constant 0 : i32
    %c0_i32_1 = arith.constant 0 : i32
    return %c0_i32, %c0_i32_0 : i32, i32
  }
  func.func @transform_2(%arg0: i32) -> (i32, i32) {
    %c0_i32 = arith.constant 0 : i32
    %c0_i32_0 = arith.constant 0 : i32
    %c0_i32_1 = arith.constant 0 : i32
    return %c0_i32, %c0_i32_0 : i32, i32
  }
  func.func @transform_3(%arg0: i32) -> (i32, i32) {
    %c0_i32 = arith.constant 0 : i32
    %c0_i32_0 = arith.constant 0 : i32
    %c0_i32_1 = arith.constant 0 : i32
    return %c0_i32, %c0_i32_0 : i32, i32
  }
  func.func @transform_4(%arg0: i32) -> (i32, i32, i32, i32) {
    %c0_i32 = arith.constant 0 : i32
    %c0_i32_0 = arith.constant 0 : i32
    %c0_i32_1 = arith.constant 0 : i32
    %c0_i32_2 = arith.constant 0 : i32
    return %arg0, %c0_i32, %c0_i32_0, %c0_i32_1 : i32, i32, i32, i32
  }
  func.func @transform_5(%arg0: i32) -> (i32, i32, i32) {
    %c0_i32 = arith.constant 0 : i32
    %c0_i32_0 = arith.constant 0 : i32
    %c0_i32_1 = arith.constant 0 : i32
    return %arg0, %c0_i32, %c0_i32_0 : i32, i32, i32
  }
}

</mosaic_0001>

<bundles_post_ra>
// kernel: conv_block_forward.2
= control target key start
LH: loop header
LB: loop body
LE: loop exit
PB: predicated region body
PF: predicated region fallthrough
CT: control target
= control target key end

     0   :  { %s3157_s18 = smov 0   ;;  %s4645_s0 = inlined_call_operand.vmem [shape: f32[2,16,16,4], index: 0, kind: input, shape index: {}]   ;;  %s4646_s1 = inlined_call_operand.vmem [shape: bf16[36,32], index: 1, kind: input, shape index: {}]   ;;  %s4647_s2 = inlined_call_operand.vmem [shape: f32[1,4], index: 2, kind: input, shape index: {}, may-alias: {2,3}]   ;;  %s4648_s3 = inlined_call_operand.vmem [shape: f32[1,4], index: 3, kind: input, shape index: {}, may-alias: {2,3}]   ;;  %s4649_s4 = inlined_call_operand.vmem [shape: bf16[2,16,16,32], index: 4, kind: output, shape index: {0}]   ;;  %s4650_s5 = inlined_call_operand.vmem [shape: f32[2,2,32], index: 5, kind: output, shape index: {1}]  }
   0x1 LB: > { %s2313_s2 = sadd.s32 4294967295, %s3116_s18   ;;  %p2317_p0 = scmp.ge.s32.totalorder %s3116_s18, 1  ;;  %s3116_s18 = sphi %s3157_s18, %s16_s18  }
   0x2   : > { %p190_p1 = scmp.lt.s32.totalorder %s3116_s18, 3 }
   0x4   : > { %p191_p2 = pnand %p2317_p0, %p190_p1 }
   0x6   : > { %194 = sbr.rel (%p191_p2) target bundleno = 648 (0x288), region = 36 }
   0xd   : > { %p222_p3 = scmp.lt.s32.totalorder %s2313_s2, 1  ;;  %vm301_vm0 = vcmask 1040384   ;;  %vm460_vm1 = vcmask 1046528   ;;  %v4651_v3 = vmov 0.0   ;;  %s3119_s22 = smov 4   ;;  %vm631_vm2 = vcmask 1045504  }
   0xe   : > { %v3177_v4 = vrot.slane %v4651_v3, 1  ;;  %v3184_v15 = vrot.slane %v4651_v3, 2  ;;  %s3120_s23 = smov 8   ;;  %s3121_s24 = smov 12   ;;  %vm1728_vm3 = vcmask 1041408   ;;  %vm1381_vm4 = vcmask 31744  }
   0xf   : > { %s4849_s2 = smov (!%p222_p3, %s2313_s2), 1  ;;  %s3122_s27 = smov 16   ;;  %vm1413_vm5 = vcmask 64512   ;;  %vm1445_vm6 = vcmask 97280   ;;  %vm1478_vm7 = vcmask 130048   ;;  %vm1511_vm8 = vcmask 162816  }
  0x10   : > { %s2376_s3 = sshll.u32 %s4849_s2, 8  ;;  %4719 = vst [vmem:[#allocation2_spill] sm:$0xff] %v3177_v4  ;;  %4720 = vst [vmem:[#allocation3_spill] sm:$0xff] %v3184_v15  ;;  %s3123_s30 = smov 20   ;;  %vm1544_vm9 = vcmask 195584   ;;  %vm1577_vm10 = vcmask 228352  }
  0x11   : > { %s3171_s21 = scalar_lea.vmem %s4645_s0, %s2376_s3  ;;  %s3124_s8 = smov 24   ;;  %vm1610_vm11 = vcmask 261120   ;;  %vm1679_vm12 = vcmask 293888   ;;  %vm2021_vm13 = vcmask 257024   ;;  %vm2225_vm14 = vcmask 254976  }
  0x12   : > { %v239_v0 = vld [vmem:[%s3171_s21 + $0x10] sm:$0xff]  ;;  %v240_v1 = vld [vmem:[%s3171_s21 + $0x18] sm:$0xff]  ;;  %v241_v2 = vld [vmem:[%s3171_s21 + $0x20] sm:$0xff]  ;;  %s3125_s9 = smov 28   ;;  %s3126_s10 = smov 32  }
  0x13   : > { %v242_v5 = vld [vmem:[%s3171_s21 + $0x28] sm:$0xff]  ;;  %v305_v6 = vrot.slane %v239_v0, 7  ;;  %v306_v7 = vrot.slane %v240_v1, 7  ;;  %v308_v8 = vrot.slane %v241_v2, 7  ;;  %v237_v9 = vld [vmem:[%s3171_s21] sm:$0xff]  ;;  %v243_v14 = vld [vmem:[%s3171_s21 + $0x30] sm:$0xff] }
  0x14   : > { %v238_v10 = vld [vmem:[%s3171_s21 + $0x8] sm:$0xff]  ;;  %v309_v11 = vrot.slane %v242_v5, 7  ;;  %v302_v12 = vrot.slane %v237_v9, 7  ;;  %v311_v19 = vrot.slane %v243_v14, 7  ;;  %v244_v24 = vld [vmem:[%s3171_s21 + $0x38] sm:$0xff]  ;;  %v245_v37 = vld [vmem:[%s3171_s21 + $0x40] sm:$0xff] }
  0x15   : > { %v303_v13 = vrot.slane %v238_v10, 7  ;;  %v3187_v16 = vsel %vm301_vm0, %v305_v6, %v306_v7  ;;  %v3190_v17 = vsel %vm301_vm0, 0.0, %v308_v8  ;;  %v3193_v18 = vsel %vm301_vm0, %v306_v7, 0.0  ;;  %v246_v42 = vld [vmem:[%s3171_s21 + $0x48] sm:$0xff]  ;;  %v247_v43 = vld [vmem:[%s3171_s21 + $0x50] sm:$0xff]  ;;  %v248_v48 = vld [vmem:[%s3171_s21 + $0x58] sm:$0xff] }
  0x16   : > { %v3196_v20 = vsel %vm301_vm0, %v308_v8, %v309_v11  ;;  %v469_v21 = vrot.slane %v3187_v16, 1  ;;  %v471_v22 = vrot.slane %v3193_v18, 1  ;;  %v473_v23 = vrot.slane %v3190_v17, 1  ;;  %v249_v1 = vld [vmem:[%s3171_s21 + $0x60] sm:$0xff]  ;;  %v250_v2 = vld [vmem:[%s3171_s21 + $0x68] sm:$0xff]  ;;  %v251_v5 = vld [vmem:[%s3171_s21 + $0x70] sm:$0xff] }
  0x17   : > { %v474_v25 = vrot.slane %v3196_v20, 1  ;;  %v3205_v27 = vsel %vm301_vm0, %v302_v12, %v303_v13  ;;  %v3208_v28 = vsel %vm301_vm0, 0.0, %v302_v12  ;;  %v3214_v30 = vsel %vm301_vm0, %v303_v13, 0.0  ;;  %v252_v10 = vld [vmem:[%s3171_s21 + $0x78] sm:$0xff]  ;;  %s2377_s11 = sshll.u32 %s4849_s2, 7  ;;  %s2322_s15 = sshll.u32 %s4849_s2, 1 }
  0x18   : > { %4721 = vst [vmem:[#allocation4_spill] sm:$0xff] %v3205_v27  ;;  %v3211_v29 = vsel %vm460_vm1, %v469_v21, %v471_v22  ;;  %v463_v31 = vrot.slane %v3208_v28, 1  ;;  %v464_v32 = vrot.slane %v3205_v27, 1  ;;  %v466_v34 = vrot.slane %v3214_v30, 1  ;;  %s4507_s14 = scalar_lea.vmem %s4649_s4, %s2377_s11  ;;  %s235_s3 = scalar_lea.vmem %s4650_s5, %s2322_s15 }
  0x19   : > { %v3219_v33 = vsel %vm460_vm1, %v473_v23, %v474_v25  ;;  %v312_v35 = vrot.slane %v244_v24, 7  ;;  %v3223_v36 = vsel %vm301_vm0, 0.0, %v311_v19  ;;  %v3232_v40 = vsel %vm301_vm0, %v309_v11, 0.0 }
  0x1a   : > { %4722 = vst [vmem:[#allocation5_spill] sm:$0xff] %v3223_v36  ;;  %v2502_v38 = vpack.i.bf16 %v3219_v33, %v3211_v29  ;;  %v3229_v39 = vsel %vm460_vm1, %v463_v31, %v464_v32  ;;  %v478_v41 = vrot.slane %v3223_v36, 1  ;;  %v3238_v44 = vsel %vm460_vm1, %v464_v32, %v466_v34 }
  0x1b   : > { %4723 = vst [vmem:[#allocation6_spill] sm:$0xff] %v3229_v39  ;;  %4724 = vst [vmem:[#allocation7_spill] sm:$0xff] %v3238_v44  ;;  %v2492_v45 = vpack.i.bf16 %v3229_v39, %v3177_v4  ;;  %v3243_v46 = vsel %vm301_vm0, %v311_v19, %v312_v35  ;;  %v476_v47 = vrot.slane %v3232_v40, 1  ;;  %v3252_v51 = vsel %vm301_vm0, 0.0, %v305_v6 }
  0x1c   : > { %4725 = vst [vmem:[#allocation8_spill] sm:$0xff] %v3243_v46  ;;  %2503 = vrot.lane.b32.xlu1 %v2502_v38, %s3119_s22  ;;  %v479_v50 = vrot.slane %v3243_v46, 1  ;;  %4726 = vst [vmem:[#allocation9_spill] sm:$0xff] %v3252_v51  ;;  %v314_v52 = vrot.slane %v245_v37, 7  ;;  %v468_v54 = vrot.slane %v3252_v51, 1  ;;  %v315_v55 = vrot.slane %v246_v42, 7 }
  0x1d   : > { %2493 = vrot.lane.b32.xlu0 %v2492_v45, %s3119_s22  ;;  %v3256_v53 = vsel %vm460_vm1, %v474_v25, %v476_v47  ;;  %v317_v56 = vrot.slane %v247_v43, 7  ;;  %v318_v58 = vrot.slane %v248_v48, 7  ;;  %v3266_v60 = vsel %vm301_vm0, %v312_v35, 0.0  ;;  %v254_v42 = vld [vmem:[%s3171_s21 + $0x88] sm:$0xff] }
  0x1e   : > { %4727 = vst [vmem:[#allocation10_spill] sm:$0xff] %v3256_v53  ;;  %v3260_v57 = vsel %vm460_vm1, %v478_v41, %v479_v50  ;;  %v3263_v59 = vsel %vm301_vm0, 0.0, %v314_v52  ;;  %v3271_v62 = vsel %vm460_vm1, %v468_v54, %v469_v21  ;;  %v3274_v63 = vsel %vm301_vm0, %v314_v52, %v315_v55  ;;  %v253_v41 = vld [vmem:[%s3171_s21 + $0x80] sm:$0xff] }
  0x1f   : > { %4728 = vst [vmem:[#allocation11_spill] sm:$0xff] %v3260_v57  ;;  %4729 = vst [vmem:[#allocation12_spill] sm:$0xff] %v3263_v59  ;;  %v2507_v61 = vpack.i.bf16 %v3260_v57, %v3256_v53  ;;  %v3277_v0 = vsel %vm301_vm0, 0.0, %v317_v56  ;;  %v2497_v6 = vpack.i.bf16 %v3271_v62, %v3238_v44  ;;  %v3285_v7 = vsel %vm301_vm0, %v317_v56, %v318_v58  ;;  %v262_v44 = vld [vmem:[%s3171_s21 + $0xc8] sm:$0xff] }
  0x20   : > { %4730 = vst [vmem:[#allocation13_spill] sm:$0xff] %v3274_v63  ;;  %4731 = vst [vmem:[#allocation14_spill] sm:$0xff] %v3277_v0  ;;  %v3288_v8 = vsel %vm301_vm0, %v315_v55, 0.0  ;;  %v484_v9 = vrot.slane %v3274_v63, 1  ;;  %v488_v12 = vrot.slane %v3277_v0, 1  ;;  %v489_v13 = vrot.slane %v3285_v7, 1 }
  0x21   : > { %4732 = vst [vmem:[#allocation15_spill] sm:$0xff] %v3285_v7  ;;  %2508 = vrot.lane.b32.xlu1 %v2507_v61, %s3119_s22  ;;  %v486_v11 = vrot.slane %v3288_v8, 1  ;;  %v481_v14 = vrot.slane %v3266_v60, 1  ;;  %2498 = vrot.lane.b32.xlu0 %v2497_v6, %s3119_s22  ;;  %v483_v19 = vrot.slane %v3263_v59, 1  ;;  %v320_v21 = vrot.slane %v249_v1, 7  ;;  %v256_v61 = vld [vmem:[%s3171_s21 + $0x98] sm:$0xff] }
  0x22   : > { %v321_v22 = vrot.slane %v250_v2, 7  ;;  %v323_v23 = vrot.slane %v251_v5, 7  ;;  %v3303_v25 = vsel %vm460_vm1, %v488_v12, %v489_v13  ;;  %v324_v32 = vrot.slane %v252_v10, 7 }
  0x23   : > { %v3300_v24 = vsel %vm460_vm1, %v484_v9, %v486_v11  ;;  %4734 = vst [vmem:[#allocation17_spill] sm:$0xff] %v3303_v25  ;;  %v3306_v31 = vsel %vm460_vm1, %v479_v50, %v481_v14  ;;  %v3311_v35 = vsel %vm460_vm1, %v483_v19, %v484_v9  ;;  %v255_v50 = vld [vmem:[%s3171_s21 + $0x90] sm:$0xff]  ;;  %v3336_v56 = vsel %vm301_vm0, 0.0, %v320_v21 }
  0x24   : > { %4733 = vst [vmem:[#allocation16_spill] sm:$0xff] %v3300_v24  ;;  %4735 = vst [vmem:[#allocation18_spill] sm:$0xff] %v3306_v31  ;;  %v2517_v34 = vpack.i.bf16 %v3303_v25, %v3300_v24  ;;  %v3314_v37 = vsel %vm301_vm0, %v320_v21, %v321_v22  ;;  %v3317_v38 = vsel %vm301_vm0, 0.0, %v323_v23  ;;  %v2512_v43 = vpack.i.bf16 %v3311_v35, %v3306_v31  ;;  %v265_v25 = vld [vmem:[%s3171_s21 + $0xe0] sm:$0xff] }
  0x25   : > { %4736 = vst [vmem:[#allocation19_spill] sm:$0xff] %v3311_v35  ;;  %v3324_v45 = vsel %vm301_vm0, %v323_v23, %v324_v32  ;;  %v3327_v47 = vsel %vm301_vm0, %v321_v22, 0.0  ;;  %v494_v48 = vrot.slane %v3314_v37, 1  ;;  %v498_v54 = vrot.slane %v3317_v38, 1  ;;  %v257_v22 = vld [vmem:[%s3171_s21 + $0xa0] sm:$0xff] }
  0x26   : > { %4737 = vst [vmem:[#allocation20_spill] sm:$0xff] %v3324_v45  ;;  %2518 = vrot.lane.b32.xlu1 %v2517_v34, %s3119_s22  ;;  %v496_v52 = vrot.slane %v3327_v47, 1  ;;  %v499_v55 = vrot.slane %v3324_v45, 1  ;;  %2513 = vrot.lane.b32.xlu0 %v2512_v43, %s3119_s22  ;;  %v3341_v1 = vsel %vm301_vm0, %v318_v58, 0.0  ;;  %v493_v2 = vrot.slane %v3336_v56, 1  ;;  %v258_v43 = vld [vmem:[%s3171_s21 + $0xa8] sm:$0xff] }
  0x27   : > { %v326_v5 = vrot.slane %v253_v41, 7  ;;  %v327_v6 = vrot.slane %v254_v42, 7  ;;  %v491_v11 = vrot.slane %v3341_v1, 1  ;;  %v329_v12 = vrot.slane %v255_v50, 7 }
  0x28   : > { %v3345_v9 = vsel %vm460_vm1, %v494_v48, %v496_v52  ;;  %v3348_v10 = vsel %vm460_vm1, %v498_v54, %v499_v55  ;;  %v3354_v58 = vsel %vm460_vm1, %v493_v2, %v494_v48  ;;  %v330_v21 = vrot.slane %v256_v61, 7  ;;  %v259_v54 = vld [vmem:[%s3171_s21 + $0xb0] sm:$0xff]  ;;  %v260_v61 = vld [vmem:[%s3171_s21 + $0xb8] sm:$0xff] }
  0x29   : > { %4738 = vst [vmem:[#allocation21_spill] sm:$0xff] %v3345_v9  ;;  %4739 = vst [vmem:[#allocation22_spill] sm:$0xff] %v3348_v10  ;;  %v2527_v14 = vpack.i.bf16 %v3348_v10, %v3345_v9  ;;  %v3357_v19 = vsel %vm301_vm0, %v326_v5, %v327_v6  ;;  %v3361_v23 = vsel %vm460_vm1, %v489_v13, %v491_v11  ;;  %v3364_v34 = vsel %vm301_vm0, 0.0, %v329_v12 }
  0x2a   : > { %4740 = vst [vmem:[#allocation23_spill] sm:$0xff] %v3354_v58  ;;  %4741 = vst [vmem:[#allocation24_spill] sm:$0xff] %v3357_v19  ;;  %v3367_v41 = vsel %vm301_vm0, %v327_v6, 0.0  ;;  %v504_v42 = vrot.slane %v3357_v19, 1  ;;  %v2522_v48 = vpack.i.bf16 %v3354_v58, %v3361_v23  ;;  %v3375_v50 = vsel %vm301_vm0, %v329_v12, %v330_v21 }
  0x2b   : > { %4742 = vst [vmem:[#allocation25_spill] sm:$0xff] %v3361_v23  ;;  %4743 = vst [vmem:[#allocation26_spill] sm:$0xff] %v3364_v34  ;;  %2528 = vrot.lane.b32.xlu1 %v2527_v14, %s3119_s22  ;;  %v506_v13 = vrot.slane %v3367_v41, 1  ;;  %v508_v52 = vrot.slane %v3364_v34, 1  ;;  %v509_v2 = vrot.slane %v3375_v50, 1  ;;  %v3383_v6 = vsel %vm301_vm0, 0.0, %v326_v5 }
  0x2c   : > { %4744 = vst [vmem:[#allocation27_spill] sm:$0xff] %v3375_v50  ;;  %v3386_v11 = vsel %vm301_vm0, %v324_v32, 0.0  ;;  %v332_v14 = vrot.slane %v257_v22, 7  ;;  %2523 = vrot.lane.b32.xlu0 %v2522_v48, %s3119_s22  ;;  %v503_v49 = vrot.slane %v3383_v6, 1  ;;  %v333_v26 = vrot.slane %v258_v43, 7 }
  0x2d   : > { %v3390_v12 = vsel %vm460_vm1, %v504_v42, %v506_v13  ;;  %v501_v3 = vrot.slane %v3386_v11, 1  ;;  %v3395_v5 = vsel %vm460_vm1, %v508_v52, %v509_v2  ;;  %v335_v4 = vrot.slane %v259_v54, 7  ;;  %v261_v52 = vld [vmem:[%s3171_s21 + $0xc0] sm:$0xff] }
  0x2e   : > { %4745 = vst [vmem:[#allocation28_spill] sm:$0xff] %v3390_v12  ;;  %4746 = vst [vmem:[#allocation29_spill] sm:$0xff] %v3395_v5  ;;  %v336_v39 = vrot.slane %v260_v61, 7  ;;  %v3398_v32 = vsel %vm301_vm0, 0.0, %v332_v14  ;;  %v2537_v22 = vpack.i.bf16 %v3395_v5, %v3390_v12  ;;  %v3406_v13 = vsel %vm460_vm1, %v503_v49, %v504_v42 }
  0x2f   : > { %v3403_v48 = vsel %vm460_vm1, %v499_v55, %v501_v3  ;;  %4748 = vst [vmem:[#allocation31_spill] sm:$0xff] %v3406_v13  ;;  %v3409_v43 = vsel %vm301_vm0, %v332_v14, %v333_v26  ;;  %v3419_v5 = vsel %vm301_vm0, 0.0, %v335_v4  ;;  %v3422_v3 = vsel %vm301_vm0, %v333_v26, 0.0  ;;  %v263_v55 = vld [vmem:[%s3171_s21 + $0xd0] sm:$0xff] }
  0x30   : > { %4747 = vst [vmem:[#allocation30_spill] sm:$0xff] %v3403_v48  ;;  %4749 = vst [vmem:[#allocation32_spill] sm:$0xff] %v3409_v43  ;;  %v2532_v54 = vpack.i.bf16 %v3406_v13, %v3403_v48  ;;  %v3416_v61 = vsel %vm301_vm0, %v335_v4, %v336_v39  ;;  %2538 = vrot.lane.b32.xlu1 %v2537_v22, %s3119_s22  ;;  %v514_v49 = vrot.slane %v3409_v43, 1  ;;  %v516_v42 = vrot.slane %v3422_v3, 1  ;;  %v264_v13 = vld [vmem:[%s3171_s21 + $0xd8] sm:$0xff] }
  0x31   : > { %4750 = vst [vmem:[#allocation33_spill] sm:$0xff] %v3416_v61  ;;  %v518_v14 = vrot.slane %v3419_v5, 1  ;;  %v519_v12 = vrot.slane %v3416_v61, 1  ;;  %v3433_v4 = vsel %vm301_vm0, %v330_v21, 0.0  ;;  %v513_v26 = vrot.slane %v3398_v32, 1 }
  0x32   : > { %2533 = vrot.lane.b32.xlu0 %v2532_v54, %s3119_s22  ;;  %v338_v48 = vrot.slane %v261_v52, 7  ;;  %v339_v22 = vrot.slane %v262_v44, 7  ;;  %v3437_v10 = vsel %vm460_vm1, %v514_v49, %v516_v42  ;;  %v511_v58 = vrot.slane %v3433_v4, 1 }
  0x33   : > { %4751 = vst [vmem:[#allocation34_spill] sm:$0xff] %v3437_v10  ;;  %v3440_v9 = vsel %vm460_vm1, %v518_v14, %v519_v12  ;;  %v341_v23 = vrot.slane %v263_v55, 7  ;;  %v3446_v21 = vsel %vm460_vm1, %v513_v26, %v514_v49  ;;  %v342_v44 = vrot.slane %v264_v13, 7 }
  0x34   : > { %4752 = vst [vmem:[#allocation35_spill] sm:$0xff] %v3440_v9  ;;  %v2547_v54 = vpack.i.bf16 %v3440_v9, %v3437_v10  ;;  %4753 = vst [vmem:[#allocation36_spill] sm:$0xff] %v3446_v21  ;;  %v3449_v52 = vsel %vm301_vm0, %v338_v48, %v339_v22  ;;  %v3453_v42 = vsel %vm460_vm1, %v509_v2, %v511_v58  ;;  %v3459_v55 = vsel %vm301_vm0, %v339_v22, 0.0  ;;  %v266_v9 = vld [vmem:[%s3171_s21 + $0xe8] sm:$0xff] }
  0x35   : > { %4754 = vst [vmem:[#allocation37_spill] sm:$0xff] %v3449_v52  ;;  %4755 = vst [vmem:[#allocation38_spill] sm:$0xff] %v3453_v42  ;;  %v3456_v14 = vsel %vm301_vm0, 0.0, %v341_v23  ;;  %v524_v24 = vrot.slane %v3449_v52, 1  ;;  %v2542_v49 = vpack.i.bf16 %v3446_v21, %v3453_v42  ;;  %v3467_v13 = vsel %vm301_vm0, %v341_v23, %v342_v44 }
  0x36   : > { %4756 = vst [vmem:[#allocation39_spill] sm:$0xff] %v3456_v14  ;;  %2548 = vrot.lane.b32.xlu1 %v2547_v54, %s3119_s22  ;;  %4757 = vst [vmem:[#allocation40_spill] sm:$0xff] %v3467_v13  ;;  %v526_v58 = vrot.slane %v3459_v55, 1  ;;  %v528_v2 = vrot.slane %v3456_v14, 1  ;;  %v529_v26 = vrot.slane %v3467_v13, 1  ;;  %v3473_v22 = vsel %vm301_vm0, 0.0, %v338_v48 }
  0x37   : > { %v3476_v10 = vsel %vm301_vm0, %v336_v39, 0.0  ;;  %v344_v35 = vrot.slane %v265_v25, 7  ;;  %2543 = vrot.lane.b32.xlu0 %v2542_v49, %s3119_s22  ;;  %v523_v21 = vrot.slane %v3473_v22, 1  ;;  %v345_v42 = vrot.slane %v266_v9, 7 }
  0x38   : > { %v3480_v54 = vsel %vm460_vm1, %v524_v24, %v526_v58  ;;  %v521_v23 = vrot.slane %v3476_v10, 1  ;;  %v3485_v31 = vsel %vm460_vm1, %v528_v2, %v529_v26  ;;  %v3491_v39 = vsel %vm301_vm0, %v342_v44, 0.0 }
  0x39   : > { %4758 = vst [vmem:[#allocation41_spill] sm:$0xff] %v3480_v54  ;;  %4759 = vst [vmem:[#allocation42_spill] sm:$0xff] %v3485_v31  ;;  %v3488_v48 = vsel %vm301_vm0, 0.0, %v344_v35  ;;  %v635_v25 = vrot.slane %v3205_v27, 2  ;;  %v2557_v49 = vpack.i.bf16 %v3485_v31, %v3480_v54  ;;  %v3500_v57 = vsel %vm460_vm1, %v523_v21, %v524_v24 }
  0x3a   : > { %4760 = vst [vmem:[#allocation43_spill] sm:$0xff] %v3488_v48  ;;  %v3497_v58 = vsel %vm460_vm1, %v519_v12, %v521_v23  ;;  %4762 = vst [vmem:[#allocation45_spill] sm:$0xff] %v3500_v57  ;;  %v3503_v9 = vsel %vm301_vm0, %v344_v35, %v345_v42  ;;  %v3508_v44 = vsel %vm301_vm0, %v345_v42, 0.0  ;;  %v533_v27 = vrot.slane %v3488_v48, 1 }
  0x3b   : > { %4761 = vst [vmem:[#allocation44_spill] sm:$0xff] %v3497_v58  ;;  %v2552_v2 = vpack.i.bf16 %v3500_v57, %v3497_v58  ;;  %v534_v53 = vrot.slane %v3503_v9, 1  ;;  %2558 = vrot.lane.b32.xlu1 %v2557_v49, %s3119_s22  ;;  %v536_v12 = vrot.slane %v3508_v44, 1  ;;  %v531_v24 = vrot.slane %v3491_v39, 1 }
  0x3c   : > { %v637_v21 = vrot.slane %v3214_v30, 2  ;;  %v639_v35 = vrot.slane %v3252_v51, 2  ;;  %v640_v42 = vrot.slane %v3187_v16, 2  ;;  %v634_v31 = vrot.slane %v3208_v28, 2 }
  0x3d   : > { %2553 = vrot.lane.b32.xlu0 %v2552_v2, %s3119_s22  ;;  %v535_v23 = vsel %vm460_vm1, %v533_v27, %v534_v53  ;;  %v645_v54 = vrot.slane %v3196_v20, 2  ;;  %v537_v49 = vsel %vm460_vm1, %v534_v53, %v536_v12  ;;  %v3524_v57 = vsel %vm460_vm1, %v529_v26, %v531_v24 }
  0x3e   : > { %4763 = vst [vmem:[#allocation46_spill] sm:$0xff] %v3524_v57  ;;  %v3527_v58 = vsel %vm631_vm2, %v635_v25, %v637_v21  ;;  %v647_v30 = vrot.slane %v3232_v40, 2  ;;  %v3530_v51 = vpack.i.bf16 %v537_v49, %v535_v23  ;;  %v2562_v27 = vpack.i.bf16 %v535_v23, %v3524_v57 }
  0x3f   : > { %v3534_v2 = vsel %vm631_vm2, %v639_v35, %v640_v42  ;;  %598 = vrot.lane.b32.xlu1 %v537_v49, %s3119_s22  ;;  %v3540_v26 = vsel %vm631_vm2, %v634_v31, %v635_v25  ;;  %v649_v40 = vrot.slane %v3223_v36, 2  ;;  %v650_v21 = vrot.slane %v3243_v46, 2 }
  0x40   : > { %4764 = vst [vmem:[#allocation47_spill] sm:$0xff] %v3530_v51  ;;  %v2572_v53 = vpack.i.bf16 %v3534_v2, %v3527_v58  ;;  %v3543_v12 = vsel %vm631_vm2, %v645_v54, %v647_v30  ;;  %v2567_v24 = vpack.i.bf16 %v3540_v26, %v3184_v15  ;;  %v4766_v35 = vrot.slane %v3193_v18, 2 }
  0x41   : > { %4765 = vst [vmem:[#allocation48_spill] sm:$0xff] %v3543_v12  ;;  %2563 = vrot.lane.b32.xlu0 %v2562_v27, %s3119_s22  ;;  %v644_v31 = vrot.slane %v3190_v17, 2  ;;  %v655_v25 = vrot.slane %v3274_v63, 2  ;;  %v657_v49 = vrot.slane %v3288_v8, 2  ;;  %v659_v30 = vrot.slane %v3277_v0, 2 }
  0x42   : > { %v3553_v23 = vsel %vm631_vm2, %v640_v42, %v4766_v35  ;;  %v660_v27 = vrot.slane %v3285_v7, 2  ;;  %v3561_v51 = vsel %vm631_vm2, %v649_v40, %v650_v21  ;;  %v652_v18 = vrot.slane %v3266_v60, 2 }
  0x43   : > { %v3564_v15 = vsel %vm631_vm2, %v644_v31, %v645_v54  ;;  %v654_v42 = vrot.slane %v3263_v59, 2  ;;  %2573 = vrot.lane.b32.xlu1 %v2572_v53, %s3120_s23  ;;  %v2582_v8 = vpack.i.bf16 %v3561_v51, %v3543_v12  ;;  %v3572_v35 = vsel %vm631_vm2, %v655_v25, %v657_v49 }
  0x44   : > { %v3575_v57 = vsel %vm631_vm2, %v659_v30, %v660_v27  ;;  %v2577_v54 = vpack.i.bf16 %v3564_v15, %v3553_v23  ;;  %v3583_v40 = vsel %vm631_vm2, %v650_v21, %v652_v18  ;;  %v665_v53 = vrot.slane %v3314_v37, 2 }
  0x45   : > { %2568 = vrot.lane.b32.xlu0 %v2567_v24, %s3120_s23  ;;  %v2592_v60 = vpack.i.bf16 %v3575_v57, %v3572_v35  ;;  %v3587_v31 = vsel %vm631_vm2, %v654_v42, %v655_v25  ;;  %v667_v49 = vrot.slane %v3327_v47, 2  ;;  %v669_v30 = vrot.slane %v3317_v38, 2 }
  0x46   : > { %v670_v24 = vrot.slane %v3324_v45, 2  ;;  %v662_v7 = vrot.slane %v3341_v1, 2  ;;  %v664_v0 = vrot.slane %v3336_v56, 2  ;;  %v675_v12 = vrot.slane %v3357_v19, 2 }
  0x47   : > { %v677_v21 = vrot.slane %v3367_v41, 2  ;;  %2583 = vrot.lane.b32.xlu1 %v2582_v8, %s3120_s23  ;;  %v3598_v18 = vsel %vm631_vm2, %v665_v53, %v667_v49  ;;  %v679_v47 = vrot.slane %v3364_v34, 2  ;;  %v680_v42 = vrot.slane %v3375_v50, 2 }
  0x48   : > { %v3601_v25 = vsel %vm631_vm2, %v669_v30, %v670_v24  ;;  %v2587_v1 = vpack.i.bf16 %v3587_v31, %v3583_v40  ;;  %v663_v8 = vsel %vm631_vm2, %v660_v27, %v662_v7  ;;  %v666_v49 = vsel %vm631_vm2, %v664_v0, %v665_v53 }
  0x49   : > { %2578 = vrot.lane.b32.xlu0 %v2577_v54, %s3120_s23  ;;  %v2602_v41 = vpack.i.bf16 %v3601_v25, %v3598_v18  ;;  %v672_v19 = vrot.slane %v3386_v11, 2  ;;  %v674_v30 = vrot.slane %v3383_v6, 2  ;;  %v3615_v34 = vsel %vm631_vm2, %v675_v12, %v677_v21 }
  0x4a   : > { %v3618_v50 = vsel %vm631_vm2, %v679_v47, %v680_v42  ;;  %v685_v54 = vrot.slane %v3409_v43, 2  ;;  %v687_v45 = vrot.slane %v3422_v3, 2  ;;  %v689_v11 = vrot.slane %v3419_v5, 2 }
  0x4b   : > { %2593 = vrot.lane.b32.xlu1 %v2592_v60, %s3120_s23  ;;  %v673_v7 = vsel %vm631_vm2, %v670_v24, %v672_v19  ;;  %v676_v0 = vsel %vm631_vm2, %v674_v30, %v675_v12  ;;  %v690_v27 = vrot.slane %v3416_v61, 2  ;;  %v2597_v53 = vpack.i.bf16 %v666_v49, %v663_v8 }
  0x4c   : > { %v682_v21 = vrot.slane %v3433_v4, 2  ;;  %v684_v47 = vrot.slane %v3398_v32, 2  ;;  %v2612_v3 = vpack.i.bf16 %v3618_v50, %v3615_v34  ;;  %v2607_v43 = vpack.i.bf16 %v676_v0, %v673_v7 }
  0x4d   : > { %2588 = vrot.lane.b32.xlu0 %v2587_v1, %s3120_s23  ;;  %v688_v60 = vsel %vm631_vm2, %v685_v54, %v687_v45  ;;  %v695_v19 = vrot.slane %v3449_v52, 2  ;;  %v691_v12 = vsel %vm631_vm2, %v689_v11, %v690_v27  ;;  %v697_v24 = vrot.slane %v3459_v55, 2 }
  0x4e   : > { %v699_v1 = vrot.slane %v3456_v14, 2  ;;  %v704_v4 = vrot.slane %v3488_v48, 2  ;;  %v700_v30 = vrot.slane %v3467_v13, 2  ;;  %v692_v61 = vrot.slane %v3476_v10, 2 }
  0x4f   : > { %2603 = vrot.lane.b32.xlu1 %v2602_v41, %s3120_s23  ;;  %v705_v45 = vrot.slane %v3503_v9, 2  ;;  %v707_v52 = vrot.slane %v3508_v44, 2  ;;  %v683_v41 = vsel %vm631_vm2, %v680_v42, %v682_v21  ;;  %v686_v11 = vsel %vm631_vm2, %v684_v47, %v685_v54 }
  0x50   : > { %v694_v55 = vrot.slane %v3473_v22, 2  ;;  %v2617_v10 = vpack.i.bf16 %v686_v11, %v683_v41  ;;  %v698_v44 = vsel %vm631_vm2, %v695_v19, %v697_v24  ;;  %v3655_v42 = vsel %vm631_vm2, %v699_v1, %v700_v30  ;;  %v4769_v24 = vld [vmem:[#allocation11_spill] sm:$0xff]  ;;  %v4770_v1 = vld [vmem:[#allocation18_spill] sm:$0xff] }
  0x51   : > { %2598 = vrot.lane.b32.xlu0 %v2597_v53, %s3120_s23  ;;  %v706_v14 = vsel %vm631_vm2, %v704_v4, %v705_v45  ;;  %v708_v48 = vsel %vm631_vm2, %v705_v45, %v707_v52  ;;  %v2622_v53 = vpack.i.bf16 %v691_v12, %v688_v60  ;;  %v693_v54 = vsel %vm631_vm2, %v690_v27, %v692_v61 }
  0x52   : > { %v3650_v13 = vpack.i.bf16 %v708_v48, %v706_v14  ;;  %v696_v21 = vsel %vm631_vm2, %v694_v55, %v695_v19  ;;  %v702_v47 = vrot.slane %v3491_v39, 2  ;;  %v3662_v52 = vpack.i.bf16 %v3211_v29, %v3271_v62  ;;  %v4772_v62 = vld [vmem:[#allocation16_spill] sm:$0xff]  ;;  %v4773_v55 = vld [vmem:[#allocation17_spill] sm:$0xff] }
  0x53   : > { %2613 = vrot.lane.b32.xlu1 %v2612_v3, %s3120_s23  ;;  %v4768_v3 = vld [vmem:[#allocation10_spill] sm:$0xff]  ;;  %v3672_v45 = vpack.i.bf16 %v4770_v1, %v4769_v24  ;;  %v2627_v61 = vpack.i.bf16 %v696_v21, %v693_v54  ;;  %v3677_v39 = vpack.i.bf16 %v3583_v40, %v3561_v51  ;;  %v3688_v19 = vpack.i.bf16 %v3572_v35, %v3587_v31  ;;  %v4775_v51 = vld [vmem:[#allocation23_spill] sm:$0xff]  ;;  %v4776_v40 = vld [vmem:[#allocation21_spill] sm:$0xff] }
  0x54   : > { %4767 = vst [vmem:[#allocation49_spill] sm:$0xff] %v3650_v13  ;;  %v3666_v4 = vpack.i.bf16 %v4768_v3, %v3219_v33  ;;  %v3680_v29 = vsel %vm631_vm2, %v700_v30, %v702_v47  ;;  %v4771_v33 = vld [vmem:[#allocation19_spill] sm:$0xff]  ;;  %v3700_v30 = vpack.i.bf16 %v4776_v40, %v4775_v51  ;;  %v3705_v35 = vpack.i.bf16 %v3598_v18, %v666_v49  ;;  %v4777_v31 = vld [vmem:[#allocation22_spill] sm:$0xff]  ;;  %v4782_v18 = vld [vmem:[#allocation4_spill] sm:$0xff] }
  0x55   : > { %2608 = vrot.lane.b32.xlu0 %v2607_v43, %s3120_s23  ;;  %v2632_v43 = vpack.i.bf16 %v3655_v42, %v698_v44  ;;  %v3684_v27 = vpack.i.bf16 %v4772_v62, %v4771_v33  ;;  %v2637_v47 = vpack.i.bf16 %v706_v14, %v3680_v29  ;;  %v4778_v24 = vld [vmem:[#allocation30_spill] sm:$0xff]  ;;  %v4781_v62 = vld [vmem:[#allocation9_spill] sm:$0xff]  ;;  %v3722_v14 = vpack.i.bf16 %v3615_v34, %v676_v0  ;;  %v4785_v51 = vld [vmem:[#allocation36_spill] sm:$0xff] }
  0x56   : > { %v3709_v1 = vpack.i.bf16 %v4778_v24, %v4777_v31  ;;  %v2642_v49 = vpack.i.bf16 %v4782_v18, %v3208_v28  ;;  %v3738_v31 = vpack.i.bf16 %v688_v60, %v686_v11  ;;  %v2657_v34 = vpack.i.bf16 %v3243_v46, %v3223_v36  ;;  %v4787_v0 = vld [vmem:[#allocation35_spill] sm:$0xff]  ;;  %v3107_v11 = vld [vmem:[%s4646_s1] sm:$0xff]  }
  0x57   : > { %2623 = vrot.lane.b32.xlu1 %v2622_v53, %s3120_s23  ;;  %v4774_v53 = vld [vmem:[#allocation25_spill] sm:$0xff]  ;;  %v2662_v60 = vpack.i.bf16 %v3274_v63, %v3263_v59  ;;  %2429 = vmatprep.subr.bf16.mxu0 %v3107_v11  ;;  %v4804_v46 = vld [vmem:[#allocation26_spill] sm:$0xff]  ;;  %v4805_v59 = vld [vmem:[#allocation27_spill] sm:$0xff] }
  0x58   : > { %v3692_v3 = vpack.i.bf16 %v4774_v53, %v4773_v55  ;;  %v4783_v55 = vld [vmem:[#allocation29_spill] sm:$0xff]  ;;  %v3732_v53 = vpack.i.bf16 %v683_v41, %v3618_v50  ;;  %v2652_v50 = vpack.i.bf16 %v3196_v20, %v3190_v17  ;;  %v3750_v41 = vpack.i.bf16 %v693_v54, %v691_v12  ;;  %v4792_v12 = vld [vmem:[#allocation6_spill] sm:$0xff]  ;;  %2430 = vmatpush3.bf16.msra.mxu0 %v3107_v11 }
  0x59   : > { %2618 = vrot.lane.b32.xlu0 %v2617_v10, %s3120_s23  ;;  %v3695_v10 = vpack.i.bf16 %v663_v8, %v3575_v57  ;;  %v3712_v57 = vpack.i.bf16 %v673_v7, %v3601_v25  ;;  %v4779_v8 = vld [vmem:[#allocation31_spill] sm:$0xff]  ;;  %v4784_v25 = vld [vmem:[#allocation38_spill] sm:$0xff]  ;;  %2467 = vmatprep.subr.bf16.mxu1 %v3107_v11  ;;  %v3908_v63 = vpack.i.bf16 %v4805_v59, %v4804_v46 }
  0x5a   : > { %v3729_v7 = vpack.i.bf16 %v4784_v25, %v4783_v55  ;;  %v2677_v25 = vpack.i.bf16 %v3527_v58, %v3540_v26  ;;  %2470 = vmatpush3.bf16.msra.mxu1 %v3107_v11  ;;  %v2682_v58 = vpack.i.bf16 %v3553_v23, %v3534_v2  ;;  %v3109_v26 = vld [vmem:[%s4646_s1 + $0x10] ss:$0 sps:$4 sm:$0x33]   ;;  %v3790_v2 = vpack.i.bf16 %v3680_v29, %v3655_v42 }
  0x5b   : > { %2633 = vrot.lane.b32.xlu1 %v2632_v43, %s3120_s23  ;;  %v4780_v43 = vld [vmem:[#allocation28_spill] sm:$0xff] }
  0x5c   : > { %v3716_v33 = vpack.i.bf16 %v4780_v43, %v4779_v8  ;;  %v4789_v8 = vld [vmem:[#allocation45_spill] sm:$0xff]  ;;  %4794 = vst [vmem:[#allocation10_spill] sm:$0xff] %v3790_v2  ;;  %v4795_v23 = vld [vmem:[#allocation48_spill] sm:$0xff] }
  0x5d   : > { %2628 = vrot.lane.b32.xlu0 %v2627_v61, %s3120_s23  ;;  %v2647_v61 = vpack.i.bf16 %v3187_v16, %v4781_v62  ;;  %v4790_v43 = vld [vmem:[#allocation41_spill] sm:$0xff]  ;;  %v4800_v11 = vld [vmem:[#allocation20_spill] sm:$0xff] }
  0x5e   : > { %v3761_v55 = vpack.i.bf16 %v4790_v43, %v4789_v8  ;;  %v2827_v8 = vpack.i.bf16 %v4800_v11, %v3317_v38 }
  0x5f   : > { %769 = vrot.lane.b32.xlu1 %v708_v48, %s3120_s23  ;;  %v4786_v48 = vld [vmem:[#allocation34_spill] sm:$0xff] }
  0x60   : > { %v3736_v40 = vpack.i.bf16 %v4786_v48, %v4785_v51  ;;  %v3108_v51 = vld [vmem:[%s4646_s1 + $0x8] sm:$0xff]   ;;  %v3773_v48 = vpack.i.bf16 %v698_v44, %v696_v21  ;;  %v1730_v44 = vsel %vm1728_vm3, %v3109_v26, 0  ;;  %v2712_v21 = vpack.i.bf16 %v4795_v23, %v3564_v15 }
  0x61   : > { %2638 = vrot.lane.b32.xlu0 %v2637_v47, %s3120_s23  ;;  %v4788_v47 = vld [vmem:[#allocation44_spill] sm:$0xff]  ;;  %2431 = vmatprep.subr.bf16.mxu0 %v3108_v51 }
  0x62   : > { %v3745_v24 = vpack.i.bf16 %v4788_v47, %v4787_v0  ;;  %2432 = vmatpush3.bf16.msra.mxu0 %v3108_v51  ;;  %2468 = vmatprep.subr.bf16.mxu1 %v3108_v51  ;;  %v2797_v0 = vpack.i.bf16 %v3314_v37, %v3336_v56 }
  0x63   : > { %2648 = vrot.lane.b32.xlu1 %v2647_v61, %s3121_s24  ;;  %2471 = vmatpush3.bf16.msra.mxu1 %v3108_v51 }
  0x64   : > { %2473 = vmatprep.subr.msk.bf16.mxu0 %vm1728_vm3, %v3109_v26  ;;  %2474 = vmatprep.subr.msk.bf16.mxu1 %vm1728_vm3, %v3109_v26 }
  0x65   : > { %2643 = vrot.lane.b32.xlu0 %v2642_v49, %s3121_s24  ;;  %v4791_v49 = vld [vmem:[#allocation7_spill] sm:$0xff] }
  0x66   : > { %v4793_v54 = vpack.i.bf16 %v4791_v49, %v4792_v12  ;;  %2434 = vmatpush3.bf16.msra.mxu0 %v1730_v44 }
  0x67   : > { %2658 = vrot.lane.b32.xlu1 %v2657_v34, %s3121_s24  ;;  %2472 = vmatpush3.bf16.msra.mxu1 %v1730_v44 }
  0x69   : > { %2653 = vrot.lane.b32.xlu0 %v2652_v50, %s3121_s24 }
  0x6b   : > { %2668 = vrot.lane.b32.xlu1 %v4793_v54, %s3122_s27 }
  0x6d   : > { %2663 = vrot.lane.b32.xlu0 %v2662_v60, %s3121_s24 }
  0x6f   : > { %2678 = vrot.lane.b32.xlu1 %v2677_v25, %s3123_s30 }
  0x71   : > { %2673 = vrot.lane.b32.xlu0 %v3662_v52, %s3122_s27 }
  0x73   : > { %2688 = vrot.lane.b32.xlu1 %v2647_v61, %s3124_s8 }
  0x75   : > { %2683 = vrot.lane.b32.xlu0 %v2682_v58, %s3123_s30 }
  0x77   : > { %2698 = vrot.lane.b32.xlu1 %v3662_v52, %s3125_s9  ;;  %v4796_v52 = vld [vmem:[#allocation14_spill] sm:$0xff] }
  0x79   : > { %2693 = vrot.lane.b32.xlu0 %v2652_v50, %s3124_s8 }
  0x7b   : > { %2708 = vrot.lane.b32.xlu1 %v2682_v58, %s3126_s10 }
  0x7d   : > { %2703 = vrot.lane.b32.xlu0 %v3666_v4, %s3125_s9 }
  0x7f   : > { %2718 = vrot.lane.b32.xlu1 %v3666_v4, %s3122_s27  ;;  %v4797_v4 = vld [vmem:[#allocation15_spill] sm:$0xff] }
  0x80   : > { %v2767_v29 = vpack.i.bf16 %v4797_v4, %v4796_v52 }
  0x81   : > { %2713 = vrot.lane.b32.xlu0 %v2712_v21, %s3126_s10 }
  0x83   : > { %2728 = vrot.lane.b32.xlu1 %v2712_v21, %s3123_s30 }
  0x85   : > { %2723 = vrot.lane.b32.xlu0 %v3672_v45, %s3122_s27 }
  0x87   : > { %2738 = vrot.lane.b32.xlu1 %v2657_v34, %s3124_s8 }
  0x89   : > { %2733 = vrot.lane.b32.xlu0 %v3677_v39, %s3123_s30 }
  0x8b   : > { %2748 = vrot.lane.b32.xlu1 %v3672_v45, %s3125_s9 }
  0x8d   : > { %2743 = vrot.lane.b32.xlu0 %v2662_v60, %s3124_s8 }
  0x8e   : > { %v3809_v15 = vpop.permute.xlu1 %2503 }
  0x8f   : > { %v3811_v42 = vpop.permute.xlu0 %2493  ;;  %2758 = vrot.lane.b32.xlu1 %v3677_v39, %s3126_s10 }
  0x91   : > { %2753 = vrot.lane.b32.xlu0 %v3684_v27, %s3125_s9 }
  0x93   : > { %v3819_v61 = vpop.permute.xlu1 %2508  ;;  %2768 = vrot.lane.b32.xlu1 %v2767_v29, %s3121_s24  ;;  %v3822_v45 = vpop.permute.xlu0 %2498 }
  0x95   : > { %2763 = vrot.lane.b32.xlu0 %v3688_v19, %s3126_s10 }
  0x97   : > { %2778 = vrot.lane.b32.xlu1 %v3692_v3, %s3122_s27 }
  0x98   : > { %v3828_v34 = vpop.permute.xlu1 %2518  ;;  %v3832_v39 = vpop.permute.xlu0 %2513 }
  0x99   : > { %4798 = vst [vmem:[#allocation11_spill] sm:$0xff] %v3828_v34  ;;  %2773 = vrot.lane.b32.xlu0 %v3684_v27, %s3122_s27  ;;  %4799 = vst [vmem:[#allocation18_spill] sm:$0xff] %v3832_v39  ;;  %v2521_v44 = vunpack.i.h.bf16 %v3828_v34 }
  0x9b   : > { %2788 = vrot.lane.b32.xlu1 %v3695_v10, %s3123_s30 }
  0x9d   : > { %2783 = vrot.lane.b32.xlu0 %v3688_v19, %s3123_s30  ;;  %v2529_v47 = vpop.permute.xlu1 %2528 }
  0x9e   : > { %v3840_v50 = vpop.permute.xlu0 %2523  ;;  %v2530_v23 = vunpack.i.l.bf16 %v2529_v47 }
  0x9f   : > { %2798 = vrot.lane.b32.xlu1 %v2797_v0, %s3124_s8 }
  0xa1   : > { %2793 = vrot.lane.b32.xlu0 %v2767_v29, %s3124_s8 }
  0xa2   : > { %v3844_v60 = vpop.permute.xlu1 %2538 }
  0xa3   : > { %2808 = vrot.lane.b32.xlu1 %v3700_v30, %s3125_s9  ;;  %v2541_v34 = vunpack.i.h.bf16 %v3844_v60 }
  0xa4   : > { %v3848_v27 = vpop.permute.xlu0 %2533 }
  0xa5   : > { %2803 = vrot.lane.b32.xlu0 %v3692_v3, %s3125_s9  ;;  %v2535_v13 = vunpack.i.l.bf16 %v3848_v27 }
  0xa7   : > { %2818 = vrot.lane.b32.xlu1 %v3705_v35, %s3126_s10 }
  0xa8   : > { %v3854_v19 = vpop.permute.xlu1 %2548 }
  0xa9   : > { %2813 = vrot.lane.b32.xlu0 %v3695_v10, %s3126_s10  ;;  %v3860_v43 = vpop.permute.xlu0 %2543  ;;  %v4801_v10 = vld [vmem:[#allocation24_spill] sm:$0xff] }
  0xaa   : > { %v2857_v25 = vpack.i.bf16 %v4801_v10, %v3383_v6 }
  0xab   : > { %2828 = vrot.lane.b32.xlu1 %v2827_v8, %s3121_s24 }
  0xad   : > { %2823 = vrot.lane.b32.xlu0 %v2797_v0, %s3121_s24  ;;  %v3864_v49 = vpop.permute.xlu1 %2558 }
  0xaf   : > { %v3866_v3 = vpop.permute.xlu0 %2553  ;;  %2838 = vrot.lane.b32.xlu1 %v3709_v1, %s3122_s27 }
  0xb1   : > { %2833 = vrot.lane.b32.xlu0 %v3700_v30, %s3122_s27  ;;  %v3872_v12 = vpop.permute.xlu1 %598 }
  0xb3   : > { %v3874_v54 = vpop.permute.xlu0 %2563  ;;  %2848 = vrot.lane.b32.xlu1 %v3712_v57, %s3123_s30 }
  0xb5   : > { %2843 = vrot.lane.b32.xlu0 %v3705_v35, %s3123_s30  ;;  %v3882_v51 = vpop.permute.xlu1 %2573  ;;  %v2531_v35 = vunpack.i.h.bf16 %v2529_v47  ;;  %v2525_v47 = vunpack.i.l.bf16 %v3840_v50 }
  0xb7   : > { %v3884_v58 = vpop.permute.xlu0 %2568  ;;  %2858 = vrot.lane.b32.xlu1 %v2857_v25, %s3124_s8 }
  0xb9   : > { %2853 = vrot.lane.b32.xlu0 %v2827_v8, %s3124_s8  ;;  %v3888_v30 = vpop.permute.xlu1 %2583  ;;  %v1393_v8 = vsel %vm1381_vm4, %v4796_v52, %v2521_v44  ;;  %v1397_v52 = vsel %vm1381_vm4, %v3317_v38, %v2531_v35  ;;  %v1396_v44 = vsel %vm1381_vm4, %v3314_v37, %v2530_v23  ;;  %v1394_v23 = vsel %vm1381_vm4, %v4797_v4, %v2525_v47 }
  0xba   : > { %v1401_v4 = vsel %vm1381_vm4, %v4804_v46, %v2541_v34  ;;  %v2545_v46 = vunpack.i.l.bf16 %v3860_v43 }
  0xbb   : > { %v3890_v26 = vpop.permute.xlu0 %2578  ;;  %2868 = vrot.lane.b32.xlu1 %v3716_v33, %s3125_s9 }
  0xbd   : > { %2863 = vrot.lane.b32.xlu0 %v3709_v1, %s3125_s9  ;;  %v3897_v21 = vpop.permute.xlu1 %2593  ;;  %v2526_v1 = vunpack.i.h.bf16 %v3840_v50  ;;  %v2540_v50 = vunpack.i.l.bf16 %v3844_v60 }
  0xbe   : > { %4802 = vst [vmem:[#allocation19_spill] sm:$0xff] %v3897_v21  ;;  %v2596_v29 = vunpack.i.h.bf16 %v3897_v21  ;;  %v4807_v21 = vld [vmem:[#allocation32_spill] sm:$0xff] }
  0xbf   : > { %v3900_v0 = vpop.permute.xlu0 %2588  ;;  %2878 = vrot.lane.b32.xlu1 %v3722_v14, %s3126_s10  ;;  %v3923_v39 = vpack.i.bf16 %v4807_v21, %v3398_v32  ;;  %v1395_v37 = vsel %vm1381_vm4, %v3336_v56, %v2526_v1  ;;  %v1400_v47 = vsel %vm1381_vm4, %v4801_v10, %v2540_v50 }
  0xc0   : > { %4803 = vst [vmem:[#allocation16_spill] sm:$0xff] %v3900_v0  ;;  %v3913_v36 = vsel %vm1413_vm5, %v1393_v8, %v2596_v29 }
  0xc1   : > { %4806 = vst [vmem:[#allocation17_spill] sm:$0xff] %v3913_v36  ;;  %2873 = vrot.lane.b32.xlu0 %v3712_v57, %s3126_s10  ;;  %v2604_v0 = vpop.permute.xlu1 %2603  ;;  %v2536_v57 = vunpack.i.h.bf16 %v3848_v27  ;;  %v2551_v27 = vunpack.i.h.bf16 %v3854_v19 }
  0xc2   : > { %v2606_v29 = vunpack.i.h.bf16 %v2604_v0  ;;  %v2605_v8 = vunpack.i.l.bf16 %v2604_v0 }
  0xc3   : > { %v2599_v36 = vpop.permute.xlu0 %2598  ;;  %2888 = vrot.lane.b32.xlu1 %v3908_v63, %s3121_s24 }
  0xc4   : > { %v2601_v38 = vunpack.i.h.bf16 %v2599_v36  ;;  %v2600_v35 = vunpack.i.l.bf16 %v2599_v36  ;;  %v3936_v60 = vsel %vm1413_vm5, %v1397_v52, %v2606_v29  ;;  %v3939_v0 = vsel %vm1413_vm5, %v1396_v44, %v2605_v8 }
  0xc5   : > { %2883 = vrot.lane.b32.xlu0 %v2857_v25, %s3121_s24  ;;  %v2550_v36 = vunpack.i.l.bf16 %v3854_v19  ;;  %v2614_v1 = vpop.permute.xlu1 %2613  ;;  %v1399_v29 = vsel %vm1381_vm4, %v3383_v6, %v2536_v57  ;;  %v1398_v19 = vsel %vm1381_vm4, %v4800_v11, %v2535_v13  ;;  %v1405_v6 = vsel %vm1381_vm4, %v3419_v5, %v2551_v27 }
  0xc6   : > { %v3945_v2 = vsel %vm1413_vm5, %v1394_v23, %v2600_v35  ;;  %v3948_v56 = vsel %vm1413_vm5, %v1395_v37, %v2601_v38  ;;  %v2616_v52 = vunpack.i.h.bf16 %v2614_v1  ;;  %v2615_v44 = vunpack.i.l.bf16 %v2614_v1 }
  0xc7   : > { %v2609_v25 = vpop.permute.xlu0 %2608  ;;  %2898 = vrot.lane.b32.xlu1 %v3729_v7, %s3122_s27  ;;  %v2546_v38 = vunpack.i.h.bf16 %v3860_v43  ;;  %v1404_v13 = vsel %vm1381_vm4, %v4807_v21, %v2550_v36  ;;  %v2561_v57 = vunpack.i.h.bf16 %v3864_v49  ;;  %v2560_v37 = vunpack.i.l.bf16 %v3864_v49 }
  0xc8   : > { %v2611_v8 = vunpack.i.h.bf16 %v2609_v25  ;;  %v2610_v35 = vunpack.i.l.bf16 %v2609_v25  ;;  %v3963_v34 = vsel %vm1413_vm5, %v1401_v4, %v2616_v52  ;;  %v3966_v10 = vsel %vm1413_vm5, %v1400_v47, %v2615_v44 }
  0xc9   : > { %2893 = vrot.lane.b32.xlu0 %v3716_v33, %s3122_s27  ;;  %v2624_v50 = vpop.permute.xlu1 %2623  ;;  %v2556_v4 = vunpack.i.h.bf16 %v3866_v3  ;;  %v2555_v27 = vunpack.i.l.bf16 %v3866_v3  ;;  %v1403_v36 = vsel %vm1381_vm4, %v3398_v32, %v2546_v38  ;;  %v1402_v52 = vsel %vm1381_vm4, %v4805_v59, %v2545_v46  ;;  %v4809_v32 = vld [vmem:[#allocation39_spill] sm:$0xff]  ;;  %v4810_v59 = vld [vmem:[#allocation37_spill] sm:$0xff] }
  0xca   : > { %v3975_v11 = vsel %vm1413_vm5, %v1398_v19, %v2610_v35  ;;  %v3978_v43 = vsel %vm1413_vm5, %v1399_v29, %v2611_v8  ;;  %v2626_v23 = vunpack.i.h.bf16 %v2624_v50  ;;  %v2625_v1 = vunpack.i.l.bf16 %v2624_v50 }
  0xcb   : > { %v2619_v33 = vpop.permute.xlu0 %2618  ;;  %2908 = vrot.lane.b32.xlu1 %v3732_v53, %s3123_s30  ;;  %v1409_v19 = vsel %vm1381_vm4, %v4809_v32, %v2561_v57  ;;  %v1408_v8 = vsel %vm1381_vm4, %v4810_v59, %v2560_v37  ;;  %v2565_v57 = vunpack.i.l.bf16 %v3874_v54 }
  0xcc   : > { %v2621_v47 = vunpack.i.h.bf16 %v2619_v33  ;;  %v2620_v21 = vunpack.i.l.bf16 %v2619_v33  ;;  %v3991_v49 = vsel %vm1413_vm5, %v1405_v6, %v2626_v23  ;;  %v3994_v44 = vsel %vm1413_vm5, %v1404_v13, %v2625_v1 }
  0xcd   : > { %4808 = vst [vmem:[#allocation25_spill] sm:$0xff] %v3991_v49  ;;  %2903 = vrot.lane.b32.xlu0 %v3722_v14, %s3123_s30  ;;  %v2634_v29 = vpop.permute.xlu1 %2633  ;;  %v1407_v6 = vsel %vm1381_vm4, %v3473_v22, %v2556_v4  ;;  %v4811_v14 = vld [vmem:[#allocation33_spill] sm:$0xff]  ;;  %v2566_v1 = vunpack.i.h.bf16 %v3874_v54  ;;  %v1412_v4 = vsel %vm1381_vm4, %v3503_v9, %v3872_v12  ;;  %v4817_v12 = vld [vmem:[#allocation40_spill] sm:$0xff] }
  0xce   : > { %v3999_v3 = vsel %vm1413_vm5, %v1402_v52, %v2620_v21  ;;  %v4002_v25 = vsel %vm1413_vm5, %v1403_v36, %v2621_v47  ;;  %v2636_v35 = vunpack.i.h.bf16 %v2634_v29  ;;  %v2635_v38 = vunpack.i.l.bf16 %v2634_v29 }
  0xcf   : > { %v2629_v46 = vpop.permute.xlu0 %2628  ;;  %v1406_v13 = vsel %vm1381_vm4, %v4811_v14, %v2555_v27  ;;  %2918 = vrot.lane.b32.xlu1 %v3923_v39, %s3124_s8 }
  0xd0   : > { %v2631_v50 = vunpack.i.h.bf16 %v2629_v46  ;;  %v2630_v23 = vunpack.i.l.bf16 %v2629_v46  ;;  %v4017_v37 = vsel %vm1413_vm5, %v1409_v19, %v2636_v35  ;;  %v4020_v33 = vsel %vm1413_vm5, %v1408_v8, %v2635_v38 }
  0xd1   : > { %4812 = vst [vmem:[#allocation23_spill] sm:$0xff] %v4017_v37  ;;  %2913 = vrot.lane.b32.xlu0 %v3908_v63, %s3124_s8  ;;  %v770_v54 = vpop.permute.xlu1 %769  ;;  %v4816_v63 = vld [vmem:[#allocation43_spill] sm:$0xff]  ;;  %v1410_v8 = vsel %vm1381_vm4, %v4817_v12, %v2565_v57  ;;  %v4077_v57 = vpack.i.bf16 %v4810_v59, %v3473_v22  ;;  %v4093_v22 = vpack.i.bf16 %v4817_v12, %v4809_v32 }
  0xd2   : > { %v4028_v27 = vsel %vm1413_vm5, %v1406_v13, %v2630_v23  ;;  %v4031_v47 = vsel %vm1413_vm5, %v1407_v6, %v2631_v50  ;;  %v4034_v21 = vsel %vm1413_vm5, %v1412_v4, %v770_v54  ;;  %v1411_v19 = vsel %vm1381_vm4, %v4816_v63, %v2566_v1  ;;  %v4080_v4 = vld [vmem:[%s3171_s21 + $0xf0] sm:$0xff] }
  0xd3   : > { %4813 = vst [vmem:[#allocation21_spill] sm:$0xff] %v4028_v27  ;;  %4814 = vst [vmem:[#allocation22_spill] sm:$0xff] %v4031_v47  ;;  %v2639_v36 = vpop.permute.xlu0 %2638  ;;  %2928 = vrot.lane.b32.xlu1 %v3736_v40, %s3125_s9  ;;  %v2947_v13 = vpack.i.bf16 %v4811_v14, %v3419_v5  ;;  %v2496_v14 = vunpack.i.h.bf16 %v3811_v42  ;;  %v2495_v54 = vunpack.i.l.bf16 %v3811_v42 }
  0xd4   : > { %4815 = vst [vmem:[#allocation30_spill] sm:$0xff] %v4034_v21  ;;  %v2641_v52 = vunpack.i.h.bf16 %v2639_v36  ;;  %v2640_v29 = vunpack.i.l.bf16 %v2639_v36  ;;  %v2575_v36 = vunpack.i.l.bf16 %v3882_v51 }
  0xd5   : > { %2923 = vrot.lane.b32.xlu0 %v3729_v7, %s3125_s9  ;;  %v2649_v46 = vpop.permute.xlu1 %2648  ;;  %v1382_v32 = vsel %vm1381_vm4, 0.0, %v2495_v54 }
  0xd6   : > { %v4045_v35 = vsel %vm1413_vm5, %v1410_v8, %v2640_v29  ;;  %v4048_v38 = vsel %vm1413_vm5, %v1411_v19, %v2641_v52  ;;  %v2571_v52 = vunpack.i.h.bf16 %v3884_v58  ;;  %v2570_v29 = vunpack.i.l.bf16 %v3884_v58 }
  0xd7   : > { %4818 = vst [vmem:[#allocation31_spill] sm:$0xff] %v4045_v35  ;;  %4819 = vst [vmem:[#allocation28_spill] sm:$0xff] %v4048_v38  ;;  %v2644_v6 = vpop.permute.xlu0 %2643  ;;  %2938 = vrot.lane.b32.xlu1 %v3738_v31, %s3126_s10  ;;  %v2651_v59 = vunpack.i.h.bf16 %v2649_v46  ;;  %v2650_v8 = vunpack.i.l.bf16 %v2649_v46 }
  0xd8   : > { %v2646_v58 = vunpack.i.h.bf16 %v2644_v6  ;;  %v2645_v21 = vunpack.i.l.bf16 %v2644_v6  ;;  %v1414_v42 = vsel %vm1413_vm5, %v1382_v32, %v2570_v29 }
  0xd9   : > { %2933 = vrot.lane.b32.xlu0 %v3732_v53, %s3126_s10  ;;  %v4056_v50 = vpop.permute.xlu1 %2658 }
  0xdb   : > { %v4058_v7 = vpop.permute.xlu0 %2653  ;;  %2948 = vrot.lane.b32.xlu1 %v2947_v13, %s3121_s24 }
  0xdd   : > { %2943 = vrot.lane.b32.xlu0 %v3923_v39, %s3121_s24  ;;  %v2669_v23 = vpop.permute.xlu1 %2668  ;;  %v2500_v39 = vunpack.i.l.bf16 %v3822_v45 }
  0xde   : > { %v2671_v46 = vunpack.i.h.bf16 %v2669_v23  ;;  %v2670_v27 = vunpack.i.l.bf16 %v2669_v23  ;;  %v1447_v23 = vsel %vm1445_vm6, %v1414_v42, %v2646_v58 }
  0xdf   : > { %v4063_v1 = vpop.permute.xlu0 %2663  ;;  %2958 = vrot.lane.b32.xlu1 %v3745_v24, %s3122_s27  ;;  %v1384_v38 = vsel %vm1381_vm4, %v4782_v18, %v2500_v39 }
  0xe0   : > { %v1416_v12 = vsel %vm1413_vm5, %v1384_v38, %v2575_v36  ;;  %v1446_v38 = vsel %vm1445_vm6, %v1414_v42, %v2645_v21 }
  0xe1   : > { %2953 = vrot.lane.b32.xlu0 %v3736_v40, %s3122_s27  ;;  %v2679_v5 = vpop.permute.xlu1 %2678  ;;  %v4083_v40 = vld [vmem:[%s3171_s21 + $0xf8] sm:$0xff]  ;;  %v1449_v37 = vsel %vm1445_vm6, %v1416_v12, %v2651_v59 }
  0xe2   : > { %v2680_v18 = vunpack.i.l.bf16 %v2679_v5 }
  0xe3   : > { %v4069_v53 = vpop.permute.xlu0 %2673  ;;  %2968 = vrot.lane.b32.xlu1 %v3750_v41, %s3123_s30 }
  0xe4   : > { %v2676_v29 = vunpack.i.h.bf16 %v4069_v53  ;;  %v2675_v59 = vunpack.i.l.bf16 %v4069_v53 }
  0xe5   : > { %2963 = vrot.lane.b32.xlu0 %v3738_v31, %s3123_s30  ;;  %v2689_v19 = vpop.permute.xlu1 %2688  ;;  %v1383_v31 = vsel %vm1381_vm4, %v3208_v28, %v2496_v14  ;;  %v2681_v14 = vunpack.i.h.bf16 %v2679_v5  ;;  %v1480_v5 = vsel %vm1478_vm7, %v1447_v23, %v2671_v46 }
  0xe6   : > { %v1415_v28 = vsel %vm1413_vm5, %v1383_v31, %v2571_v52  ;;  %v2691_v49 = vunpack.i.h.bf16 %v2689_v19  ;;  %v2690_v54 = vunpack.i.l.bf16 %v2689_v19  ;;  %v1479_v52 = vsel %vm1478_vm7, %v1446_v38, %v2670_v27 }
  0xe7   : > { %v2684_v35 = vpop.permute.xlu0 %2683  ;;  %2978 = vrot.lane.b32.xlu1 %v4077_v57, %s3124_s8  ;;  %v1448_v6 = vsel %vm1445_vm6, %v1415_v28, %v2650_v8  ;;  %v1512_v21 = vsel %vm1511_vm8, %v1479_v52, %v2680_v18  ;;  %v1513_v19 = vsel %vm1511_vm8, %v1480_v5, %v2681_v14  ;;  %v4820_v5 = vld [vmem:[#allocation42_spill] sm:$0xff] }
  0xe8   : > { %v2686_v8 = vunpack.i.h.bf16 %v2684_v35  ;;  %v2685_v42 = vunpack.i.l.bf16 %v2684_v35  ;;  %v1545_v58 = vsel %vm1544_vm9, %v1512_v21, %v2690_v54  ;;  %v1546_v27 = vsel %vm1544_vm9, %v1513_v19, %v2691_v49  ;;  %v4821_v21 = vld [vmem:[#allocation46_spill] sm:$0xff] }
  0xe9   : > { %2973 = vrot.lane.b32.xlu0 %v2947_v13, %s3124_s8  ;;  %v2699_v39 = vpop.permute.xlu1 %2698  ;;  %v1481_v54 = vsel %vm1478_vm7, %v1448_v6, %v2675_v59  ;;  %v4140_v19 = vpack.i.bf16 %v4821_v21, %v4820_v5  ;;  %v4822_v59 = vrot.slane %v4083_v40, 7 }
  0xea   : > { %v2701_v13 = vunpack.i.h.bf16 %v2699_v39  ;;  %v2700_v36 = vunpack.i.l.bf16 %v2699_v39 }
  0xeb   : > { %v2694_v47 = vpop.permute.xlu0 %2693  ;;  %2988 = vrot.lane.b32.xlu1 %v3761_v55, %s3125_s9 }
  0xec   : > { %v2696_v28 = vunpack.i.h.bf16 %v2694_v47  ;;  %v2695_v39 = vunpack.i.l.bf16 %v2694_v47  ;;  %v1579_v53 = vsel %vm1577_vm10, %v1546_v27, %v2701_v13  ;;  %v1482_v47 = vsel %vm1478_vm7, %v1449_v37, %v2676_v29 }
  0xed   : > { %2983 = vrot.lane.b32.xlu0 %v3745_v24, %s3125_s9  ;;  %v2709_v31 = vpop.permute.xlu1 %2708  ;;  %v1578_v24 = vsel %vm1577_vm10, %v1545_v58, %v2700_v36  ;;  %v1514_v36 = vsel %vm1511_vm8, %v1481_v54, %v2685_v42  ;;  %v1515_v13 = vsel %vm1511_vm8, %v1482_v47, %v2686_v8  ;;  %v4823_v8 = vrot.slane %v4080_v4, 7 }
  0xee   : > { %v2711_v32 = vunpack.i.h.bf16 %v2709_v31  ;;  %v2710_v12 = vunpack.i.l.bf16 %v2709_v31  ;;  %v1548_v31 = vsel %vm1544_vm9, %v1515_v13, %v2696_v28  ;;  %v4825_v4 = vmov %v4822_v59 }
  0xef   : > { %v2704_v46 = vpop.permute.xlu0 %2703  ;;  %2998 = vrot.lane.b32.xlu1 %v3773_v48, %s3126_s10  ;;  %v4156_v42 = vsel %vm301_vm0, %v4823_v8, %v4822_v59  ;;  %v4824_v27 = vmov %v4823_v8  ;;  %v2580_v54 = vunpack.i.l.bf16 %v3890_v26 }
  0xf0   : > { %v2706_v14 = vunpack.i.h.bf16 %v2704_v46  ;;  %v2705_v18 = vunpack.i.l.bf16 %v2704_v46  ;;  %v1611_v35 = vsel %vm1610_vm11, %v1578_v24, %v2710_v12  ;;  %v1612_v49 = vsel %vm1610_vm11, %v1579_v53, %v2711_v32 }
  0xf1   : > { %2993 = vrot.lane.b32.xlu0 %v3750_v41, %s3126_s10  ;;  %v4134_v38 = vpop.permute.xlu1 %2718  ;;  %v1643_v23 = vpack.c.bf16 %v1612_v49, %v1611_v35  ;;  %v1547_v41 = vsel %vm1544_vm9, %v1514_v36, %v2695_v39  ;;  %v4161_v32 = vsel %vm301_vm0, 0.0, %v4824_v27  ;;  %v2506_v39 = vunpack.i.h.bf16 %v3809_v15 }
  0xf2   : > { %v1580_v37 = vsel %vm1577_vm10, %v1547_v41, %v2705_v18  ;;  %v1581_v29 = vsel %vm1577_vm10, %v1548_v31, %v2706_v14  ;;  %v2505_v24 = vunpack.i.l.bf16 %v3809_v15  ;;  %v4176_v18 = vsel %vm301_vm0, %v4825_v4, 0.0 }
  0xf3   : > { %v2714_v52 = vpop.permute.xlu0 %2713  ;;  %3008 = vrot.lane.b32.xlu1 %v4093_v22, %s3121_s24  ;;  %2435 = vmatprep.mubr.msk.bf16.mxu0 %vm1679_vm12, %v1643_v23  ;;  %v2510_v35 = vunpack.i.l.bf16 %v3819_v61  ;;  %v2501_v49 = vunpack.i.h.bf16 %v3822_v45  ;;  %v2576_v15 = vunpack.i.h.bf16 %v3882_v51  ;;  %v900_v40 = vrot.slane %v4161_v32, 1 }
  0xf4   : > { %v2716_v58 = vunpack.i.h.bf16 %v2714_v52  ;;  %v2715_v6 = vunpack.i.l.bf16 %v2714_v52  ;;  %v2581_v45 = vunpack.i.h.bf16 %v3890_v26  ;;  %v901_v23 = vrot.slane %v4156_v42, 1 }
  0xf5   : > { %3003 = vrot.lane.b32.xlu0 %v4077_v57, %s3121_s24  ;;  %v2729_v28 = vpop.permute.xlu1 %2728  ;;  %v4167_v57 = vpack.i.bf16 %v3503_v9, %v4816_v63  ;;  %v4184_v9 = vpack.i.bf16 %v4156_v42, %v4161_v32  ;;  %v2585_v63 = vunpack.i.l.bf16 %v3888_v30  ;;  %v903_v36 = vrot.slane %v4176_v18, 1 }
  0xf6   : > { %v1613_v12 = vsel %vm1610_vm11, %v1580_v37, %v2715_v6  ;;  %v1614_v46 = vsel %vm1610_vm11, %v1581_v29, %v2716_v58  ;;  %v1387_v51 = vsel %vm1381_vm4, %v3190_v17, %v2506_v39  ;;  %v1386_v13 = vsel %vm1381_vm4, %v3187_v16, %v2505_v24  ;;  %v4826_v17 = vld [vmem:[#allocation10_spill] sm:$0xff] }
  0xf7   : > { %v1644_v53 = vpack.c.bf16 %v1614_v46, %v1613_v12  ;;  %v4171_v14 = vpop.permute.xlu0 %2723  ;;  %3018 = vrot.lane.b32.xlu1 %v4140_v19, %s3122_s27  ;;  %v2660_v52 = vunpack.i.l.bf16 %v4056_v50  ;;  %v1388_v21 = vsel %vm1381_vm4, %v3196_v20, %v2510_v35  ;;  %v1385_v26 = vsel %vm1381_vm4, %v4781_v62, %v2501_v49 }
  0xf8   : > { %v2656_v41 = vunpack.i.h.bf16 %v4058_v7  ;;  %v2655_v31 = vunpack.i.l.bf16 %v4058_v7  ;;  %v1417_v16 = vsel %vm1413_vm5, %v1385_v26, %v2576_v15  ;;  %v1420_v58 = vsel %vm1413_vm5, %v1388_v21, %v2585_v63 }
  0xf9   : > { %3013 = vrot.lane.b32.xlu0 %v3761_v55, %s3122_s27  ;;  %2436 = vmatmul.mubr.msk.bf16.vlgmr.msra.gmra.mrb[0].mxu0 %vm1679_vm12, %v1644_v53  ;;  %v2739_v47 = vpop.permute.xlu1 %2738  ;;  %v2661_v55 = vunpack.i.h.bf16 %v4056_v50  ;;  %v2721_v50 = vunpack.i.h.bf16 %v4134_v38  ;;  %v2720_v6 = vunpack.i.l.bf16 %v4134_v38  ;;  %v1419_v20 = vsel %vm1413_vm5, %v1387_v51, %v2581_v45 }
  0xfa   : > { %v1418_v62 = vsel %vm1413_vm5, %v1386_v13, %v2580_v54  ;;  %v2731_v37 = vunpack.i.h.bf16 %v2729_v28  ;;  %v2730_v7 = vunpack.i.l.bf16 %v2729_v28  ;;  %v1452_v59 = vsel %vm1445_vm6, %v1419_v20, %v2660_v52 }
  0xfb   : > { %v2734_v5 = vpop.permute.xlu0 %2733  ;;  %3028 = vrot.lane.b32.xlu1 %v4826_v17, %s3123_s30  ;;  %v1453_v8 = vsel %vm1445_vm6, %v1420_v58, %v2661_v55  ;;  %v2741_v27 = vunpack.i.h.bf16 %v2739_v47  ;;  %v2740_v12 = vunpack.i.l.bf16 %v2739_v47  ;;  %v1450_v39 = vsel %vm1445_vm6, %v1417_v16, %v2655_v31 }
  0xfc   : > { %v1451_v38 = vsel %vm1445_vm6, %v1418_v62, %v2656_v41  ;;  %v1483_v53 = vsel %vm1478_vm7, %v1450_v39, %v2720_v6  ;;  %v2726_v4 = vunpack.i.h.bf16 %v4171_v14  ;;  %v2725_v35 = vunpack.i.l.bf16 %v4171_v14  ;;  %v4827_v41 = vld [vmem:[#allocation47_spill] sm:$0xff] }
  0xfd   : > { %3023 = vrot.lane.b32.xlu0 %v3773_v48, %s3123_s30  ;;  %v2749_v29 = vpop.permute.xlu1 %2748  ;;  %v1484_v28 = vsel %vm1478_vm7, %v1451_v38, %v2721_v50  ;;  %v1516_v49 = vsel %vm1511_vm8, %v1483_v53, %v2730_v7  ;;  %v2736_v63 = vunpack.i.h.bf16 %v2734_v5  ;;  %v2735_v45 = vunpack.i.l.bf16 %v2734_v5  ;;  %v4828_v38 = vld [vmem:[#allocation49_spill] sm:$0xff] }
  0xfe   : > { %v2751_v24 = vunpack.i.h.bf16 %v2749_v29  ;;  %v2750_v48 = vunpack.i.l.bf16 %v2749_v29  ;;  %v1517_v15 = vsel %vm1511_vm8, %v1484_v28, %v2731_v37  ;;  %v1549_v47 = vsel %vm1544_vm9, %v1516_v49, %v2740_v12 }
  0xff   : > { %v2744_v46 = vpop.permute.xlu0 %2743  ;;  %3038 = vrot.lane.b32.xlu1 %v4167_v57, %s3124_s8  ;;  %v1550_v51 = vsel %vm1544_vm9, %v1517_v15, %v2741_v27  ;;  %v1486_v50 = vsel %vm1478_vm7, %v1453_v8, %v2726_v4  ;;  %v1485_v6 = vsel %vm1478_vm7, %v1452_v59, %v2725_v35  ;;  %v1001_v37 = vrot.slane %v4161_v32, 2 }
 0x100   : > { %v1582_v21 = vsel %vm1577_vm10, %v1549_v47, %v2750_v48  ;;  %v1583_v14 = vsel %vm1577_vm10, %v1550_v51, %v2751_v24  ;;  %v2746_v26 = vunpack.i.h.bf16 %v2744_v46  ;;  %v1518_v7 = vsel %vm1511_vm8, %v1485_v6, %v2735_v45  ;;  %v4829_v45 = vld [vmem:[#allocation11_spill] sm:$0xff] }
 0x101   : > { %3033 = vrot.lane.b32.xlu0 %v4093_v22, %s3124_s8  ;;  %v2759_v54 = vpop.permute.xlu1 %2758  ;;  %v2745_v22 = vunpack.i.l.bf16 %v2744_v46  ;;  %v1519_v29 = vsel %vm1511_vm8, %v1486_v50, %v2736_v63  ;;  %v1002_v12 = vrot.slane %v4156_v42, 2  ;;  %v1004_v46 = vrot.slane %v4176_v18, 2  ;;  %v4831_v47 = vld [vmem:[#allocation19_spill] sm:$0xff] }
 0x102   : > { %v2761_v13 = vunpack.i.h.bf16 %v2759_v54  ;;  %v2760_v55 = vunpack.i.l.bf16 %v2759_v54  ;;  %v1552_v8 = vsel %vm1544_vm9, %v1519_v29, %v2746_v26  ;;  %v902_v53 = vsel %vm460_vm1, %v900_v40, %v901_v23  ;;  %v4830_v40 = vld [vmem:[#allocation18_spill] sm:$0xff] }
 0x103   : > { %v2754_v52 = vpop.permute.xlu0 %2753  ;;  %3048 = vrot.lane.b32.xlu1 %v4827_v41, %s3125_s9  ;;  %v904_v28 = vsel %vm460_vm1, %v901_v23, %v903_v36  ;;  %v2511_v15 = vunpack.i.h.bf16 %v3819_v61  ;;  %v2520_v54 = vunpack.i.l.bf16 %v4829_v45  ;;  %v1003_v42 = vsel %vm631_vm2, %v1001_v37, %v1002_v12  ;;  %v4836_v37 = vld [vmem:[#allocation8_spill] sm:$0xff] }
 0x104   : > { %v1615_v31 = vsel %vm1610_vm11, %v1582_v21, %v2760_v55  ;;  %v1616_v5 = vsel %vm1610_vm11, %v1583_v14, %v2761_v13  ;;  %v2756_v16 = vunpack.i.h.bf16 %v2754_v52  ;;  %v2755_v58 = vunpack.i.l.bf16 %v2754_v52  ;;  %v4832_v55 = vld [vmem:[#allocation5_spill] sm:$0xff]  ;;  %v4833_v21 = vld [vmem:[#allocation16_spill] sm:$0xff] }
 0x105   : > { %3043 = vrot.lane.b32.xlu0 %v4140_v19, %s3125_s9  ;;  %v1645_v20 = vpack.c.bf16 %v1616_v5, %v1615_v31  ;;  %v4244_v62 = vpop.permute.xlu1 %2768  ;;  %v1551_v19 = vsel %vm1544_vm9, %v1518_v7, %v2745_v22  ;;  %v4276_v32 = vpack.i.bf16 %v904_v28, %v902_v53  ;;  %v1005_v18 = vsel %vm631_vm2, %v1002_v12, %v1004_v46 }
 0x106   : > { %v1584_v24 = vsel %vm1577_vm10, %v1551_v19, %v2755_v58  ;;  %v1585_v48 = vsel %vm1577_vm10, %v1552_v8, %v2756_v16  ;;  %v2516_v23 = vunpack.i.h.bf16 %v4830_v40  ;;  %v2515_v61 = vunpack.i.l.bf16 %v4830_v40  ;;  %v4835_v58 = vld [vmem:[#allocation12_spill] sm:$0xff] }
 0x107   : > { %v2764_v27 = vpop.permute.xlu0 %2763  ;;  %3058 = vrot.lane.b32.xlu1 %v4828_v38, %s3126_s10  ;;  %2439 = vmatprep.mubr.msk.bf16.mxu0 %vm1679_vm12, %v1645_v20  ;;  %v2586_v36 = vunpack.i.h.bf16 %v3888_v30  ;;  %v2595_v51 = vunpack.i.l.bf16 %v4831_v47  ;;  %v1389_v52 = vsel %vm1381_vm4, %v4832_v55, %v2511_v15  ;;  %v2591_v14 = vunpack.i.h.bf16 %v4833_v21 }
 0x108   : > { %v2766_v39 = vunpack.i.h.bf16 %v2764_v27  ;;  %v2765_v59 = vunpack.i.l.bf16 %v2764_v27  ;;  %v2590_v26 = vunpack.i.l.bf16 %v4833_v21  ;;  %v4291_v31 = vpack.i.bf16 %v1005_v18, %v1003_v42 }
 0x109   : > { %3053 = vrot.lane.b32.xlu0 %v4826_v17, %s3126_s10  ;;  %v2779_v49 = vpop.permute.xlu1 %2778  ;;  %v2666_v16 = vunpack.i.h.bf16 %v4063_v1  ;;  %v2665_v30 = vunpack.i.l.bf16 %v4063_v1  ;;  %v1391_v50 = vsel %vm1381_vm4, %v4835_v58, %v2516_v23  ;;  %v2771_v6 = vunpack.i.h.bf16 %v4244_v62 }
 0x10a   : > { %v1617_v4 = vsel %vm1610_vm11, %v1584_v24, %v2765_v59  ;;  %v1618_v35 = vsel %vm1610_vm11, %v1585_v48, %v2766_v39  ;;  %v2770_v20 = vunpack.i.l.bf16 %v4244_v62  ;;  %v1390_v7 = vsel %vm1381_vm4, %v4836_v37, %v2515_v61 }
 0x10b   : > { %v1646_v17 = vpack.c.bf16 %v1618_v35, %v1617_v4  ;;  %v2774_v63 = vpop.permute.xlu0 %2773  ;;  %3068 = vrot.lane.b32.xlu1 %v4184_v9, %s3121_s24  ;;  %v1421_v29 = vsel %vm1413_vm5, %v1389_v52, %v2586_v36  ;;  %v1422_v12 = vsel %vm1413_vm5, %v1390_v7, %v2590_v26  ;;  %v1423_v46 = vsel %vm1413_vm5, %v1391_v50, %v2591_v14  ;;  %v4838_v7 = vld [vmem:[#allocation2_spill] sm:$0xff] }
 0x10c   : > { %v2781_v19 = vunpack.i.h.bf16 %v2779_v49  ;;  %v2780_v8 = vunpack.i.l.bf16 %v2779_v49  ;;  %v1454_v62 = vsel %vm1445_vm6, %v1421_v29, %v2665_v30  ;;  %v1455_v59 = vsel %vm1445_vm6, %v1422_v12, %v2666_v16 }
 0x10d   : > { %3063 = vrot.lane.b32.xlu0 %v4167_v57, %s3121_s24  ;;  %2440 = vmatmul.mubr.msk.bf16.gmra.mrb[4].mxu0 %vm1679_vm12, %v1646_v17  ;;  %v2789_v13 = vpop.permute.xlu1 %2788  ;;  %v4834_v57 = vld [vmem:[#allocation13_spill] sm:$0xff]  ;;  %v2775_v24 = vunpack.i.l.bf16 %v2774_v63  ;;  %v1456_v53 = vsel %vm1445_vm6, %v1423_v46, %v2770_v20 }
 0x10e   : > { %v1392_v5 = vsel %vm1381_vm4, %v4834_v57, %v2520_v54  ;;  %v2791_v28 = vunpack.i.h.bf16 %v2789_v13  ;;  %v2790_v4 = vunpack.i.l.bf16 %v2789_v13  ;;  %v1489_v54 = vsel %vm1478_vm7, %v1456_v53, %v2780_v8 }
 0x10f   : > { %v2784_v22 = vpop.permute.xlu0 %2783  ;;  %3078 = vrot.lane.b32.xlu1 %v4276_v32, %s3122_s27  ;;  %v1424_v1 = vsel %vm1413_vm5, %v1392_v5, %v2595_v51  ;;  %v1487_v23 = vsel %vm1478_vm7, %v1454_v62, %v2775_v24 }
 0x110   : > { %v1457_v48 = vsel %vm1445_vm6, %v1424_v1, %v2771_v6  ;;  %v2786_v35 = vunpack.i.h.bf16 %v2784_v22  ;;  %v2785_v49 = vunpack.i.l.bf16 %v2784_v22  ;;  %v1522_v51 = vsel %vm1511_vm8, %v1489_v54, %v2790_v4 }
 0x111   : > { %3073 = vrot.lane.b32.xlu0 %v4827_v41, %s3122_s27  ;;  %v2799_v27 = vpop.permute.xlu1 %2798  ;;  %v2776_v41 = vunpack.i.h.bf16 %v2774_v63  ;;  %v1490_v63 = vsel %vm1478_vm7, %v1457_v48, %v2781_v19 }
 0x112   : > { %v2801_v15 = vunpack.i.h.bf16 %v2799_v27  ;;  %v2800_v17 = vunpack.i.l.bf16 %v2799_v27  ;;  %v1523_v13 = vsel %vm1511_vm8, %v1490_v63, %v2791_v28  ;;  %v1520_v21 = vsel %vm1511_vm8, %v1487_v23, %v2785_v49 }
 0x113   : > { %v2794_v39 = vpop.permute.xlu0 %2793  ;;  %3088 = vrot.lane.b32.xlu1 %v4291_v31, %s3123_s30  ;;  %v1488_v61 = vsel %vm1478_vm7, %v1455_v59, %v2776_v41  ;;  %v4839_v41 = vld [vmem:[#allocation3_spill] sm:$0xff] }
 0x114   : > { %v2796_v42 = vunpack.i.h.bf16 %v2794_v39  ;;  %v2795_v18 = vunpack.i.l.bf16 %v2794_v39  ;;  %v1521_v14 = vsel %vm1511_vm8, %v1488_v61, %v2786_v35  ;;  %v1555_v26 = vsel %vm1544_vm9, %v1522_v51, %v2800_v17 }
 0x115   : > { %3083 = vrot.lane.b32.xlu0 %v4828_v38, %s3123_s30  ;;  %v2809_v45 = vpop.permute.xlu1 %2808  ;;  %v4837_v38 = vmov 0.0   ;;  %v1556_v22 = vsel %vm1544_vm9, %v1523_v13, %v2801_v15 }
 0x116   : > { %v2811_v36 = vunpack.i.h.bf16 %v2809_v45  ;;  %v2810_v47 = vunpack.i.l.bf16 %v2809_v45  ;;  %v1553_v5 = vsel %vm1544_vm9, %v1520_v21, %v2795_v18  ;;  %v1554_v16 = vsel %vm1544_vm9, %v1521_v14, %v2796_v42 }
 0x117   : > { %v2804_v40 = vpop.permute.xlu0 %2803  ;;  %1162 = vrot.lane.b32.xlu1 %v4837_v38, %s3124_s8 }
 0x118   : > { %v2806_v55 = vunpack.i.h.bf16 %v2804_v40  ;;  %v2805_v52 = vunpack.i.l.bf16 %v2804_v40  ;;  %v1588_v6 = vsel %vm1577_vm10, %v1555_v26, %v2810_v47  ;;  %v4840_v40 = vld [vmem:[#allocation17_spill] sm:$0xff] }
 0x119   : > { %3093 = vrot.lane.b32.xlu0 %v4184_v9, %s3124_s8  ;;  %v2819_v57 = vpop.permute.xlu1 %2818  ;;  %v1589_v9 = vsel %vm1577_vm10, %v1556_v22, %v2811_v36 }
 0x11a   : > { %v2821_v30 = vunpack.i.h.bf16 %v2819_v57  ;;  %v2820_v58 = vunpack.i.l.bf16 %v2819_v57  ;;  %v1586_v29 = vsel %vm1577_vm10, %v1553_v5, %v2805_v52  ;;  %v1587_v1 = vsel %vm1577_vm10, %v1554_v16, %v2806_v55 }
 0x11b   : > { %v2814_v50 = vpop.permute.xlu0 %2813  ;;  %1255 = vrot.lane.b32.xlu1 %v4838_v7, %s3125_s9 }
 0x11c   : > { %v2816_v20 = vunpack.i.h.bf16 %v2814_v50  ;;  %v2815_v37 = vunpack.i.l.bf16 %v2814_v50  ;;  %v1621_v27 = vsel %vm1610_vm11, %v1588_v6, %v2820_v58  ;;  %v1622_v12 = vsel %vm1610_vm11, %v1589_v9, %v2821_v30 }
 0x11d   : > { %3098 = vrot.lane.b32.xlu0 %v4276_v32, %s3125_s9  ;;  %v1648_v46 = vpack.c.bf16 %v1622_v12, %v1621_v27  ;;  %v2829_v39 = vpop.permute.xlu1 %2828 }
 0x11e   : > { %v1619_v19 = vsel %vm1610_vm11, %v1586_v29, %v2815_v37  ;;  %v1620_v8 = vsel %vm1610_vm11, %v1587_v1, %v2816_v20  ;;  %v2831_v28 = vunpack.i.h.bf16 %v2829_v39  ;;  %v2830_v4 = vunpack.i.l.bf16 %v2829_v39 }
 0x11f   : > { %v1647_v62 = vpack.c.bf16 %v1620_v8, %v1619_v19  ;;  %v2824_v59 = vpop.permute.xlu0 %2823  ;;  %1348 = vrot.lane.b32.xlu1 %v4839_v41, %s3126_s10 }
 0x120   : > { %v2826_v35 = vunpack.i.h.bf16 %v2824_v59  ;;  %v2825_v49 = vunpack.i.l.bf16 %v2824_v59  ;;  %v1461_v63 = vsel %vm1445_vm6, %v3939_v0, %v2831_v28 }
 0x121   : > { %3103 = vrot.lane.b32.xlu0 %v4291_v31, %s3126_s10  ;;  %2443 = vmatprep.mubr.msk.bf16.mxu0 %vm1679_vm12, %v1647_v62  ;;  %v2839_v24 = vpop.permute.xlu1 %2838  ;;  %v1460_v31 = vsel %vm1445_vm6, %v3948_v56, %v2830_v4 }
 0x122   : > { %2444 = vmatmul.mubr.msk.bf16.gmra.mrb[8].mxu0 %vm1679_vm12, %v1648_v46  ;;  %v2841_v17 = vunpack.i.h.bf16 %v2839_v24  ;;  %v2840_v45 = vunpack.i.l.bf16 %v2839_v24  ;;  %v1458_v23 = vsel %vm1445_vm6, %v4840_v40, %v2825_v49  ;;  %v1459_v61 = vsel %vm1445_vm6, %v3945_v2, %v2826_v35 }
 0x123   : > { %v2834_v32 = vpop.permute.xlu0 %2833 }
 0x124   : > { %v2836_v42 = vunpack.i.h.bf16 %v2834_v32  ;;  %v2835_v18 = vunpack.i.l.bf16 %v2834_v32  ;;  %v1493_v0 = vsel %vm1478_vm7, %v1460_v31, %v2840_v45  ;;  %v1494_v21 = vsel %vm1478_vm7, %v1461_v63, %v2841_v17 }
 0x125   : > { %v2849_v48 = vpop.permute.xlu1 %2848 }
 0x126   : > { %v2851_v36 = vunpack.i.h.bf16 %v2849_v48  ;;  %v2850_v47 = vunpack.i.l.bf16 %v2849_v48  ;;  %v1491_v22 = vsel %vm1478_vm7, %v1458_v23, %v2835_v18  ;;  %v1492_v57 = vsel %vm1478_vm7, %v1459_v61, %v2836_v42 }
 0x127   : > { %v2844_v53 = vpop.permute.xlu0 %2843 }
 0x128   : > { %v2846_v38 = vunpack.i.h.bf16 %v2844_v53  ;;  %v2845_v51 = vunpack.i.l.bf16 %v2844_v53  ;;  %v1526_v16 = vsel %vm1511_vm8, %v1493_v0, %v2850_v47  ;;  %v1527_v30 = vsel %vm1511_vm8, %v1494_v21, %v2851_v36 }
 0x129   : > { %v2859_v15 = vpop.permute.xlu1 %2858 }
 0x12a   : > { %v2861_v13 = vunpack.i.h.bf16 %v2859_v15  ;;  %v2860_v55 = vunpack.i.l.bf16 %v2859_v15  ;;  %v1524_v6 = vsel %vm1511_vm8, %v1491_v22, %v2845_v51  ;;  %v1525_v9 = vsel %vm1511_vm8, %v1492_v57, %v2846_v38 }
 0x12b   : > { %v2854_v54 = vpop.permute.xlu0 %2853 }
 0x12c   : > { %v2856_v56 = vunpack.i.h.bf16 %v2854_v54  ;;  %v2855_v14 = vunpack.i.l.bf16 %v2854_v54  ;;  %v1559_v20 = vsel %vm1544_vm9, %v1526_v16, %v2860_v55  ;;  %v1560_v37 = vsel %vm1544_vm9, %v1527_v30, %v2861_v13 }
 0x12d   : > { %v2869_v52 = vpop.permute.xlu1 %2868 }
 0x12e   : > { %v2871_v5 = vunpack.i.h.bf16 %v2869_v52  ;;  %v2870_v2 = vunpack.i.l.bf16 %v2869_v52  ;;  %v1557_v29 = vsel %vm1544_vm9, %v1524_v6, %v2855_v14  ;;  %v1558_v1 = vsel %vm1544_vm9, %v1525_v9, %v2856_v56 }
 0x12f   : > { %v2864_v26 = vpop.permute.xlu0 %2863 }
 0x130   : > { %v2866_v58 = vunpack.i.h.bf16 %v2864_v26  ;;  %v2865_v50 = vunpack.i.l.bf16 %v2864_v26  ;;  %v1592_v19 = vsel %vm1577_vm10, %v1559_v20, %v2870_v2  ;;  %v1593_v8 = vsel %vm1577_vm10, %v1560_v37, %v2871_v5 }
 0x131   : > { %v2879_v7 = vpop.permute.xlu1 %2878 }
 0x132   : > { %v2881_v27 = vunpack.i.h.bf16 %v2879_v7  ;;  %v2880_v12 = vunpack.i.l.bf16 %v2879_v7  ;;  %v1590_v59 = vsel %vm1577_vm10, %v1557_v29, %v2865_v50  ;;  %v1591_v41 = vsel %vm1577_vm10, %v1558_v1, %v2866_v58 }
 0x133   : > { %v2874_v46 = vpop.permute.xlu0 %2873 }
 0x134   : > { %v2876_v39 = vunpack.i.h.bf16 %v2874_v46  ;;  %v2875_v62 = vunpack.i.l.bf16 %v2874_v46  ;;  %v1625_v24 = vsel %vm1610_vm11, %v1592_v19, %v2880_v12  ;;  %v1626_v32 = vsel %vm1610_vm11, %v1593_v8, %v2881_v27 }
 0x135   : > { %v1650_v48 = vpack.c.bf16 %v1626_v32, %v1625_v24  ;;  %v2889_v4 = vpop.permute.xlu1 %2888 }
 0x136   : > { %v1623_v53 = vsel %vm1610_vm11, %v1590_v59, %v2875_v62  ;;  %v1624_v28 = vsel %vm1610_vm11, %v1591_v41, %v2876_v39  ;;  %v2891_v63 = vunpack.i.h.bf16 %v2889_v4  ;;  %v2890_v31 = vunpack.i.l.bf16 %v2889_v4 }
 0x137   : > { %v1649_v35 = vpack.c.bf16 %v1624_v28, %v1623_v53  ;;  %v2884_v49 = vpop.permute.xlu0 %2883 }
 0x138   : > { %v2886_v42 = vunpack.i.h.bf16 %v2884_v49  ;;  %v2885_v18 = vunpack.i.l.bf16 %v2884_v49  ;;  %v1465_v47 = vsel %vm1445_vm6, %v3966_v10, %v2891_v63  ;;  %v1464_v38 = vsel %vm1445_vm6, %v3978_v43, %v2890_v31 }
 0x139   : > { %2447 = vmatprep.mubr.msk.bf16.mxu0 %vm1679_vm12, %v1649_v35  ;;  %v2899_v15 = vpop.permute.xlu1 %2898 }
 0x13a   : > { %2448 = vmatmul.mubr.msk.bf16.gmra.mrb[12].mxu0 %vm1679_vm12, %v1650_v48  ;;  %v2901_v23 = vunpack.i.h.bf16 %v2899_v15  ;;  %v2900_v61 = vunpack.i.l.bf16 %v2899_v15  ;;  %v1462_v55 = vsel %vm1445_vm6, %v3936_v60, %v2885_v18  ;;  %v1463_v52 = vsel %vm1445_vm6, %v3975_v11, %v2886_v42 }
 0x13b   : > { %v2894_v17 = vpop.permute.xlu0 %2893 }
 0x13c   : > { %v2896_v51 = vunpack.i.h.bf16 %v2894_v17  ;;  %v2895_v13 = vunpack.i.l.bf16 %v2894_v17  ;;  %v1497_v10 = vsel %vm1478_vm7, %v1464_v38, %v2900_v61  ;;  %v1498_v5 = vsel %vm1478_vm7, %v1465_v47, %v2901_v23 }
 0x13d   : > { %v2909_v45 = vpop.permute.xlu1 %2908 }
 0x13e   : > { %v2911_v0 = vunpack.i.h.bf16 %v2909_v45  ;;  %v2910_v21 = vunpack.i.l.bf16 %v2909_v45  ;;  %v1495_v30 = vsel %vm1478_vm7, %v1462_v55, %v2895_v13  ;;  %v1496_v60 = vsel %vm1478_vm7, %v1463_v52, %v2896_v51 }
 0x13f   : > { %v2904_v54 = vpop.permute.xlu0 %2903 }
 0x140   : > { %v2906_v56 = vunpack.i.h.bf16 %v2904_v54  ;;  %v2905_v14 = vunpack.i.l.bf16 %v2904_v54  ;;  %v1530_v50 = vsel %vm1511_vm8, %v1497_v10, %v2910_v21  ;;  %v1531_v6 = vsel %vm1511_vm8, %v1498_v5, %v2911_v0 }
 0x141   : > { %v2919_v40 = vpop.permute.xlu1 %2918 }
 0x142   : > { %v2921_v26 = vunpack.i.h.bf16 %v2919_v40  ;;  %v2920_v22 = vunpack.i.l.bf16 %v2919_v40  ;;  %v1528_v37 = vsel %vm1511_vm8, %v1495_v30, %v2905_v14  ;;  %v1529_v7 = vsel %vm1511_vm8, %v1496_v60, %v2906_v56 }
 0x143   : > { %v2914_v36 = vpop.permute.xlu0 %2913 }
 0x144   : > { %v2916_v43 = vunpack.i.h.bf16 %v2914_v36  ;;  %v2915_v2 = vunpack.i.l.bf16 %v2914_v36  ;;  %v1563_v29 = vsel %vm1544_vm9, %v1530_v50, %v2920_v22  ;;  %v1564_v1 = vsel %vm1544_vm9, %v1531_v6, %v2921_v26 }
 0x145   : > { %v2929_v57 = vpop.permute.xlu1 %2928 }
 0x146   : > { %v2931_v58 = vunpack.i.h.bf16 %v2929_v57  ;;  %v2930_v11 = vunpack.i.l.bf16 %v2929_v57  ;;  %v1561_v12 = vsel %vm1544_vm9, %v1528_v37, %v2915_v2  ;;  %v1562_v46 = vsel %vm1544_vm9, %v1529_v7, %v2916_v43 }
 0x147   : > { %v2924_v16 = vpop.permute.xlu0 %2923 }
 0x148   : > { %v2926_v9 = vunpack.i.h.bf16 %v2924_v16  ;;  %v2925_v20 = vunpack.i.l.bf16 %v2924_v16  ;;  %v1596_v62 = vsel %vm1577_vm10, %v1563_v29, %v2930_v11  ;;  %v1597_v59 = vsel %vm1577_vm10, %v1564_v1, %v2931_v58 }
 0x149   : > { %v2939_v27 = vpop.permute.xlu1 %2938 }
 0x14a   : > { %v2941_v19 = vunpack.i.h.bf16 %v2939_v27  ;;  %v2940_v8 = vunpack.i.l.bf16 %v2939_v27  ;;  %v1594_v53 = vsel %vm1577_vm10, %v1561_v12, %v2925_v20  ;;  %v1595_v28 = vsel %vm1577_vm10, %v1562_v46, %v2926_v9 }
 0x14b   : > { %v2934_v39 = vpop.permute.xlu0 %2933 }
 0x14c   : > { %v2936_v41 = vunpack.i.h.bf16 %v2934_v39  ;;  %v2935_v24 = vunpack.i.l.bf16 %v2934_v39  ;;  %v1629_v32 = vsel %vm1610_vm11, %v1596_v62, %v2940_v8  ;;  %v1630_v48 = vsel %vm1610_vm11, %v1597_v59, %v2941_v19 }
 0x14d   : > { %v1652_v4 = vpack.c.bf16 %v1630_v48, %v1629_v32  ;;  %v2949_v35 = vpop.permute.xlu1 %2948 }
 0x14e   : > { %v1627_v49 = vsel %vm1610_vm11, %v1594_v53, %v2935_v24  ;;  %v1628_v15 = vsel %vm1610_vm11, %v1595_v28, %v2936_v41  ;;  %v2951_v18 = vunpack.i.h.bf16 %v2949_v35  ;;  %v2950_v40 = vunpack.i.l.bf16 %v2949_v35 }
 0x14f   : > { %v2944_v17 = vpop.permute.xlu0 %2943  ;;  %v1651_v45 = vpack.c.bf16 %v1628_v15, %v1627_v49 }
 0x150   : > { %v2946_v23 = vunpack.i.h.bf16 %v2944_v17  ;;  %v2945_v61 = vunpack.i.l.bf16 %v2944_v17  ;;  %v1469_v13 = vsel %vm1445_vm6, %v3994_v44, %v2951_v18  ;;  %v1468_v55 = vsel %vm1445_vm6, %v4002_v25, %v2950_v40 }
 0x151   : > { %2451 = vmatprep.mubr.msk.bf16.mxu1 %vm1679_vm12, %v1651_v45  ;;  %v2959_v54 = vpop.permute.xlu1 %2958 }
 0x152   : > { %2452 = vmatmul.mubr.msk.bf16.vlgmr.msra.gmra.mrb[0].mxu1 %vm1679_vm12, %v1652_v4  ;;  %v2961_v47 = vunpack.i.h.bf16 %v2959_v54  ;;  %v2960_v38 = vunpack.i.l.bf16 %v2959_v54  ;;  %v1466_v21 = vsel %vm1445_vm6, %v3963_v34, %v2945_v61  ;;  %v1467_v56 = vsel %vm1445_vm6, %v3999_v3, %v2946_v23 }
 0x153   : > { %v2954_v63 = vpop.permute.xlu0 %2953 }
 0x154   : > { %v2956_v52 = vunpack.i.h.bf16 %v2954_v63  ;;  %v2955_v0 = vunpack.i.l.bf16 %v2954_v63  ;;  %v1501_v44 = vsel %vm1478_vm7, %v1468_v55, %v2960_v38  ;;  %v1502_v2 = vsel %vm1478_vm7, %v1469_v13, %v2961_v47  ;;  %v4841_v13 = vld [vmem:[#allocation22_spill] sm:$0xff] }
 0x155   : > { %v2969_v31 = vpop.permute.xlu1 %2968 }
 0x156   : > { %v2971_v14 = vunpack.i.h.bf16 %v2969_v31  ;;  %v2970_v26 = vunpack.i.l.bf16 %v2969_v31  ;;  %v1499_v60 = vsel %vm1478_vm7, %v1466_v21, %v2955_v0  ;;  %v1500_v34 = vsel %vm1478_vm7, %v1467_v56, %v2956_v52  ;;  %v4842_v21 = vld [vmem:[#allocation25_spill] sm:$0xff] }
 0x157   : > { %v2964_v42 = vpop.permute.xlu0 %2963 }
 0x158   : > { %v2966_v22 = vunpack.i.h.bf16 %v2964_v42  ;;  %v2965_v57 = vunpack.i.l.bf16 %v2964_v42  ;;  %v1534_v11 = vsel %vm1511_vm8, %v1501_v44, %v2970_v26  ;;  %v1535_v50 = vsel %vm1511_vm8, %v1502_v2, %v2971_v14  ;;  %v4843_v14 = vld [vmem:[#allocation21_spill] sm:$0xff] }
 0x159   : > { %v2979_v36 = vpop.permute.xlu1 %2978 }
 0x15a   : > { %v2981_v10 = vunpack.i.h.bf16 %v2979_v36  ;;  %v2980_v5 = vunpack.i.l.bf16 %v2979_v36  ;;  %v1532_v20 = vsel %vm1511_vm8, %v1499_v60, %v2965_v57  ;;  %v1533_v37 = vsel %vm1511_vm8, %v1500_v34, %v2966_v22 }
 0x15b   : > { %v2974_v51 = vpop.permute.xlu0 %2973 }
 0x15c   : > { %v2976_v25 = vunpack.i.h.bf16 %v2974_v51  ;;  %v2975_v16 = vunpack.i.l.bf16 %v2974_v51  ;;  %v1567_v7 = vsel %vm1544_vm9, %v1534_v11, %v2980_v5  ;;  %v1568_v29 = vsel %vm1544_vm9, %v1535_v50, %v2981_v10 }
 0x15d   : > { %v2989_v43 = vpop.permute.xlu1 %2988 }
 0x15e   : > { %v2991_v58 = vunpack.i.h.bf16 %v2989_v43  ;;  %v2990_v3 = vunpack.i.l.bf16 %v2989_v43  ;;  %v1565_v27 = vsel %vm1544_vm9, %v1532_v20, %v2975_v16  ;;  %v1566_v12 = vsel %vm1544_vm9, %v1533_v37, %v2976_v25 }
 0x15f   : > { %v2984_v30 = vpop.permute.xlu0 %2983 }
 0x160   : > { %v2986_v6 = vunpack.i.h.bf16 %v2984_v30  ;;  %v2985_v9 = vunpack.i.l.bf16 %v2984_v30  ;;  %v1600_v39 = vsel %vm1577_vm10, %v1567_v7, %v2990_v3  ;;  %v1601_v62 = vsel %vm1577_vm10, %v1568_v29, %v2991_v58 }
 0x161   : > { %v2999_v1 = vpop.permute.xlu1 %2998 }
 0x162   : > { %v3001_v46 = vunpack.i.h.bf16 %v2999_v1  ;;  %v3000_v19 = vunpack.i.l.bf16 %v2999_v1  ;;  %v1598_v24 = vsel %vm1577_vm10, %v1565_v27, %v2985_v9  ;;  %v1599_v32 = vsel %vm1577_vm10, %v1566_v12, %v2986_v6 }
 0x163   : > { %v2994_v8 = vpop.permute.xlu0 %2993 }
 0x164   : > { %v2996_v59 = vunpack.i.h.bf16 %v2994_v8  ;;  %v2995_v41 = vunpack.i.l.bf16 %v2994_v8  ;;  %v1633_v48 = vsel %vm1610_vm11, %v1600_v39, %v3000_v19  ;;  %v1634_v53 = vsel %vm1610_vm11, %v1601_v62, %v3001_v46 }
 0x165   : > { %v1654_v28 = vpack.c.bf16 %v1634_v53, %v1633_v48  ;;  %v3009_v49 = vpop.permute.xlu1 %3008 }
 0x166   : > { %v1631_v4 = vsel %vm1610_vm11, %v1598_v24, %v2995_v41  ;;  %v1632_v35 = vsel %vm1610_vm11, %v1599_v32, %v2996_v59  ;;  %v3011_v42 = vunpack.i.h.bf16 %v3009_v49  ;;  %v3010_v18 = vunpack.i.l.bf16 %v3009_v49 }
 0x167   : > { %v1653_v15 = vpack.c.bf16 %v1632_v35, %v1631_v4  ;;  %v3004_v17 = vpop.permute.xlu0 %3003 }
 0x168   : > { %v3006_v40 = vunpack.i.h.bf16 %v3004_v17  ;;  %v3005_v23 = vunpack.i.l.bf16 %v3004_v17  ;;  %v1473_v51 = vsel %vm1445_vm6, %v4020_v33, %v3011_v42  ;;  %v1472_v55 = vsel %vm1445_vm6, %v4841_v13, %v3010_v18 }
 0x169   : > { %2455 = vmatprep.mubr.msk.bf16.mxu1 %vm1679_vm12, %v1653_v15  ;;  %v3019_v45 = vpop.permute.xlu1 %3018 }
 0x16a   : > { %2456 = vmatmul.mubr.msk.bf16.gmra.mrb[4].mxu1 %vm1679_vm12, %v1654_v28  ;;  %v3021_v36 = vunpack.i.h.bf16 %v3019_v45  ;;  %v3020_v47 = vunpack.i.l.bf16 %v3019_v45  ;;  %v1470_v56 = vsel %vm1445_vm6, %v4842_v21, %v3005_v23  ;;  %v1471_v26 = vsel %vm1445_vm6, %v4843_v14, %v3006_v40 }
 0x16b   : > { %v3014_v54 = vpop.permute.xlu0 %3013 }
 0x16c   : > { %v3016_v52 = vunpack.i.h.bf16 %v3014_v54  ;;  %v3015_v0 = vunpack.i.l.bf16 %v3014_v54  ;;  %v1505_v33 = vsel %vm1478_vm7, %v1472_v55, %v3020_v47  ;;  %v1506_v25 = vsel %vm1478_vm7, %v1473_v51, %v3021_v36  ;;  %v4844_v55 = vld [vmem:[#allocation30_spill] sm:$0xff] }
 0x16d   : > { %v3029_v63 = vpop.permute.xlu1 %3028 }
 0x16e   : > { %v3031_v22 = vunpack.i.h.bf16 %v3029_v63  ;;  %v3030_v57 = vunpack.i.l.bf16 %v3029_v63  ;;  %v1503_v34 = vsel %vm1478_vm7, %v1470_v56, %v3015_v0  ;;  %v1504_v58 = vsel %vm1478_vm7, %v1471_v26, %v3016_v52  ;;  %v4845_v0 = vld [vmem:[#allocation28_spill] sm:$0xff] }
 0x16f   : > { %v3024_v31 = vpop.permute.xlu0 %3023 }
 0x170   : > { %v3026_v10 = vunpack.i.h.bf16 %v3024_v31  ;;  %v3025_v5 = vunpack.i.l.bf16 %v3024_v31  ;;  %v1538_v50 = vsel %vm1511_vm8, %v1505_v33, %v3030_v57  ;;  %v1539_v6 = vsel %vm1511_vm8, %v1506_v25, %v3031_v22 }
 0x171   : > { %v3039_v61 = vpop.permute.xlu1 %3038 }
 0x172   : > { %v3041_v43 = vunpack.i.h.bf16 %v3039_v61  ;;  %v3040_v44 = vunpack.i.l.bf16 %v3039_v61  ;;  %v1536_v37 = vsel %vm1511_vm8, %v1503_v34, %v3025_v5  ;;  %v1537_v7 = vsel %vm1511_vm8, %v1504_v58, %v3026_v10 }
 0x173   : > { %v3034_v38 = vpop.permute.xlu0 %3033 }
 0x174   : > { %v3036_v16 = vunpack.i.h.bf16 %v3034_v38  ;;  %v3035_v30 = vunpack.i.l.bf16 %v3034_v38  ;;  %v1571_v29 = vsel %vm1544_vm9, %v1538_v50, %v3040_v44  ;;  %v1572_v1 = vsel %vm1544_vm9, %v1539_v6, %v3041_v43 }
 0x175   : > { %v3049_v2 = vpop.permute.xlu1 %3048 }
 0x176   : > { %v3051_v3 = vunpack.i.h.bf16 %v3049_v2  ;;  %v3050_v11 = vunpack.i.l.bf16 %v3049_v2  ;;  %v1569_v12 = vsel %vm1544_vm9, %v1536_v37, %v3035_v30  ;;  %v1570_v46 = vsel %vm1544_vm9, %v1537_v7, %v3036_v16  ;;  %v4846_v2 = vld [vmem:[#allocation23_spill] sm:$0xff] }
 0x177   : > { %v3044_v60 = vpop.permute.xlu0 %3043 }
 0x178   : > { %v3046_v9 = vunpack.i.h.bf16 %v3044_v60  ;;  %v3045_v20 = vunpack.i.l.bf16 %v3044_v60  ;;  %v1604_v62 = vsel %vm1577_vm10, %v1571_v29, %v3050_v11  ;;  %v1605_v59 = vsel %vm1577_vm10, %v1572_v1, %v3051_v3  ;;  %v4847_v60 = vld [vmem:[#allocation31_spill] sm:$0xff] }
 0x179   : > { %v3059_v27 = vpop.permute.xlu1 %3058 }
 0x17a   : > { %v3061_v19 = vunpack.i.h.bf16 %v3059_v27  ;;  %v3060_v8 = vunpack.i.l.bf16 %v3059_v27  ;;  %v1602_v32 = vsel %vm1577_vm10, %v1569_v12, %v3045_v20  ;;  %v1603_v48 = vsel %vm1577_vm10, %v1570_v46, %v3046_v9 }
 0x17b   : > { %v3054_v39 = vpop.permute.xlu0 %3053 }
 0x17c   : > { %v3056_v41 = vunpack.i.h.bf16 %v3054_v39  ;;  %v3055_v24 = vunpack.i.l.bf16 %v3054_v39  ;;  %v1637_v53 = vsel %vm1610_vm11, %v1604_v62, %v3060_v8  ;;  %v1638_v28 = vsel %vm1610_vm11, %v1605_v59, %v3061_v19 }
 0x17d   : > { %v1656_v4 = vpack.c.bf16 %v1638_v28, %v1637_v53  ;;  %v3069_v15 = vpop.permute.xlu1 %3068 }
 0x17e   : > { %v1635_v35 = vsel %vm1610_vm11, %v1602_v32, %v3055_v24  ;;  %v1636_v49 = vsel %vm1610_vm11, %v1603_v48, %v3056_v41  ;;  %v3071_v18 = vunpack.i.h.bf16 %v3069_v15  ;;  %v3070_v40 = vunpack.i.l.bf16 %v3069_v15 }
 0x17f   : > { %v1655_v17 = vpack.c.bf16 %v1636_v49, %v1635_v35  ;;  %v3064_v45 = vpop.permute.xlu0 %3063 }
 0x180   : > { %v3065_v51 = vunpack.i.l.bf16 %v3064_v45  ;;  %v1477_v52 = vsel %vm1445_vm6, %v4844_v55, %v3071_v18  ;;  %v1476_v21 = vsel %vm1445_vm6, %v4845_v0, %v3070_v40  ;;  %v3066_v56 = vunpack.i.h.bf16 %v3064_v45 }
 0x181   : > { %2459 = vmatprep.mubr.msk.bf16.mxu1 %vm1679_vm12, %v1655_v17  ;;  %v3079_v54 = vpop.permute.xlu1 %3078 }
 0x182   : > { %2460 = vmatmul.mubr.msk.bf16.gmra.mrb[8].mxu1 %vm1679_vm12, %v1656_v4  ;;  %v3081_v23 = vunpack.i.h.bf16 %v3079_v54  ;;  %v3080_v61 = vunpack.i.l.bf16 %v3079_v54  ;;  %v1474_v33 = vsel %vm1445_vm6, %v4846_v2, %v3065_v51  ;;  %v1475_v34 = vsel %vm1445_vm6, %v4847_v60, %v3066_v56 }
 0x183   : > { %v3074_v63 = vpop.permute.xlu0 %3073 }
 0x184   : > { %v3075_v14 = vunpack.i.l.bf16 %v3074_v63  ;;  %v1509_v26 = vsel %vm1478_vm7, %v1476_v21, %v3080_v61  ;;  %v1510_v22 = vsel %vm1478_vm7, %v1477_v52, %v3081_v23  ;;  %v3076_v57 = vunpack.i.h.bf16 %v3074_v63 }
 0x185   : > { %v3089_v31 = vpop.permute.xlu1 %3088 }
 0x186   : > { %v3091_v36 = vunpack.i.h.bf16 %v3089_v31  ;;  %v3090_v47 = vunpack.i.l.bf16 %v3089_v31  ;;  %v1507_v58 = vsel %vm1478_vm7, %v1474_v33, %v3075_v14  ;;  %v1508_v20 = vsel %vm1478_vm7, %v1475_v34, %v3076_v57 }
 0x187   : > { %v3084_v42 = vpop.permute.xlu0 %3083 }
 0x188   : > { %v3085_v10 = vunpack.i.l.bf16 %v3084_v42  ;;  %v1542_v5 = vsel %vm1511_vm8, %v1509_v26, %v3090_v47  ;;  %v1543_v43 = vsel %vm1511_vm8, %v1510_v22, %v3091_v36  ;;  %v3086_v25 = vunpack.i.h.bf16 %v3084_v42 }
 0x189   : > { %v1163_v38 = vpop.permute.xlu1 %1162 }
 0x18a   : > { %v1575_v11 = vsel %vm1544_vm9, %v1542_v5, %v1163_v38  ;;  %v1576_v50 = vsel %vm1544_vm9, %v1543_v43, %v1163_v38  ;;  %v1540_v37 = vsel %vm1511_vm8, %v1507_v58, %v3085_v10  ;;  %v1541_v27 = vsel %vm1511_vm8, %v1508_v20, %v3086_v25 }
 0x18b   : > { %v3094_v13 = vpop.permute.xlu0 %3093 }
 0x18c   : > { %v3095_v16 = vunpack.i.l.bf16 %v3094_v13  ;;  %v3096_v3 = vunpack.i.h.bf16 %v3094_v13 }
 0x18d   : > { %v1256_v44 = vpop.permute.xlu1 %1255 }
 0x18e   : > { %v1608_v7 = vsel %vm1577_vm10, %v1575_v11, %v1256_v44  ;;  %v1609_v29 = vsel %vm1577_vm10, %v1576_v50, %v1256_v44  ;;  %v1573_v12 = vsel %vm1544_vm9, %v1540_v37, %v3095_v16  ;;  %v1574_v39 = vsel %vm1544_vm9, %v1541_v27, %v3096_v3 }
 0x18f   : > { %v3099_v30 = vpop.permute.xlu0 %3098 }
 0x190   : > { %v3101_v6 = vunpack.i.h.bf16 %v3099_v30  ;;  %v3100_v9 = vunpack.i.l.bf16 %v3099_v30 }
 0x191   : > { %v1349_v1 = vpop.permute.xlu1 %1348 }
 0x192   : > { %v1641_v46 = vsel %vm1610_vm11, %v1608_v7, %v1349_v1  ;;  %v1642_v19 = vsel %vm1610_vm11, %v1609_v29, %v1349_v1  ;;  %v1606_v24 = vsel %vm1577_vm10, %v1573_v12, %v3100_v9  ;;  %v1607_v32 = vsel %vm1577_vm10, %v1574_v39, %v3101_v6 }
 0x193   : > { %v3104_v8 = vpop.permute.xlu0 %3103  ;;  %v1658_v62 = vpack.c.bf16 %v1642_v19, %v1641_v46 }
 0x194   : > { %v3106_v59 = vunpack.i.h.bf16 %v3104_v8  ;;  %v3105_v41 = vunpack.i.l.bf16 %v3104_v8 }
 0x196   : > { %v1639_v48 = vsel %vm1610_vm11, %v1606_v24, %v3105_v41  ;;  %v1640_v53 = vsel %vm1610_vm11, %v1607_v32, %v3106_v59 }
 0x197   : > { %v1657_v28 = vpack.c.bf16 %v1640_v53, %v1639_v48 }
 0x199   : > { %2463 = vmatprep.mubr.msk.bf16.mxu1 %vm1679_vm12, %v1657_v28 }
 0x19a   : > { %2464 = vmatmul.mubr.msk.bf16.gmra.mrb[12].mxu1 %vm1679_vm12, %v1658_v62 }
 0x1cc   : > { %v2437_v4 = vpop.f32.mrb[0].mxu0 }
 0x1cd   : > { %v2380_v35 = vpack.c.bf16 %v2437_v4, %v2437_v4  ;;  %v1766_v49 = vpop.f32.mrb[1].mxu0  ;;  %v2125_v54 = vmul.f32 %v2437_v4, %v2437_v4  ;;  %v2057_v36 = vsel %vm1610_vm11, %v2437_v4, 0.0 }
 0x1ce   : > { %v2378_v15 = vpack.c.bf16 %v1766_v49, %v1766_v49  ;;  %v2123_v17 = vmul.f32 %v1766_v49, %v1766_v49  ;;  %v2438_v45 = vpop.f32.mrb[2].mxu0  ;;  %v2054_v42 = vsel %vm1610_vm11, %v1766_v49, 0.0 }
 0x1cf   : > { %2024 = vst.msk [vmem:[%s4507_s14 + $0x8] sm:$0xf] %vm2021_vm13, %v2380_v35  ;;  %v2381_v63 = vpack.c.bf16 %v2438_v45, %v2438_v45  ;;  %v1769_v31 = vpop.f32.mrb[3].mxu0  ;;  %v2126_v38 = vmul.f32 %v2438_v45, %v2438_v45  ;;  %v2158_v52 = vsel %vm1610_vm11, %v2125_v54, 0.0  ;;  %v2059_v0 = vsel %vm1610_vm11, %v2438_v45, 0.0 }
 0x1d0   : > { %2022 = vst.msk [vmem:[%s4507_s14] sm:$0xf] %vm2021_vm13, %v2378_v15  ;;  %v2379_v18 = vpack.c.bf16 %v1769_v31, %v1769_v31  ;;  %v2055_v40 = vsel %vm1610_vm11, %v1769_v31, 0.0  ;;  %v2124_v23 = vmul.f32 %v1769_v31, %v1769_v31  ;;  %v2155_v47 = vsel %vm1610_vm11, %v2123_v17, 0.0 }
 0x1d1   : > { %2025 = vst.msk [vmem:[%s4507_s14 + $0xc] sm:$0xf] %vm2021_vm13, %v2381_v63  ;;  %v2056_v61 = vadd.f32 %v2055_v40, %v2054_v42  ;;  %v2160_v14 = vsel %vm1610_vm11, %v2126_v38, 0.0 }
 0x1d2   : > { %2023 = vst.msk [vmem:[%s4507_s14 + $0x4] sm:$0xf] %vm2021_vm13, %v2379_v18  ;;  %v2156_v51 = vsel %vm1610_vm11, %v2124_v23, 0.0 }
 0x1d3   : > { %v2058_v13 = vadd.f32 %v2057_v36, %v2056_v61  ;;  %v2157_v55 = vadd.f32 %v2156_v51, %v2155_v47 }
 0x1d5   : > { %v2159_v21 = vadd.f32 %v2158_v52, %v2157_v55  ;;  %v2060_v56 = vadd.f32 %v2059_v0, %v2058_v13 }
 0x1d7   : > { %v2161_v26 = vadd.f32 %v2160_v14, %v2159_v21 }
 0x1e0   : > { %v2441_v22 = vpop.f32.mrb[4].mxu0 }
 0x1e1   : > { %v2384_v57 = vpack.c.bf16 %v2441_v22, %v2441_v22  ;;  %v1782_v10 = vpop.f32.mrb[5].mxu0  ;;  %v2129_v58 = vmul.f32 %v2441_v22, %v2441_v22  ;;  %v2065_v6 = vsel %vm1610_vm11, %v2441_v22, 0.0 }
 0x1e2   : > { %v2382_v5 = vpack.c.bf16 %v1782_v10, %v1782_v10  ;;  %v2061_v43 = vsel %vm1610_vm11, %v1782_v10, 0.0  ;;  %v2127_v44 = vmul.f32 %v1782_v10, %v1782_v10  ;;  %v2442_v2 = vpop.f32.mrb[6].mxu0 }
 0x1e3   : > { %2028 = vst.msk [vmem:[%s4507_s14 + $0x18] sm:$0xf] %vm2021_vm13, %v2384_v57  ;;  %v2062_v33 = vadd.f32 %v2061_v43, %v2060_v56  ;;  %v2385_v25 = vpack.c.bf16 %v2442_v2, %v2442_v2  ;;  %v1785_v16 = vpop.f32.mrb[7].mxu0  ;;  %v2130_v9 = vmul.f32 %v2442_v2, %v2442_v2  ;;  %v2067_v7 = vsel %vm1610_vm11, %v2442_v2, 0.0 }
 0x1e4   : > { %2026 = vst.msk [vmem:[%s4507_s14 + $0x10] sm:$0xf] %vm2021_vm13, %v2382_v5  ;;  %v2162_v30 = vsel %vm1610_vm11, %v2127_v44, 0.0  ;;  %v2383_v60 = vpack.c.bf16 %v1785_v16, %v1785_v16  ;;  %v2063_v34 = vsel %vm1610_vm11, %v1785_v16, 0.0  ;;  %v2128_v50 = vmul.f32 %v1785_v16, %v1785_v16 }
 0x1e5   : > { %v2163_v3 = vadd.f32 %v2162_v30, %v2161_v26  ;;  %2029 = vst.msk [vmem:[%s4507_s14 + $0x1c] sm:$0xf] %vm2021_vm13, %v2385_v25  ;;  %v2064_v11 = vadd.f32 %v2063_v34, %v2062_v33  ;;  %v2166_v1 = vsel %vm1610_vm11, %v2129_v58, 0.0  ;;  %v2168_v46 = vsel %vm1610_vm11, %v2130_v9, 0.0 }
 0x1e6   : > { %2027 = vst.msk [vmem:[%s4507_s14 + $0x14] sm:$0xf] %vm2021_vm13, %v2383_v60  ;;  %v2164_v37 = vsel %vm1610_vm11, %v2128_v50, 0.0 }
 0x1e7   : > { %v2066_v20 = vadd.f32 %v2065_v6, %v2064_v11  ;;  %v2165_v29 = vadd.f32 %v2164_v37, %v2163_v3 }
 0x1e9   : > { %v2068_v27 = vadd.f32 %v2067_v7, %v2066_v20  ;;  %v2167_v12 = vadd.f32 %v2166_v1, %v2165_v29 }
 0x1eb   : > { %v2169_v19 = vadd.f32 %v2168_v46, %v2167_v12 }
 0x1f5   : > { %v2445_v8 = vpop.f32.mrb[8].mxu0 }
 0x1f6   : > { %v2388_v39 = vpack.c.bf16 %v2445_v8, %v2445_v8  ;;  %v1798_v62 = vpop.f32.mrb[9].mxu0  ;;  %v2133_v15 = vmul.f32 %v2445_v8, %v2445_v8  ;;  %v2073_v63 = vsel %vm1610_vm11, %v2445_v8, 0.0 }
 0x1f7   : > { %v2386_v59 = vpack.c.bf16 %v1798_v62, %v1798_v62  ;;  %v2069_v41 = vsel %vm1610_vm11, %v1798_v62, 0.0  ;;  %v2131_v24 = vmul.f32 %v1798_v62, %v1798_v62  ;;  %v2446_v32 = vpop.f32.mrb[10].mxu0 }
 0x1f8   : > { %2032 = vst.msk [vmem:[%s4507_s14 + $0x28] sm:$0xf] %vm2021_vm13, %v2388_v39  ;;  %v2070_v48 = vadd.f32 %v2069_v41, %v2068_v27  ;;  %v2389_v53 = vpack.c.bf16 %v2446_v32, %v2446_v32  ;;  %v1801_v28 = vpop.f32.mrb[11].mxu0  ;;  %v2134_v31 = vmul.f32 %v2446_v32, %v2446_v32  ;;  %v2075_v40 = vsel %vm1610_vm11, %v2446_v32, 0.0 }
 0x1f9   : > { %2030 = vst.msk [vmem:[%s4507_s14 + $0x20] sm:$0xf] %vm2021_vm13, %v2386_v59  ;;  %v2170_v4 = vsel %vm1610_vm11, %v2131_v24, 0.0  ;;  %v2387_v35 = vpack.c.bf16 %v1801_v28, %v1801_v28  ;;  %v2071_v49 = vsel %vm1610_vm11, %v1801_v28, 0.0  ;;  %v2132_v54 = vmul.f32 %v1801_v28, %v1801_v28 }
 0x1fa   : > { %v2171_v17 = vadd.f32 %v2170_v4, %v2169_v19  ;;  %2033 = vst.msk [vmem:[%s4507_s14 + $0x2c] sm:$0xf] %vm2021_vm13, %v2389_v53  ;;  %v2072_v45 = vadd.f32 %v2071_v49, %v2070_v48  ;;  %v2174_v61 = vsel %vm1610_vm11, %v2133_v15, 0.0  ;;  %v2176_v38 = vsel %vm1610_vm11, %v2134_v31, 0.0 }
 0x1fb   : > { %2031 = vst.msk [vmem:[%s4507_s14 + $0x24] sm:$0xf] %vm2021_vm13, %v2387_v35  ;;  %v2172_v18 = vsel %vm1610_vm11, %v2132_v54, 0.0 }
 0x1fc   : > { %v2074_v42 = vadd.f32 %v2073_v63, %v2072_v45  ;;  %v2173_v23 = vadd.f32 %v2172_v18, %v2171_v17 }
 0x1fe   : > { %v2076_v36 = vadd.f32 %v2075_v40, %v2074_v42  ;;  %v2175_v47 = vadd.f32 %v2174_v61, %v2173_v23 }
 0x200   : > { %v2177_v51 = vadd.f32 %v2176_v38, %v2175_v47 }
 0x20d   : > { %v2449_v13 = vpop.f32.mrb[12].mxu0 }
 0x20e   : > { %v2392_v55 = vpack.c.bf16 %v2449_v13, %v2449_v13  ;;  %v1814_v52 = vpop.f32.mrb[13].mxu0  ;;  %v2137_v44 = vmul.f32 %v2449_v13, %v2449_v13  ;;  %v2081_v16 = vsel %vm1610_vm11, %v2449_v13, 0.0 }
 0x20f   : > { %v2390_v0 = vpack.c.bf16 %v1814_v52, %v1814_v52  ;;  %v2077_v21 = vsel %vm1610_vm11, %v1814_v52, 0.0  ;;  %v2135_v56 = vmul.f32 %v1814_v52, %v1814_v52  ;;  %v2450_v14 = vpop.f32.mrb[14].mxu0 }
 0x210   : > { %2036 = vst.msk [vmem:[%s4507_s14 + $0x38] sm:$0xf] %vm2021_vm13, %v2392_v55  ;;  %v2078_v26 = vadd.f32 %v2077_v21, %v2076_v36  ;;  %v2393_v22 = vpack.c.bf16 %v2450_v14, %v2450_v14  ;;  %v1817_v57 = vpop.f32.mrb[15].mxu0  ;;  %v2138_v30 = vmul.f32 %v2450_v14, %v2450_v14  ;;  %v2083_v58 = vsel %vm1610_vm11, %v2450_v14, 0.0 }
 0x211   : > { %2034 = vst.msk [vmem:[%s4507_s14 + $0x30] sm:$0xf] %vm2021_vm13, %v2390_v0  ;;  %v2178_v10 = vsel %vm1610_vm11, %v2135_v56, 0.0  ;;  %v2391_v5 = vpack.c.bf16 %v1817_v57, %v1817_v57  ;;  %v2079_v43 = vsel %vm1610_vm11, %v1817_v57, 0.0  ;;  %v2136_v25 = vmul.f32 %v1817_v57, %v1817_v57 }
 0x212   : > { %v2179_v2 = vadd.f32 %v2178_v10, %v2177_v51  ;;  %2037 = vst.msk [vmem:[%s4507_s14 + $0x3c] sm:$0xf] %vm2021_vm13, %v2393_v22  ;;  %v2080_v33 = vadd.f32 %v2079_v43, %v2078_v26  ;;  %v2182_v11 = vsel %vm1610_vm11, %v2137_v44, 0.0  ;;  %v2184_v9 = vsel %vm1610_vm11, %v2138_v30, 0.0 }
 0x213   : > { %2035 = vst.msk [vmem:[%s4507_s14 + $0x34] sm:$0xf] %vm2021_vm13, %v2391_v5  ;;  %v2180_v34 = vsel %vm1610_vm11, %v2136_v25, 0.0 }
 0x214   : > { %v2082_v60 = vadd.f32 %v2081_v16, %v2080_v33  ;;  %v2181_v3 = vadd.f32 %v2180_v34, %v2179_v2 }
 0x216   : > { %v2084_v50 = vadd.f32 %v2083_v58, %v2082_v60  ;;  %v2183_v6 = vadd.f32 %v2182_v11, %v2181_v3 }
 0x218   : > { %v2185_v20 = vadd.f32 %v2184_v9, %v2183_v6 }
 0x225   : > { %v2453_v37 = vpop.f32.mrb[0].mxu1 }
 0x226   : > { %v2396_v7 = vpack.c.bf16 %v2453_v37, %v2453_v37  ;;  %v1830_v29 = vpop.f32.mrb[1].mxu1  ;;  %v2141_v24 = vmul.f32 %v2453_v37, %v2453_v37  ;;  %v2089_v28 = vsel %vm1610_vm11, %v2453_v37, 0.0 }
 0x227   : > { %v2394_v1 = vpack.c.bf16 %v1830_v29, %v1830_v29  ;;  %v2085_v27 = vsel %vm1610_vm11, %v1830_v29, 0.0  ;;  %v2139_v12 = vmul.f32 %v1830_v29, %v1830_v29  ;;  %v2454_v46 = vpop.f32.mrb[2].mxu1 }
 0x228   : > { %2040 = vst.msk [vmem:[%s4507_s14 + $0x48] sm:$0xf] %vm2021_vm13, %v2396_v7  ;;  %v2086_v19 = vadd.f32 %v2085_v27, %v2084_v50  ;;  %v2397_v8 = vpack.c.bf16 %v2454_v46, %v2454_v46  ;;  %v1833_v39 = vpop.f32.mrb[3].mxu1  ;;  %v2142_v4 = vmul.f32 %v2454_v46, %v2454_v46  ;;  %v2091_v15 = vsel %vm1610_vm11, %v2454_v46, 0.0 }
 0x229   : > { %2038 = vst.msk [vmem:[%s4507_s14 + $0x40] sm:$0xf] %vm2021_vm13, %v2394_v1  ;;  %v2186_v62 = vsel %vm1610_vm11, %v2139_v12, 0.0  ;;  %v2395_v59 = vpack.c.bf16 %v1833_v39, %v1833_v39  ;;  %v2087_v41 = vsel %vm1610_vm11, %v1833_v39, 0.0  ;;  %v2140_v53 = vmul.f32 %v1833_v39, %v1833_v39 }
 0x22a   : > { %v2187_v32 = vadd.f32 %v2186_v62, %v2185_v20  ;;  %2041 = vst.msk [vmem:[%s4507_s14 + $0x4c] sm:$0xf] %vm2021_vm13, %v2397_v8  ;;  %v2088_v48 = vadd.f32 %v2087_v41, %v2086_v19  ;;  %v2190_v45 = vsel %vm1610_vm11, %v2141_v24, 0.0  ;;  %v2192_v31 = vsel %vm1610_vm11, %v2142_v4, 0.0 }
 0x22b   : > { %2039 = vst.msk [vmem:[%s4507_s14 + $0x44] sm:$0xf] %vm2021_vm13, %v2395_v59  ;;  %v2188_v49 = vsel %vm1610_vm11, %v2140_v53, 0.0 }
 0x22c   : > { %v2090_v35 = vadd.f32 %v2089_v28, %v2088_v48  ;;  %v2189_v17 = vadd.f32 %v2188_v49, %v2187_v32 }
 0x22e   : > { %v2092_v54 = vadd.f32 %v2091_v15, %v2090_v35  ;;  %v2191_v63 = vadd.f32 %v2190_v45, %v2189_v17 }
 0x230   : > { %v2193_v42 = vadd.f32 %v2192_v31, %v2191_v63 }
 0x23d   : > { %v2457_v18 = vpop.f32.mrb[4].mxu1 }
 0x23e   : > { %v2400_v40 = vpack.c.bf16 %v2457_v18, %v2457_v18  ;;  %v1846_v23 = vpop.f32.mrb[5].mxu1  ;;  %v2145_v56 = vmul.f32 %v2457_v18, %v2457_v18  ;;  %v2097_v57 = vsel %vm1610_vm11, %v2457_v18, 0.0 }
 0x23f   : > { %v2398_v61 = vpack.c.bf16 %v1846_v23, %v1846_v23  ;;  %v2093_v36 = vsel %vm1610_vm11, %v1846_v23, 0.0  ;;  %v2143_v47 = vmul.f32 %v1846_v23, %v1846_v23  ;;  %v2458_v38 = vpop.f32.mrb[6].mxu1 }
 0x240   : > { %2044 = vst.msk [vmem:[%s4507_s14 + $0x58] sm:$0xf] %vm2021_vm13, %v2400_v40  ;;  %v2094_v51 = vadd.f32 %v2093_v36, %v2092_v54  ;;  %v2401_v13 = vpack.c.bf16 %v2458_v38, %v2458_v38  ;;  %v1849_v55 = vpop.f32.mrb[7].mxu1  ;;  %v2146_v10 = vmul.f32 %v2458_v38, %v2458_v38  ;;  %v2099_v44 = vsel %vm1610_vm11, %v2458_v38, 0.0 }
 0x241   : > { %2042 = vst.msk [vmem:[%s4507_s14 + $0x50] sm:$0xf] %vm2021_vm13, %v2398_v61  ;;  %v2194_v52 = vsel %vm1610_vm11, %v2143_v47, 0.0  ;;  %v2399_v0 = vpack.c.bf16 %v1849_v55, %v1849_v55  ;;  %v2095_v21 = vsel %vm1610_vm11, %v1849_v55, 0.0  ;;  %v2144_v22 = vmul.f32 %v1849_v55, %v1849_v55 }
 0x242   : > { %v2195_v14 = vadd.f32 %v2194_v52, %v2193_v42  ;;  %2045 = vst.msk [vmem:[%s4507_s14 + $0x5c] sm:$0xf] %vm2021_vm13, %v2401_v13  ;;  %v2096_v26 = vadd.f32 %v2095_v21, %v2094_v51  ;;  %v2198_v33 = vsel %vm1610_vm11, %v2145_v56, 0.0  ;;  %v2200_v30 = vsel %vm1610_vm11, %v2146_v10, 0.0 }
 0x243   : > { %2043 = vst.msk [vmem:[%s4507_s14 + $0x54] sm:$0xf] %vm2021_vm13, %v2399_v0  ;;  %v2196_v43 = vsel %vm1610_vm11, %v2144_v22, 0.0 }
 0x244   : > { %v2098_v5 = vadd.f32 %v2097_v57, %v2096_v26  ;;  %v2197_v2 = vadd.f32 %v2196_v43, %v2195_v14 }
 0x246   : > { %v2100_v25 = vadd.f32 %v2099_v44, %v2098_v5  ;;  %v2199_v16 = vadd.f32 %v2198_v33, %v2197_v2 }
 0x248   : > { %v2201_v60 = vadd.f32 %v2200_v30, %v2199_v16 }
 0x255   : > { %v2461_v34 = vpop.f32.mrb[8].mxu1 }
 0x256   : > { %v2404_v58 = vpack.c.bf16 %v2461_v34, %v2461_v34  ;;  %v1862_v3 = vpop.f32.mrb[9].mxu1  ;;  %v2149_v12 = vmul.f32 %v2461_v34, %v2461_v34  ;;  %v2105_v39 = vsel %vm1610_vm11, %v2461_v34, 0.0 }
 0x257   : > { %v2402_v11 = vpack.c.bf16 %v1862_v3, %v1862_v3  ;;  %v2101_v50 = vsel %vm1610_vm11, %v1862_v3, 0.0  ;;  %v2147_v6 = vmul.f32 %v1862_v3, %v1862_v3  ;;  %v2462_v9 = vpop.f32.mrb[10].mxu1 }
 0x258   : > { %2048 = vst.msk [vmem:[%s4507_s14 + $0x68] sm:$0xf] %vm2021_vm13, %v2404_v58  ;;  %v2102_v20 = vadd.f32 %v2101_v50, %v2100_v25  ;;  %v2405_v37 = vpack.c.bf16 %v2462_v9, %v2462_v9  ;;  %v1865_v7 = vpop.f32.mrb[11].mxu1  ;;  %v2150_v62 = vmul.f32 %v2462_v9, %v2462_v9  ;;  %v2107_v24 = vsel %vm1610_vm11, %v2462_v9, 0.0 }
 0x259   : > { %2046 = vst.msk [vmem:[%s4507_s14 + $0x60] sm:$0xf] %vm2021_vm13, %v2402_v11  ;;  %v2202_v29 = vsel %vm1610_vm11, %v2147_v6, 0.0  ;;  %v2403_v1 = vpack.c.bf16 %v1865_v7, %v1865_v7  ;;  %v2103_v27 = vsel %vm1610_vm11, %v1865_v7, 0.0  ;;  %v2148_v8 = vmul.f32 %v1865_v7, %v1865_v7 }
 0x25a   : > { %v2203_v46 = vadd.f32 %v2202_v29, %v2201_v60  ;;  %2049 = vst.msk [vmem:[%s4507_s14 + $0x6c] sm:$0xf] %vm2021_vm13, %v2405_v37  ;;  %v2104_v19 = vadd.f32 %v2103_v27, %v2102_v20  ;;  %v2206_v48 = vsel %vm1610_vm11, %v2149_v12, 0.0  ;;  %v2208_v4 = vsel %vm1610_vm11, %v2150_v62, 0.0 }
 0x25b   : > { %2047 = vst.msk [vmem:[%s4507_s14 + $0x64] sm:$0xf] %vm2021_vm13, %v2403_v1  ;;  %v2204_v41 = vsel %vm1610_vm11, %v2148_v8, 0.0 }
 0x25c   : > { %v2106_v59 = vadd.f32 %v2105_v39, %v2104_v19  ;;  %v2205_v32 = vadd.f32 %v2204_v41, %v2203_v46 }
 0x25e   : > { %v2108_v53 = vadd.f32 %v2107_v24, %v2106_v59  ;;  %v2207_v28 = vadd.f32 %v2206_v48, %v2205_v32 }
 0x260   : > { %v2209_v35 = vadd.f32 %v2208_v4, %v2207_v28 }
 0x26d   : > { %v2465_v49 = vpop.f32.mrb[12].mxu1 }
 0x26e   : > { %v2408_v15 = vpack.c.bf16 %v2465_v49, %v2465_v49  ;;  %v1878_v17 = vpop.f32.mrb[13].mxu1  ;;  %v2153_v47 = vmul.f32 %v2465_v49, %v2465_v49  ;;  %v2113_v55 = vsel %vm1610_vm11, %v2465_v49, 0.0 }
 0x26f   : > { %v2406_v45 = vpack.c.bf16 %v1878_v17, %v1878_v17  ;;  %v2109_v54 = vsel %vm1610_vm11, %v1878_v17, 0.0  ;;  %v2151_v63 = vmul.f32 %v1878_v17, %v1878_v17  ;;  %v2466_v31 = vpop.f32.mrb[14].mxu1 }
 0x270   : > { %2052 = vst.msk [vmem:[%s4507_s14 + $0x78] sm:$0xf] %vm2021_vm13, %v2408_v15  ;;  %v2110_v42 = vadd.f32 %v2109_v54, %v2108_v53  ;;  %v2409_v18 = vpack.c.bf16 %v2466_v31, %v2466_v31  ;;  %v1881_v40 = vpop.f32.mrb[15].mxu1  ;;  %v2154_v52 = vmul.f32 %v2466_v31, %v2466_v31  ;;  %v2115_v56 = vsel %vm1610_vm11, %v2466_v31, 0.0 }
 0x271   : > { %2050 = vst.msk [vmem:[%s4507_s14 + $0x70] sm:$0xf] %vm2021_vm13, %v2406_v45  ;;  %v2210_v23 = vsel %vm1610_vm11, %v2151_v63, 0.0  ;;  %v2407_v61 = vpack.c.bf16 %v1881_v40, %v1881_v40  ;;  %v2111_v36 = vsel %vm1610_vm11, %v1881_v40, 0.0  ;;  %v2152_v13 = vmul.f32 %v1881_v40, %v1881_v40 }
 0x272   : > { %v2211_v38 = vadd.f32 %v2210_v23, %v2209_v35  ;;  %2053 = vst.msk [vmem:[%s4507_s14 + $0x7c] sm:$0xf] %vm2021_vm13, %v2409_v18  ;;  %v2112_v51 = vadd.f32 %v2111_v36, %v2110_v42  ;;  %v2214_v26 = vsel %vm1610_vm11, %v2153_v47, 0.0  ;;  %v2216_v10 = vsel %vm1610_vm11, %v2154_v52, 0.0 }
 0x273   : > { %2051 = vst.msk [vmem:[%s4507_s14 + $0x74] sm:$0xf] %vm2021_vm13, %v2407_v61  ;;  %v2212_v21 = vsel %vm1610_vm11, %v2152_v13, 0.0 }
 0x274   : > { %v2114_v0 = vadd.f32 %v2113_v55, %v2112_v51  ;;  %v2213_v14 = vadd.f32 %v2212_v21, %v2211_v38 }
 0x276   : > { %v2116_v22 = vadd.f32 %v2115_v56, %v2114_v0  ;;  %v2215_v57 = vadd.f32 %v2214_v26, %v2213_v14 }
 0x278   : > { %v2117_v5 = vrot.slane %v2116_v22, 4  ;;  %v2217_v43 = vadd.f32 %v2216_v10, %v2215_v57 }
 0x27a   : > { %v2118_v44 = vadd.f32 %v2117_v5, %v2116_v22  ;;  %v2218_v2 = vrot.slane %v2217_v43, 4 }
 0x27c   : > { %v2119_v33 = vrot.slane %v2118_v44, 2  ;;  %v2219_v25 = vadd.f32 %v2218_v2, %v2217_v43 }
 0x27e   : > { %v2120_v16 = vadd.f32 %v2119_v33, %v2118_v44  ;;  %v2220_v30 = vrot.slane %v2219_v25, 2 }
 0x280   : > { %v2121_v60 = vrot.slane %v2120_v16, 1  ;;  %v2221_v34 = vadd.f32 %v2220_v30, %v2219_v25 }
 0x282   : > { %v2222_v58 = vrot.slane %v2221_v34, 1  ;;  %v2122_v3 = vadd.f32 %v2121_v60, %v2120_v16 }
 0x284   : > { %v2223_v11 = vadd.f32 %v2222_v58, %v2221_v34 }
 0x286   : > { %v2224_v50 = vsel %vm301_vm0, %v2122_v3, %v2223_v11 }
 0x287   : > { %2226 = vst.msk [vmem:[%s235_s3] sm:$0x3] %vm2225_vm14, %v2224_v50 }
 0x288 PF: > { %s16_s18 = sadd.s32 1, %s3116_s18  }
 0x289   : > { %p13_p4 = scmp.ge.s32.totalorder %s16_s18, 4  }
 0x28b   :  { %15 = sbr.rel (!%p13_p4) target bundleno = 1 (0x1), region = 78 }

// kernel: conv_block_forward.3
= control target key start
LH: loop header
LB: loop body
LE: loop exit
PB: predicated region body
PF: predicated region fallthrough
CT: control target
= control target key end

     0   :  { %s3293_s18 = smov 0   ;;  %s4813_s0 = inlined_call_operand.vmem [shape: bf16[2,16,16,32], index: 0, kind: input, shape index: {}]   ;;  %s4814_s1 = inlined_call_operand.vmem [shape: bf16[288,32], index: 1, kind: input, shape index: {}]   ;;  %s4815_s2 = inlined_call_operand.vmem [shape: f32[1,32], index: 2, kind: input, shape index: {}]   ;;  %s4816_s3 = inlined_call_operand.vmem [shape: f32[1,32], index: 3, kind: input, shape index: {}]   ;;  %s4817_s4 = inlined_call_operand.vmem [shape: f32[2,16,16,32], index: 4, kind: output, shape index: {0}]   ;;  %s4818_s5 = inlined_call_operand.vmem [shape: f32[2,2,32], index: 5, kind: output, shape index: {1}]  }
   0x1 LB: > { %s2443_s19 = sadd.s32 4294967295, %s3257_s18   ;;  %p2447_p0 = scmp.ge.s32.totalorder %s3257_s18, 1  ;;  %s3257_s18 = sphi %s3293_s18, %s16_s18  }
   0x2   : > { %p190_p1 = scmp.lt.s32.totalorder %s3257_s18, 3 }
   0x4   : > { %p191_p2 = pnand %p2447_p0, %p190_p1 }
   0x6   : > { %194 = sbr.rel (%p191_p2) target bundleno = 598 (0x256), region = 36 }
   0xd   : > { %p222_p3 = scmp.lt.s32.totalorder %s2443_s19, 1  ;;  %v3231_v0 = vld [vmem:[%s4814_s1 + $0x40] sm:$0xff]   ;;  %v3233_v2 = vld [vmem:[%s4814_s1 + $0x48] sm:$0xff]   ;;  %vm443_vm0 = vcmask 1040384   ;;  %v4819_v16 = vmov 0.0   ;;  %vm773_vm1 = vcmask 1045504  }
   0xe   : > { %v3232_v1 = vld [vmem:[%s4814_s1] sm:$0xff]   ;;  %2572 = vmatprep.subr.bf16.mxu0 %v3231_v0  ;;  %2738 = vmatprep.subr.bf16.mxu1 %v3231_v0  ;;  %v3336_v17 = vrot.slane %v4819_v16, 2  ;;  %v3347_v26 = vrot.slane %v4819_v16, 1  ;;  %v3234_v27 = vld [vmem:[%s4814_s1 + $0x8] sm:$0xff]   ;;  %v3235_v32 = vld [vmem:[%s4814_s1 + $0x50] sm:$0xff]   ;;  %vm602_vm2 = vcmask 1046528  }
   0xf   : > { %s4993_s19 = smov (!%p222_p3, %s2443_s19), 1  ;;  %v3316_v3 = vld [vmem:[%s4815_s2] ss:$0 sm:$0xff]  ;;  %2573 = vmatpush3.bf16.msra.mxu0 %v3232_v1  ;;  %2746 = vmatpush3.bf16.msra.mxu1 %v3232_v1  ;;  %v3236_v37 = vld [vmem:[%s4814_s1 + $0x10] sm:$0xff]   ;;  %v3237_v42 = vld [vmem:[%s4814_s1 + $0x58] sm:$0xff]   ;;  %s3260_s25 = smov 64  }
  0x10   : > { %s2491_s26 = sshll.u32 %s4993_s19, 7  ;;  %2574 = vmatprep.subr.bf16.mxu0 %v3233_v2  ;;  %2739 = vmatprep.subr.bf16.mxu1 %v3233_v2  ;;  %v3332_v12 = vld [vmem:[%s4816_s3] ss:$0 sm:$0xff]  ;;  %4873 = vst [vmem:[#allocation2_spill] sm:$0xff] %v3336_v17  ;;  %v3238_v54 = vld [vmem:[%s4814_s1 + $0x18] sm:$0xff]   ;;  %s3261_s28 = smov 32  }
  0x11   : > { %s3321_s6 = scalar_lea.vmem %s4813_s0, %s2491_s26  ;;  %v3239_v55 = vld [vmem:[%s4814_s1 + $0x60] sm:$0xff]   ;;  %s3262_s9 = smov 96   ;;  %vm1397_vm3 = vcmask 261120   ;;  %vm1429_vm4 = vcmask 523264   ;;  %vm1461_vm5 = vcmask 785408   ;;  %vm2355_vm6 = vcmask 254976  }
  0x12   : > { %v2557_v4 = vld [vmem:[%s3321_s6 + $0x8] sm:$0xff]   ;;  %v2494_v5 = vld [vmem:[%s3321_s6] sm:$0xff]   ;;  %v2558_v6 = vld [vmem:[%s3321_s6 + $0x10] sm:$0xff]   ;;  %s2452_s29 = sshll.u32 %s4993_s19, 1 }
  0x13   : > { %v2499_v7 = vunpack.c.l.bf16 %v2557_v4  ;;  %v2500_v8 = vunpack.c.h.bf16 %v2557_v4  ;;  %v2495_v9 = vunpack.c.l.bf16 %v2494_v5  ;;  %v2496_v10 = vunpack.c.h.bf16 %v2494_v5  ;;  %v3327_v11 = vld [vmem:[%s3321_s6 + $0x68] sm:$0xff]   ;;  %v2568_v22 = vld [vmem:[%s3321_s6 + $0x60] sm:$0xff]   ;;  %2575 = vmatpush3.bf16.msra.mxu0 %v3234_v27  ;;  %2747 = vmatpush3.bf16.msra.mxu1 %v3234_v27  ;;  %s235_s8 = scalar_lea.vmem %s4818_s5, %s2452_s29 }
  0x14   : > { %v2503_v13 = vunpack.c.l.bf16 %v2558_v6  ;;  %v2504_v14 = vunpack.c.h.bf16 %v2558_v6  ;;  %v2547_v15 = vunpack.c.l.bf16 %v3327_v11  ;;  %v2543_v36 = vunpack.c.l.bf16 %v2568_v22  ;;  %2576 = vmatprep.subr.bf16.mxu0 %v3235_v32  ;;  %2740 = vmatprep.subr.bf16.mxu1 %v3235_v32  ;;  %v3240_v5 = vld [vmem:[%s4814_s1 + $0x20] sm:$0xff]  }
  0x15   : > { %v311_v18 = vmul.f32 %v2499_v7, %v3316_v3  ;;  %v312_v19 = vmul.f32 %v2500_v8, %v3316_v3  ;;  %v309_v20 = vmul.f32 %v2495_v9, %v3316_v3  ;;  %v310_v21 = vmul.f32 %v2496_v10, %v3316_v3 }
  0x16   : > { %v313_v23 = vmul.f32 %v2503_v13, %v3316_v3  ;;  %v314_v24 = vmul.f32 %v2504_v14, %v3316_v3  ;;  %v335_v25 = vmul.f32 %v2547_v15, %v3316_v3  ;;  %v2544_v46 = vunpack.c.h.bf16 %v2568_v22 }
  0x17   : > { %v349_v28 = vadd.f32 %v3332_v12, %v311_v18  ;;  %v350_v29 = vadd.f32 %v3332_v12, %v312_v19  ;;  %v347_v30 = vadd.f32 %v3332_v12, %v309_v20  ;;  %v348_v31 = vadd.f32 %v3332_v12, %v310_v21  ;;  %2577 = vmatpush3.bf16.msra.mxu0 %v3236_v37  ;;  %v3241_v18 = vld [vmem:[%s4814_s1 + $0x68] sm:$0xff]  }
  0x18   : > { %v351_v33 = vadd.f32 %v3332_v12, %v313_v23  ;;  %v352_v34 = vadd.f32 %v3332_v12, %v314_v24  ;;  %v373_v35 = vadd.f32 %v3332_v12, %v335_v25  ;;  %v333_v53 = vmul.f32 %v2543_v36, %v3316_v3  ;;  %2748 = vmatpush3.bf16.msra.mxu1 %v3236_v37 }
  0x19   : > { %v381_v38 = vmax.f32 %v349_v28, 0.0  ;;  %v382_v39 = vmax.f32 %v350_v29, 0.0  ;;  %v379_v40 = vmax.f32 %v347_v30, 0.0  ;;  %v380_v41 = vmax.f32 %v348_v31, 0.0  ;;  %2578 = vmatprep.subr.bf16.mxu0 %v3237_v42  ;;  %2741 = vmatprep.subr.bf16.mxu1 %v3237_v42  ;;  %v2567_v28 = vld [vmem:[%s3321_s6 + $0x58] sm:$0xff]  }
  0x1a   : > { %v383_v43 = vmax.f32 %v351_v33, 0.0  ;;  %v384_v44 = vmax.f32 %v352_v34, 0.0  ;;  %v405_v45 = vmax.f32 %v373_v35, 0.0  ;;  %v334_v63 = vmul.f32 %v2544_v46, %v3316_v3  ;;  %v3242_v33 = vld [vmem:[%s4814_s1 + $0x28] sm:$0xff]  }
  0x1b   : > { %v447_v47 = vrot.slane %v381_v38, 7  ;;  %v448_v48 = vrot.slane %v382_v39, 7  ;;  %v444_v49 = vrot.slane %v379_v40, 7  ;;  %v445_v50 = vrot.slane %v380_v41, 7  ;;  %2579 = vmatpush3.bf16.msra.mxu0 %v3238_v54  ;;  %v3243_v41 = vld [vmem:[%s4814_s1 + $0x70] sm:$0xff]  }
  0x1c   : > { %v450_v51 = vrot.slane %v383_v43, 7  ;;  %v3368_v52 = vrot.slane %v405_v45, 7  ;;  %v451_v61 = vrot.slane %v384_v44, 7  ;;  %2580 = vmatprep.subr.bf16.mxu0 %v3239_v55  ;;  %2749 = vmatpush3.bf16.msra.mxu1 %v3238_v54  ;;  %v2548_v19 = vunpack.c.h.bf16 %v3327_v11 }
  0x1d   : > { %v3378_v56 = vsel %vm443_vm0, %v447_v47, %v448_v48  ;;  %v3381_v57 = vsel %vm443_vm0, 0.0, %v447_v47  ;;  %v3384_v58 = vsel %vm443_vm0, %v444_v49, %v445_v50  ;;  %v3387_v59 = vsel %vm443_vm0, 0.0, %v444_v49  ;;  %2742 = vmatprep.subr.bf16.mxu1 %v3239_v55  ;;  %v3244_v55 = vld [vmem:[%s4814_s1 + $0x30] sm:$0xff]  }
  0x1e   : > { %v3391_v60 = vpack.i.bf16 %v3378_v56, %v3381_v57  ;;  %v3394_v62 = vsel %vm443_vm0, %v445_v50, 0.0  ;;  %v3399_v0 = vsel %vm443_vm0, 0.0, %v3368_v52  ;;  %v776_v1 = vrot.slane %v3387_v59, 2 }
  0x1f   : > { %4874 = vst [vmem:[#allocation3_spill] sm:$0xff] %v3399_v0  ;;  %v777_v2 = vrot.slane %v3384_v58, 2  ;;  %v779_v4 = vrot.slane %v3394_v62, 2  ;;  %v608_v6 = vrot.slane %v3394_v62, 1  ;;  %v3411_v7 = vsel %vm443_vm0, 0.0, %v450_v51  ;;  %2581 = vmatpush3.bf16.msra.mxu0 %v3240_v5 }
  0x20   : > { %2767 = vrot.lane.b32.xlu1 %v3391_v60, %s3260_s25  ;;  %4875 = vst [vmem:[#allocation4_spill] sm:$0xff] %v3411_v7  ;;  %v781_v8 = vrot.slane %v3381_v57, 2  ;;  %v782_v9 = vrot.slane %v3378_v56, 2  ;;  %v2771_v14 = vpack.i.bf16 %v3411_v7, %v3336_v17  ;;  %v556_v15 = vsel %vm443_vm0, %v448_v48, 0.0  ;;  %2582 = vmatprep.subr.bf16.mxu0 %v3241_v18 }
  0x21   : > { %v3416_v10 = vsel %vm773_vm1, %v777_v2, %v779_v4  ;;  %v3419_v13 = vsel %vm773_vm1, %v776_v1, %v777_v2  ;;  %v3429_v20 = vsel %vm443_vm0, %v450_v51, %v451_v61  ;;  %v2776_v23 = vpack.i.bf16 %v3384_v58, %v3387_v59  ;;  %2750 = vmatpush3.bf16.msra.mxu1 %v3240_v5  ;;  %v3493_v2 = vld [vmem:[%s3321_s6 + $0x18] sm:$0xff]  }
  0x22   : > { %4876 = vst [vmem:[#allocation5_spill] sm:$0xff] %v3429_v20  ;;  %v2786_v21 = vpack.i.bf16 %v3416_v10, %v3419_v13  ;;  %v3434_v22 = vsel %vm773_vm1, %v781_v8, %v782_v9  ;;  %v610_v24 = vrot.slane %v3381_v57, 1  ;;  %v611_v25 = vrot.slane %v3378_v56, 1  ;;  %2743 = vmatprep.subr.bf16.mxu1 %v3241_v18  ;;  %v3245_v4 = vld [vmem:[%s4814_s1 + $0x78] sm:$0xff]  }
  0x23   : > { %4877 = vst [vmem:[#allocation6_spill] sm:$0xff] %v3434_v22  ;;  %v613_v27 = vrot.slane %v556_v15, 1  ;;  %v2791_v29 = vpack.i.bf16 %v3434_v22, %v3347_v26  ;;  %v605_v30 = vrot.slane %v3387_v59, 1  ;;  %v606_v31 = vrot.slane %v3384_v58, 1  ;;  %2583 = vmatpush3.bf16.msra.mxu0 %v3242_v33 }
  0x24   : > { %2787 = vrot.lane.b32.xlu0 %v2786_v21, %s3261_s28  ;;  %2772 = vrot.lane.b32.xlu1 %v2771_v14, %s3260_s25  ;;  %v784_v32 = vrot.slane %v556_v15, 2  ;;  %v3451_v34 = vsel %vm602_vm2, %v610_v24, %v611_v25  ;;  %v371_v36 = vadd.f32 %v3332_v12, %v333_v53  ;;  %v372_v37 = vadd.f32 %v3332_v12, %v334_v63 }
  0x25   : > { %v3454_v35 = vsel %vm602_vm2, %v611_v25, %v613_v27  ;;  %v2816_v38 = vpack.i.bf16 %v3399_v0, %v3416_v10  ;;  %v3463_v40 = vsel %vm602_vm2, %v605_v30, %v606_v31  ;;  %v3472_v45 = vsel %vm443_vm0, %v451_v61, 0.0  ;;  %2584 = vmatprep.subr.bf16.mxu0 %v3243_v41  ;;  %2751 = vmatpush3.bf16.msra.mxu1 %v3242_v33 }
  0x26   : > { %v2796_v39 = vpack.i.bf16 %v3454_v35, %v3451_v34  ;;  %v3469_v42 = vsel %vm773_vm1, %v782_v9, %v784_v32  ;;  %v403_v43 = vmax.f32 %v371_v36, 0.0  ;;  %v404_v44 = vmax.f32 %v372_v37, 0.0  ;;  %2744 = vmatprep.subr.bf16.mxu1 %v3243_v41 }
  0x27   : > { %4878 = vst [vmem:[#allocation7_spill] sm:$0xff] %v3469_v42  ;;  %v615_v46 = vrot.slane %v3411_v7, 1  ;;  %v616_v47 = vrot.slane %v3429_v20, 1  ;;  %v618_v48 = vrot.slane %v3472_v45, 1  ;;  %v2539_v49 = vunpack.c.l.bf16 %v2567_v28  ;;  %2585 = vmatpush3.bf16.msra.mxu0 %v3244_v55 }
  0x28   : > { %2792 = vrot.lane.b32.xlu0 %v2791_v29, %s3261_s28  ;;  %2777 = vrot.lane.b32.xlu1 %v2776_v23, %s3262_s9  ;;  %v480_v50 = vrot.slane %v403_v43, 7  ;;  %v481_v51 = vrot.slane %v404_v44, 7  ;;  %v3480_v53 = vsel %vm602_vm2, %v606_v31, %v608_v6  ;;  %v2540_v54 = vunpack.c.h.bf16 %v2567_v28 }
  0x29   : > { %v2801_v61 = vpack.i.bf16 %v3463_v40, %v3469_v42  ;;  %v3488_v62 = vsel %vm602_vm2, %v615_v46, %v616_v47  ;;  %v331_v63 = vmul.f32 %v2539_v49, %v3316_v3  ;;  %v786_v1 = vrot.slane %v3411_v7, 2  ;;  %2586 = vmatprep.subr.bf16.mxu0 %v3245_v4  ;;  %2752 = vmatpush3.bf16.msra.mxu1 %v3244_v55 }
  0x2a   : > { %v3499_v5 = vsel %vm443_vm0, %v480_v50, %v481_v51  ;;  %v3502_v6 = vsel %vm443_vm0, 0.0, %v480_v50  ;;  %v3505_v8 = vsel %vm602_vm2, %v616_v47, %v618_v48  ;;  %v332_v9 = vmul.f32 %v2540_v54, %v3316_v3  ;;  %2745 = vmatprep.subr.bf16.mxu1 %v3245_v4 }
  0x2b   : > { %4879 = vst [vmem:[#allocation8_spill] sm:$0xff] %v3499_v5  ;;  %4880 = vst [vmem:[#allocation9_spill] sm:$0xff] %v3502_v6  ;;  %v836_v14 = vrot.slane %v3502_v6, 2  ;;  %v837_v15 = vrot.slane %v3499_v5, 2  ;;  %v369_v18 = vadd.f32 %v3332_v12, %v331_v63  ;;  %v787_v21 = vrot.slane %v3429_v20, 2 }
  0x2c   : > { %2797 = vrot.lane.b32.xlu0 %v2796_v39, %s3262_s9  ;;  %2782 = vrot.lane.b32.xlu1 %v3391_v60, %s3262_s9  ;;  %v2811_v23 = vpack.i.bf16 %v3419_v13, %v3429_v20  ;;  %v370_v24 = vadd.f32 %v3332_v12, %v332_v9  ;;  %v3519_v25 = vsel %vm443_vm0, %v481_v51, 0.0  ;;  %v2507_v27 = vunpack.c.l.bf16 %v3493_v2  ;;  %v3246_v60 = vld [vmem:[%s4814_s1 + $0x38] sm:$0xff]  }
  0x2d   : > { %v3526_v28 = vsel %vm773_vm1, %v836_v14, %v837_v15  ;;  %v401_v29 = vmax.f32 %v369_v18, 0.0  ;;  %v839_v30 = vrot.slane %v3519_v25, 2  ;;  %v336_v13 = vmul.f32 %v2548_v19, %v3316_v3  ;;  %2587 = vmatpush3.bf16.msra.mxu0 %v3246_v60  ;;  %2753 = vmatpush3.bf16.msra.mxu1 %v3246_v60 }
  0x2e   : > { %4881 = vst [vmem:[#allocation10_spill] sm:$0xff] %v3526_v28  ;;  %v2806_v31 = vpack.i.bf16 %v3526_v28, %v3480_v53  ;;  %v2821_v32 = vpack.i.bf16 %v3505_v8, %v3488_v62  ;;  %v402_v33 = vmax.f32 %v370_v24, 0.0  ;;  %v315_v36 = vmul.f32 %v2507_v27, %v3316_v3 }
  0x2f   : > { %v477_v37 = vrot.slane %v401_v29, 7  ;;  %v3539_v39 = vsel %vm773_vm1, %v786_v1, %v787_v21  ;;  %v374_v11 = vadd.f32 %v3332_v12, %v336_v13  ;;  %v789_v19 = vrot.slane %v3472_v45, 2 }
  0x30   : > { %2802 = vrot.lane.b32.xlu0 %v2801_v61, %s3261_s28  ;;  %4882 = vst [vmem:[#allocation11_spill] sm:$0xff] %v3539_v39  ;;  %2807 = vrot.lane.b32.xlu1 %v2806_v31, %s3261_s28  ;;  %v478_v41 = vrot.slane %v402_v33, 7  ;;  %v2508_v43 = vunpack.c.h.bf16 %v3493_v2  ;;  %v353_v44 = vadd.f32 %v3332_v12, %v315_v36  ;;  %v670_v46 = vrot.slane %v3399_v0, 1  ;;  %v2570_v61 = vld [vmem:[%s3321_s6 + $0x70] sm:$0xff]  }
  0x31   : > { %v3548_v47 = vsel %vm443_vm0, 0.0, %v477_v37  ;;  %v3551_v48 = vsel %vm773_vm1, %v837_v15, %v839_v30  ;;  %v406_v49 = vmax.f32 %v374_v11, 0.0  ;;  %v3554_v45 = vsel %vm773_vm1, %v787_v21, %v789_v19 }
  0x32   : > { %4883 = vst [vmem:[#allocation12_spill] sm:$0xff] %v3551_v48  ;;  %4884 = vst [vmem:[#allocation13_spill] sm:$0xff] %v3554_v45  ;;  %v3557_v50 = vsel %vm443_vm0, %v477_v37, %v478_v41  ;;  %v566_v51 = vsel %vm443_vm0, %v478_v41, 0.0  ;;  %v660_v54 = vrot.slane %v3548_v47, 1  ;;  %v385_v55 = vmax.f32 %v353_v44, 0.0  ;;  %v2560_v41 = vld [vmem:[%s3321_s6 + $0x20] sm:$0xff]  }
  0x33   : > { %v661_v63 = vrot.slane %v3557_v50, 1  ;;  %v663_v1 = vrot.slane %v566_v51, 1  ;;  %v832_v2 = vrot.slane %v3557_v50, 2  ;;  %v834_v4 = vrot.slane %v566_v51, 2 }
  0x34   : > { %2812 = vrot.lane.b32.xlu0 %v2811_v23, %s3260_s25  ;;  %2817 = vrot.lane.b32.xlu1 %v2816_v38, %s3260_s25  ;;  %v453_v9 = vrot.slane %v385_v55, 7  ;;  %v484_v14 = vrot.slane %v406_v49, 7  ;;  %v831_v15 = vrot.slane %v3548_v47, 2  ;;  %v2551_v27 = vunpack.c.l.bf16 %v2570_v61 }
  0x35   : > { %v3573_v21 = vsel %vm602_vm2, %v661_v63, %v663_v1  ;;  %v3576_v23 = vsel %vm602_vm2, %v660_v54, %v661_v63  ;;  %v3579_v24 = vsel %vm773_vm1, %v832_v2, %v834_v4  ;;  %v316_v37 = vmul.f32 %v2508_v43, %v3316_v3 }
  0x36   : > { %4885 = vst [vmem:[#allocation14_spill] sm:$0xff] %v3579_v24  ;;  %v2831_v10 = vpack.i.bf16 %v3539_v39, %v3573_v21  ;;  %v3584_v38 = vsel %vm443_vm0, 0.0, %v453_v9  ;;  %v3588_v60 = vsel %vm443_vm0, %v3368_v52, %v484_v14  ;;  %v2826_v29 = vpack.i.bf16 %v3576_v23, %v3551_v48 }
  0x37   : > { %4886 = vst [vmem:[#allocation15_spill] sm:$0xff] %v3584_v38  ;;  %4887 = vst [vmem:[#allocation16_spill] sm:$0xff] %v3588_v60  ;;  %v3594_v30 = vsel %vm443_vm0, %v484_v14, 0.0  ;;  %v671_v13 = vrot.slane %v3588_v60, 1  ;;  %v2841_v31 = vpack.i.bf16 %v3584_v38, %v3579_v24  ;;  %v3601_v33 = vsel %vm773_vm1, %v831_v15, %v832_v2 }
  0x38   : > { %2822 = vrot.lane.b32.xlu0 %v2821_v32, %s3262_s9  ;;  %2832 = vrot.lane.b32.xlu1 %v2831_v10, %s3261_s28  ;;  %v673_v52 = vrot.slane %v3594_v30, 1  ;;  %v337_v36 = vmul.f32 %v2551_v27, %v3316_v3  ;;  %v2552_v19 = vunpack.c.h.bf16 %v2570_v61  ;;  %v2836_v44 = vpack.i.bf16 %v3601_v33, %v3588_v60  ;;  %v2571_v27 = vld [vmem:[%s3321_s6 + $0x78] sm:$0xff]  }
  0x39   : > { %v3605_v32 = vsel %vm602_vm2, %v670_v46, %v671_v13  ;;  %v354_v46 = vadd.f32 %v3332_v12, %v316_v37  ;;  %v841_v51 = vrot.slane %v3399_v0, 2  ;;  %v842_v54 = vrot.slane %v3588_v60, 2 }
  0x3a   : > { %v3610_v11 = vsel %vm602_vm2, %v671_v13, %v673_v52  ;;  %v375_v49 = vadd.f32 %v3332_v12, %v337_v36  ;;  %v2511_v63 = vunpack.c.l.bf16 %v2560_v41  ;;  %v338_v1 = vmul.f32 %v2552_v19, %v3316_v3 }
  0x3b   : > { %4888 = vst [vmem:[#allocation17_spill] sm:$0xff] %v3610_v11  ;;  %v2851_v43 = vpack.i.bf16 %v3610_v11, %v3605_v32  ;;  %v386_v61 = vmax.f32 %v354_v46, 0.0  ;;  %v2846_v2 = vpack.i.bf16 %v3451_v34, %v3554_v45  ;;  %v3632_v10 = vpack.i.bf16 %v3499_v5, %v3502_v6 }
  0x3c   : > { %2827 = vrot.lane.b32.xlu0 %v2826_v29, %s3261_s28  ;;  %2842 = vrot.lane.b32.xlu1 %v2841_v31, %s3260_s25  ;;  %v407_v55 = vmax.f32 %v375_v49, 0.0  ;;  %v317_v15 = vmul.f32 %v2511_v63, %v3316_v3  ;;  %v3635_v29 = vsel %vm773_vm1, %v841_v51, %v842_v54  ;;  %v376_v13 = vadd.f32 %v3332_v12, %v338_v1 }
  0x3d   : > { %v454_v14 = vrot.slane %v386_v61, 7  ;;  %4889 = vst [vmem:[#allocation18_spill] sm:$0xff] %v3632_v10  ;;  %4890 = vst [vmem:[#allocation19_spill] sm:$0xff] %v3635_v29  ;;  %v620_v19 = vrot.slane %v3584_v38, 1  ;;  %v2856_v49 = vpack.i.bf16 %v3635_v29, %v3454_v35  ;;  %v666_v46 = vrot.slane %v3499_v5, 1 }
  0x3e   : > { %v486_v4 = vrot.slane %v407_v55, 7  ;;  %v355_v37 = vadd.f32 %v3332_v12, %v317_v15  ;;  %v408_v51 = vmax.f32 %v376_v13, 0.0  ;;  %v2512_v63 = vunpack.c.h.bf16 %v2560_v41 }
  0x3f   : > { %v3642_v52 = vsel %vm443_vm0, %v453_v9, %v454_v14  ;;  %v3645_v36 = vsel %vm443_vm0, %v454_v14, 0.0  ;;  %v791_v1 = vrot.slane %v3584_v38, 2  ;;  %v665_v41 = vrot.slane %v3502_v6, 1 }
  0x40   : > { %2837 = vrot.lane.b32.xlu0 %v2836_v44, %s3260_s25  ;;  %2852 = vrot.lane.b32.xlu1 %v2851_v43, %s3262_s9  ;;  %v3639_v31 = vsel %vm443_vm0, 0.0, %v486_v4  ;;  %4892 = vst [vmem:[#allocation21_spill] sm:$0xff] %v3642_v52  ;;  %v2555_v44 = vunpack.c.l.bf16 %v2571_v27  ;;  %v668_v43 = vrot.slane %v3519_v25, 1  ;;  %v621_v55 = vrot.slane %v3642_v52, 1 }
  0x41   : > { %4891 = vst [vmem:[#allocation20_spill] sm:$0xff] %v3639_v31  ;;  %v2871_v9 = vpack.i.bf16 %v3639_v31, %v3469_v42  ;;  %v623_v61 = vrot.slane %v3645_v36, 1  ;;  %v387_v14 = vmax.f32 %v355_v37, 0.0  ;;  %v487_v15 = vrot.slane %v408_v51, 7 }
  0x42   : > { %v2881_v25 = vpack.i.bf16 %v3429_v20, %v3411_v7  ;;  %v339_v13 = vmul.f32 %v2555_v44, %v3316_v3  ;;  %v2866_v18 = vpack.i.bf16 %v3434_v22, %v3642_v52  ;;  %v3669_v16 = vsel %vm602_vm2, %v666_v46, %v668_v43 }
  0x43   : > { %v844_v17 = vrot.slane %v3594_v30, 2  ;;  %v3675_v37 = vsel %vm602_vm2, %v620_v19, %v621_v55  ;;  %v3678_v51 = vsel %vm602_vm2, %v621_v55, %v623_v61  ;;  %v2556_v44 = vunpack.c.h.bf16 %v2571_v27 }
  0x44   : > { %2847 = vrot.lane.b32.xlu0 %v2846_v2, %s3261_s28  ;;  %2862 = vrot.lane.b32.xlu1 %v3632_v10, %s3262_s9  ;;  %v792_v2 = vrot.slane %v3642_v52, 2  ;;  %4893 = vst [vmem:[#allocation22_spill] sm:$0xff] %v3675_v37  ;;  %4894 = vst [vmem:[#allocation23_spill] sm:$0xff] %v3678_v51  ;;  %v456_v43 = vrot.slane %v387_v14, 7  ;;  %v3685_v22 = vsel %vm443_vm0, %v486_v4, %v487_v15  ;;  %v675_v61 = vrot.slane %v3639_v31, 1 }
  0x45   : > { %4896 = vst [vmem:[#allocation25_spill] sm:$0xff] %v3685_v22  ;;  %v377_v30 = vadd.f32 %v3332_v12, %v339_v13  ;;  %v2876_v27 = vpack.i.bf16 %v3678_v51, %v3675_v37  ;;  %v3695_v19 = vsel %vm602_vm2, %v665_v41, %v666_v46  ;;  %v3698_v55 = vsel %vm773_vm1, %v842_v54, %v844_v17  ;;  %v2561_v54 = vld [vmem:[%s3321_s6 + $0x28] sm:$0xff]  }
  0x46   : > { %v3682_v42 = vsel %vm773_vm1, %v791_v1, %v792_v2  ;;  %4897 = vst [vmem:[#allocation26_spill] sm:$0xff] %v3698_v55  ;;  %v3707_v1 = vsel %vm443_vm0, 0.0, %v456_v43  ;;  %v340_v17 = vmul.f32 %v2556_v44, %v3316_v3  ;;  %v794_v41 = vrot.slane %v3645_v36, 2 }
  0x47   : > { %4895 = vst [vmem:[#allocation24_spill] sm:$0xff] %v3682_v42  ;;  %v2891_v4 = vpack.i.bf16 %v3682_v42, %v3669_v16  ;;  %4898 = vst [vmem:[#allocation27_spill] sm:$0xff] %v3707_v1  ;;  %v409_v14 = vmax.f32 %v377_v30, 0.0  ;;  %v2515_v20 = vunpack.c.l.bf16 %v2561_v54 }
  0x48   : > { %2857 = vrot.lane.b32.xlu0 %v2856_v49, %s3261_s28  ;;  %2872 = vrot.lane.b32.xlu1 %v2871_v9, %s3260_s25  ;;  %v318_v49 = vmul.f32 %v2512_v63, %v3316_v3  ;;  %v3689_v9 = vsel %vm443_vm0, %v487_v15, 0.0  ;;  %v676_v63 = vrot.slane %v3685_v22, 1  ;;  %v2886_v15 = vpack.i.bf16 %v3695_v19, %v3698_v55 }
  0x49   : > { %v678_v46 = vrot.slane %v3689_v9, 1  ;;  %v489_v44 = vrot.slane %v409_v14, 7  ;;  %v319_v14 = vmul.f32 %v2515_v20, %v3316_v3 }
  0x4a   : > { %v3719_v13 = vsel %vm602_vm2, %v675_v61, %v676_v63  ;;  %v3734_v61 = vsel %vm773_vm1, %v792_v2, %v794_v41  ;;  %v2921_v2 = vpack.i.bf16 %v3588_v60, %v3399_v0  ;;  %v2516_v0 = vunpack.c.h.bf16 %v2561_v54 }
  0x4b   : > { %4899 = vst [vmem:[#allocation28_spill] sm:$0xff] %v3719_v13  ;;  %v3723_v30 = vsel %vm602_vm2, %v676_v63, %v678_v46  ;;  %4901 = vst [vmem:[#allocation30_spill] sm:$0xff] %v3734_v61  ;;  %v847_v63 = vrot.slane %v3685_v22, 2  ;;  %v3738_v46 = vsel %vm443_vm0, 0.0, %v489_v44  ;;  %v2941_v54 = vpack.i.bf16 %v3642_v52, %v3584_v38 }
  0x4c   : > { %2867 = vrot.lane.b32.xlu0 %v2866_v18, %s3260_s25  ;;  %2882 = vrot.lane.b32.xlu1 %v2881_v25, %s3262_s9  ;;  %v356_v18 = vadd.f32 %v3332_v12, %v318_v49  ;;  %v2901_v25 = vpack.i.bf16 %v3707_v1, %v3551_v48  ;;  %4900 = vst [vmem:[#allocation29_spill] sm:$0xff] %v3723_v30  ;;  %v846_v48 = vrot.slane %v3639_v31, 2 }
  0x4d   : > { %v2911_v36 = vpack.i.bf16 %v3723_v30, %v3719_v13 }
  0x4e   : > { %v388_v49 = vmax.f32 %v356_v18, 0.0  ;;  %v3750_v41 = vsel %vm773_vm1, %v846_v48, %v847_v63 }
  0x4f   : > { %4902 = vst [vmem:[#allocation31_spill] sm:$0xff] %v3750_v41  ;;  %v2916_v48 = vpack.i.bf16 %v3750_v41, %v3505_v8 }
  0x50   : > { %2877 = vrot.lane.b32.xlu0 %v2876_v27, %s3262_s9  ;;  %2892 = vrot.lane.b32.xlu1 %v2891_v4, %s3261_s28  ;;  %v378_v27 = vadd.f32 %v3332_v12, %v340_v17  ;;  %v2896_v4 = vpack.i.bf16 %v3526_v28, %v3685_v22  ;;  %v457_v18 = vrot.slane %v388_v49, 7 }
  0x52   : > { %v410_v7 = vmax.f32 %v378_v27, 0.0  ;;  %v3753_v49 = vsel %vm443_vm0, %v456_v43, %v457_v18  ;;  %v357_v27 = vadd.f32 %v3332_v12, %v319_v14  ;;  %v625_v43 = vrot.slane %v3707_v1, 1 }
  0x53   : > { %4903 = vst [vmem:[#allocation32_spill] sm:$0xff] %v3753_v49  ;;  %v626_v14 = vrot.slane %v3753_v49, 1  ;;  %v797_v60 = vrot.slane %v3753_v49, 2 }
  0x54   : > { %2887 = vrot.lane.b32.xlu0 %v2886_v15, %s3261_s28  ;;  %2902 = vrot.lane.b32.xlu1 %v2901_v25, %s3260_s25  ;;  %v490_v17 = vrot.slane %v410_v7, 7  ;;  %v2906_v25 = vpack.i.bf16 %v3488_v62, %v3734_v61  ;;  %v559_v7 = vsel %vm443_vm0, %v457_v18, 0.0  ;;  %v1079_v15 = vrot.slane %v3738_v46, 2 }
  0x55   : > { %v796_v18 = vrot.slane %v3707_v1, 2  ;;  %v389_v10 = vmax.f32 %v357_v27, 0.0  ;;  %v3788_v27 = vsel %vm602_vm2, %v625_v43, %v626_v14 }
  0x56   : > { %v3757_v20 = vsel %vm443_vm0, %v489_v44, %v490_v17  ;;  %v2931_v44 = vpack.i.bf16 %v3738_v46, %v3554_v45  ;;  %v2926_v45 = vpack.i.bf16 %v3539_v39, %v3753_v49  ;;  %4906 = vst [vmem:[#allocation35_spill] sm:$0xff] %v3788_v27  ;;  %v2562_v39 = vld [vmem:[%s3321_s6 + $0x30] sm:$0xff]  }
  0x57   : > { %v1080_v28 = vrot.slane %v3757_v20, 2  ;;  %v2520_v52 = vunpack.c.h.bf16 %v2562_v39 }
  0x58   : > { %2897 = vrot.lane.b32.xlu0 %v2896_v4, %s3260_s25  ;;  %2912 = vrot.lane.b32.xlu1 %v2911_v36, %s3262_s9  ;;  %v570_v4 = vsel %vm443_vm0, %v490_v17, 0.0  ;;  %v628_v17 = vrot.slane %v559_v7, 1 }
  0x59   : > { %v1082_v36 = vrot.slane %v570_v4, 2 }
  0x5b   : > { %v3777_v6 = vsel %vm773_vm1, %v1080_v28, %v1082_v36  ;;  %v3795_v36 = vsel %vm773_vm1, %v796_v18, %v797_v60 }
  0x5c   : > { %2907 = vrot.lane.b32.xlu0 %v2906_v25, %s3261_s28  ;;  %2922 = vrot.lane.b32.xlu1 %v2921_v2, %s3262_s9  ;;  %v3774_v25 = vsel %vm773_vm1, %v1079_v15, %v1080_v28  ;;  %4905 = vst [vmem:[#allocation34_spill] sm:$0xff] %v3777_v6  ;;  %v3791_v15 = vsel %vm602_vm2, %v626_v14, %v628_v17  ;;  %v849_v28 = vrot.slane %v3689_v9, 2  ;;  %4908 = vst [vmem:[#allocation37_spill] sm:$0xff] %v3795_v36 }
  0x5d   : > { %4904 = vst [vmem:[#allocation33_spill] sm:$0xff] %v3774_v25  ;;  %4907 = vst [vmem:[#allocation36_spill] sm:$0xff] %v3791_v15  ;;  %v320_v2 = vmul.f32 %v2516_v0, %v3316_v3  ;;  %v2951_v43 = vpack.i.bf16 %v3795_v36, %v3610_v11  ;;  %v1042_v9 = vrot.slane %v3738_v46, 1  ;;  %v1043_v0 = vrot.slane %v3757_v20, 1 }
  0x5e   : > { %v3806_v14 = vsel %vm773_vm1, %v847_v63, %v849_v28  ;;  %v2519_v17 = vunpack.c.l.bf16 %v2562_v39  ;;  %v799_v28 = vrot.slane %v559_v7, 2 }
  0x5f   : > { %4909 = vst [vmem:[#allocation38_spill] sm:$0xff] %v3806_v14  ;;  %v358_v18 = vadd.f32 %v3332_v12, %v320_v2  ;;  %v3821_v38 = vsel %vm602_vm2, %v1042_v9, %v1043_v0 }
  0x60   : > { %2917 = vrot.lane.b32.xlu0 %v2916_v48, %s3261_s28  ;;  %2932 = vrot.lane.b32.xlu1 %v2931_v44, %s3260_s25  ;;  %v459_v48 = vrot.slane %v389_v10, 7  ;;  %v2936_v44 = vpack.i.bf16 %v3791_v15, %v3788_v27  ;;  %4911 = vst [vmem:[#allocation40_spill] sm:$0xff] %v3821_v38  ;;  %v321_v39 = vmul.f32 %v2519_v17, %v3316_v3 }
  0x61   : > { %v390_v2 = vmax.f32 %v358_v18, 0.0  ;;  %v3835_v9 = vsel %vm773_vm1, %v797_v60, %v799_v28  ;;  %v2981_v17 = vpack.i.bf16 %v3685_v22, %v3639_v31 }
  0x62   : > { %v3810_v10 = vsel %vm443_vm0, 0.0, %v459_v48  ;;  %4913 = vst [vmem:[#allocation42_spill] sm:$0xff] %v3835_v9 }
  0x63   : > { %4910 = vst [vmem:[#allocation39_spill] sm:$0xff] %v3810_v10  ;;  %v2961_v63 = vpack.i.bf16 %v3810_v10, %v3698_v55 }
  0x64   : > { %2927 = vrot.lane.b32.xlu0 %v2926_v45, %s3260_s25  ;;  %2942 = vrot.lane.b32.xlu1 %v2941_v54, %s3262_s9  ;;  %v1045_v45 = vrot.slane %v570_v4, 1  ;;  %v2946_v54 = vpack.i.bf16 %v3605_v32, %v3806_v14 }
  0x66   : > { %v3824_v4 = vsel %vm602_vm2, %v1043_v0, %v1045_v45  ;;  %v460_v0 = vrot.slane %v390_v2, 7  ;;  %v359_v45 = vadd.f32 %v3332_v12, %v321_v39  ;;  %v2563_v2 = vld [vmem:[%s3321_s6 + $0x38] sm:$0xff]   ;;  %v2976_v39 = vpack.i.bf16 %v3774_v25, %v3678_v51  ;;  %v2564_v25 = vld [vmem:[%s3321_s6 + $0x40] sm:$0xff]  }
  0x67   : > { %4912 = vst [vmem:[#allocation41_spill] sm:$0xff] %v3824_v4  ;;  %v2971_v7 = vpack.i.bf16 %v3824_v4, %v3821_v38 }
  0x68   : > { %2937 = vrot.lane.b32.xlu0 %v2936_v44, %s3262_s9  ;;  %2952 = vrot.lane.b32.xlu1 %v2951_v43, %s3261_s28  ;;  %v322_v44 = vmul.f32 %v2520_v52, %v3316_v3  ;;  %v2956_v43 = vpack.i.bf16 %v3635_v29, %v3757_v20  ;;  %v2966_v52 = vpack.i.bf16 %v3675_v37, %v3835_v9  ;;  %v560_v60 = vsel %vm443_vm0, %v460_v0, 0.0 }
  0x69   : > { %v633_v55 = vrot.slane %v560_v60, 1  ;;  %v2524_v29 = vunpack.c.h.bf16 %v2563_v2 }
  0x6a   : > { %v360_v18 = vadd.f32 %v3332_v12, %v322_v44  ;;  %v4915_v44 = vmov 0.0  }
  0x6c   : > { %2947 = vrot.lane.b32.xlu0 %v2946_v54, %s3261_s28  ;;  %2962 = vrot.lane.b32.xlu1 %v2961_v63, %s3260_s25  ;;  %v3846_v54 = vsel %vm443_vm0, %v459_v48, %v460_v0  ;;  %v391_v63 = vmax.f32 %v359_v45, 0.0  ;;  %v392_v28 = vmax.f32 %v360_v18, 0.0  ;;  %v801_v0 = vrot.slane %v3810_v10, 2 }
  0x6d   : > { %4914 = vst [vmem:[#allocation43_spill] sm:$0xff] %v3846_v54  ;;  %v631_v48 = vrot.slane %v3846_v54, 1  ;;  %v802_v45 = vrot.slane %v3846_v54, 2  ;;  %v2523_v18 = vunpack.c.l.bf16 %v2563_v2  ;;  %v804_v2 = vrot.slane %v560_v60, 2 }
  0x6e   : > { %v463_v31 = vrot.slane %v392_v28, 7 }
  0x6f   : > { %v3871_v22 = vsel %vm602_vm2, %v631_v48, %v633_v55  ;;  %v323_v28 = vmul.f32 %v2523_v18, %v3316_v3 }
  0x70   : > { %2957 = vrot.lane.b32.xlu0 %v2956_v43, %s3260_s25  ;;  %2972 = vrot.lane.b32.xlu1 %v2971_v7, %s3262_s9  ;;  %v2991_v43 = vpack.i.bf16 %v4915_v44, %v3734_v61  ;;  %v630_v7 = vrot.slane %v3810_v10, 1  ;;  %v3001_v44 = vpack.i.bf16 %v3753_v49, %v3707_v1  ;;  %4917 = vst [vmem:[#allocation45_spill] sm:$0xff] %v3871_v22  ;;  %v2527_v49 = vunpack.c.l.bf16 %v2564_v25 }
  0x72   : > { %v3868_v61 = vsel %vm602_vm2, %v630_v7, %v631_v48  ;;  %v2528_v7 = vunpack.c.h.bf16 %v2564_v25  ;;  %v361_v25 = vadd.f32 %v3332_v12, %v323_v28 }
  0x73   : > { %4916 = vst [vmem:[#allocation44_spill] sm:$0xff] %v3868_v61  ;;  %v2996_v55 = vpack.i.bf16 %v3871_v22, %v3868_v61 }
  0x74   : > { %2967 = vrot.lane.b32.xlu0 %v2966_v52, %s3261_s28  ;;  %2982 = vrot.lane.b32.xlu1 %v2981_v17, %s3262_s9  ;;  %v462_v52 = vrot.slane %v391_v63, 7  ;;  %v2986_v17 = vpack.i.bf16 %v3682_v42, %v3846_v54  ;;  %v3874_v63 = vsel %vm773_vm1, %v801_v0, %v802_v45  ;;  %v393_v28 = vmax.f32 %v361_v25, 0.0 }
  0x75   : > { %4918 = vst [vmem:[#allocation46_spill] sm:$0xff] %v3874_v63  ;;  %v3011_v60 = vpack.i.bf16 %v3874_v63, %v3723_v30 }
  0x76   : > { %v3879_v42 = vsel %vm443_vm0, %v462_v52, %v463_v31 }
  0x77   : > { %4919 = vst [vmem:[#allocation47_spill] sm:$0xff] %v3879_v42  ;;  %v807_v0 = vrot.slane %v3879_v42, 2 }
  0x78   : > { %2977 = vrot.lane.b32.xlu0 %v2976_v39, %s3261_s28  ;;  %2992 = vrot.lane.b32.xlu1 %v2991_v43, %s3260_s25  ;;  %v324_v39 = vmul.f32 %v2524_v29, %v3316_v3  ;;  %v3882_v43 = vsel %vm443_vm0, 0.0, %v462_v52  ;;  %v3891_v29 = vsel %vm773_vm1, %v802_v45, %v804_v2  ;;  %v325_v52 = vmul.f32 %v2527_v49, %v3316_v3 }
  0x79   : > { %4920 = vst [vmem:[#allocation48_spill] sm:$0xff] %v3882_v43  ;;  %v806_v48 = vrot.slane %v3882_v43, 2  ;;  %v3021_v45 = vpack.i.bf16 %v3788_v27, %v3891_v29  ;;  %v635_v25 = vrot.slane %v3882_v43, 1 }
  0x7a   : > { %v362_v18 = vadd.f32 %v3332_v12, %v324_v39  ;;  %v561_v39 = vsel %vm443_vm0, %v463_v31, 0.0  ;;  %v363_v49 = vadd.f32 %v3332_v12, %v325_v52 }
  0x7b   : > { %v3906_v2 = vsel %vm773_vm1, %v806_v48, %v807_v0  ;;  %v638_v31 = vrot.slane %v561_v39, 1 }
  0x7c   : > { %2987 = vrot.lane.b32.xlu0 %v2986_v17, %s3260_s25  ;;  %3002 = vrot.lane.b32.xlu1 %v3001_v44, %s3262_s9  ;;  %v326_v17 = vmul.f32 %v2528_v7, %v3316_v3  ;;  %v3006_v44 = vpack.i.bf16 %v3719_v13, %v3777_v6  ;;  %v394_v1 = vmax.f32 %v362_v18, 0.0  ;;  %v3031_v48 = vpack.i.bf16 %v3906_v2, %v3791_v15 }
  0x7d   : > { %v636_v18 = vrot.slane %v3879_v42, 1  ;;  %v465_v6 = vrot.slane %v393_v28, 7 }
  0x7e   : > { %v364_v7 = vadd.f32 %v3332_v12, %v326_v17  ;;  %v466_v52 = vrot.slane %v394_v1, 7  ;;  %v395_v17 = vmax.f32 %v363_v49, 0.0  ;;  %v809_v1 = vrot.slane %v561_v39, 2  ;;  %v3249_v39 = vld [vmem:[%s4815_s2] ss:$0 sm:$0xff] }
  0x7f   : > { %v3933_v28 = vsel %vm602_vm2, %v636_v18, %v638_v31 }
  0x80   : > { %2997 = vrot.lane.b32.xlu0 %v2996_v55, %s3262_s9  ;;  %3012 = vrot.lane.b32.xlu1 %v3011_v60, %s3261_s28  ;;  %v2565_v55 = vld [vmem:[%s3321_s6 + $0x48] sm:$0xff]   ;;  %v3016_v60 = vpack.i.bf16 %v3806_v14, %v3750_v41  ;;  %v396_v38 = vmax.f32 %v364_v7, 0.0  ;;  %v3930_v14 = vsel %vm602_vm2, %v635_v25, %v636_v18  ;;  %v3936_v49 = vsel %vm443_vm0, %v465_v6, %v466_v52 }
  0x81   : > { %v2531_v4 = vunpack.c.l.bf16 %v2565_v55  ;;  %v2532_v27 = vunpack.c.h.bf16 %v2565_v55  ;;  %4921 = vst [vmem:[#allocation49_spill] sm:$0xff] %v3930_v14  ;;  %4922 = vst [vmem:[#allocation50_spill] sm:$0xff] %v3936_v49  ;;  %v3939_v7 = vsel %vm443_vm0, 0.0, %v465_v6  ;;  %v4924_v18 = vpack.i.bf16 %v3738_v46, %v3347_v26  ;;  %v2566_v46 = vld [vmem:[%s3321_s6 + $0x50] sm:$0xff]  }
  0x82   : > { %4923 = vst [vmem:[#allocation51_spill] sm:$0xff] %v3939_v7  ;;  %v3036_v6 = vpack.i.bf16 %v3930_v14, %v3757_v20  ;;  %v562_v31 = vsel %vm443_vm0, %v466_v52, 0.0  ;;  %v811_v52 = vrot.slane %v3939_v7, 2 }
  0x83   : > { %v327_v55 = vmul.f32 %v2531_v4, %v3316_v3  ;;  %v328_v25 = vmul.f32 %v3249_v39, %v2532_v27  ;;  %v3051_v3 = vpack.i.bf16 %v3810_v10, %v3933_v28  ;;  %v641_v4 = vrot.slane %v3936_v49, 1 }
  0x84   : > { %3007 = vrot.lane.b32.xlu0 %v3006_v44, %s3261_s28  ;;  %3022 = vrot.lane.b32.xlu1 %v3021_v45, %s3261_s28  ;;  %v3923_v44 = vld [vmem:[%s4814_s1 + $0x80] sm:$0xff]   ;;  %v3041_v45 = vpack.i.bf16 %v3879_v42, %v3882_v43  ;;  %v3959_v27 = vsel %vm773_vm1, %v807_v0, %v809_v1  ;;  %v812_v0 = vrot.slane %v3936_v49, 2  ;;  %v643_v1 = vrot.slane %v562_v31, 1 }
  0x85   : > { %2702 = vmatprep.subr.bf16.mxu1 %v3923_v44  ;;  %v365_v26 = vadd.f32 %v3332_v12, %v327_v55  ;;  %v3061_v55 = vpack.i.bf16 %v3868_v61, %v3959_v27  ;;  %v814_v41 = vrot.slane %v562_v31, 2  ;;  %v3071_v31 = vpack.i.bf16 %v3936_v49, %v3939_v7 }
  0x86   : > { %v3994_v30 = vsel %vm773_vm1, %v811_v52, %v812_v0 }
  0x88   : > { %3017 = vrot.lane.b32.xlu0 %v3016_v60, %s3260_s25  ;;  %3032 = vrot.lane.b32.xlu1 %v3031_v48, %s3261_s28  ;;  %v468_v60 = vrot.slane %v395_v17, 7  ;;  %v469_v48 = vrot.slane %v396_v38, 7  ;;  %v640_v38 = vrot.slane %v3939_v7, 1 }
  0x8a   : > { %v3964_v17 = vsel %vm443_vm0, %v468_v60, %v469_v48  ;;  %v3967_v20 = vsel %vm443_vm0, 0.0, %v468_v60  ;;  %v3979_v60 = vsel %vm602_vm2, %v640_v38, %v641_v4  ;;  %v563_v15 = vsel %vm443_vm0, %v469_v48, 0.0 }
  0x8b   : > { %4925 = vst [vmem:[#allocation52_spill] sm:$0xff] %v3967_v20  ;;  %4926 = vst [vmem:[#allocation53_spill] sm:$0xff] %v3979_v60  ;;  %v646_v10 = vrot.slane %v3964_v17, 1  ;;  %v3056_v38 = vpack.i.bf16 %v3979_v60, %v3846_v54  ;;  %v4001_v48 = vsel %vm773_vm1, %v812_v0, %v814_v41  ;;  %v648_v13 = vrot.slane %v563_v15, 1 }
  0x8c   : > { %3027 = vrot.lane.b32.xlu0 %v4924_v18, %s3262_s9  ;;  %3042 = vrot.lane.b32.xlu1 %v3041_v45, %s3260_s25  ;;  %v366_v45 = vadd.f32 %v3332_v12, %v328_v25  ;;  %v3046_v18 = vpack.i.bf16 %v3835_v9, %v3795_v36  ;;  %v2535_v12 = vunpack.c.l.bf16 %v2566_v46  ;;  %v397_v9 = vmax.f32 %v365_v26, 0.0 }
  0x8d   : > { %v2536_v36 = vunpack.c.h.bf16 %v2566_v46  ;;  %v3997_v26 = vsel %vm602_vm2, %v641_v4, %v643_v1  ;;  %v816_v46 = vrot.slane %v3967_v20, 2  ;;  %v819_v0 = vrot.slane %v563_v15, 2  ;;  %v3250_v15 = vld [vmem:[%s4816_s3] ss:$0 sm:$0xff] }
  0x8e   : > { %v398_v61 = vmax.f32 %v366_v45, 0.0  ;;  %v817_v45 = vrot.slane %v3964_v17, 2  ;;  %v471_v4 = vrot.slane %v397_v9, 7 }
  0x8f   : > { %v330_v1 = vmul.f32 %v3249_v39, %v2536_v36 }
  0x90   : > { %3037 = vrot.lane.b32.xlu0 %v3036_v6, %s3262_s9  ;;  %3052 = vrot.lane.b32.xlu1 %v3051_v3, %s3262_s9  ;;  %v645_v6 = vrot.slane %v3967_v20, 1  ;;  %v472_v51 = vrot.slane %v398_v61, 7  ;;  %v4025_v61 = vsel %vm773_vm1, %v816_v46, %v817_v45 }
  0x91   : > { %v368_v36 = vadd.f32 %v3250_v15, %v330_v1 }
  0x92   : > { %v3981_v25 = vpop.permute.xlu1 %2767  ;;  %v4008_v52 = vsel %vm602_vm2, %v645_v6, %v646_v10  ;;  %v3091_v6 = vpack.i.bf16 %v3930_v14, %v4001_v48 }
  0x93   : > { %v2769_v46 = vunpack.i.l.bf16 %v3981_v25  ;;  %v2770_v5 = vunpack.i.h.bf16 %v3981_v25 }
  0x94   : > { %3047 = vrot.lane.b32.xlu0 %v3046_v18, %s3260_s25  ;;  %3062 = vrot.lane.b32.xlu1 %v3061_v55, %s3261_s28  ;;  %v329_v18 = vmul.f32 %v3249_v39, %v2535_v12  ;;  %v3066_v55 = vpack.i.bf16 %v3994_v30, %v3871_v22  ;;  %v3081_v12 = vpack.i.bf16 %v3882_v43, %v3997_v26 }
  0x95   : > { %v3086_v39 = vpack.i.bf16 %v4008_v52, %v3879_v42  ;;  %v4042_v22 = vsel %vm773_vm1, %v817_v45, %v819_v0 }
  0x96   : > { %v2788_v3 = vpop.permute.xlu0 %2787  ;;  %v4005_v54 = vpop.permute.xlu1 %2772 }
  0x97   : > { %v2789_v37 = vunpack.i.l.bf16 %v2788_v3  ;;  %v2790_v9 = vunpack.i.h.bf16 %v2788_v3  ;;  %v2774_v41 = vunpack.i.l.bf16 %v4005_v54  ;;  %v4034_v3 = vsel %vm602_vm2, %v646_v10, %v648_v13 }
  0x98   : > { %3057 = vrot.lane.b32.xlu0 %v3056_v38, %s3262_s9  ;;  %3072 = vrot.lane.b32.xlu1 %v3071_v31, %s3260_s25  ;;  %v367_v38 = vadd.f32 %v3250_v15, %v329_v18  ;;  %v4037_v31 = vsel %vm443_vm0, 0.0, %v471_v4  ;;  %v4045_v18 = vsel %vm443_vm0, %v471_v4, %v472_v51 }
  0x99   : > { %v1494_v13 = vsel %vm1397_vm3, %v3463_v40, %v2789_v37  ;;  %v1495_v45 = vsel %vm1397_vm3, %v3480_v53, %v2790_v9  ;;  %v650_v1 = vrot.slane %v4037_v31, 1  ;;  %v821_v53 = vrot.slane %v4037_v31, 2 }
  0x9a   : > { %v4031_v43 = vpop.permute.xlu0 %2792  ;;  %v2778_v14 = vpop.permute.xlu1 %2777  ;;  %v399_v4 = vmax.f32 %v367_v38, 0.0  ;;  %v4927_v9 = vpack.i.bf16 %v3891_v29, %v3874_v63 }
  0x9b   : > { %v2794_v42 = vunpack.i.l.bf16 %v4031_v43  ;;  %v2780_v11 = vunpack.i.h.bf16 %v2778_v14  ;;  %v2779_v24 = vunpack.i.l.bf16 %v2778_v14 }
  0x9c   : > { %3067 = vrot.lane.b32.xlu0 %v3066_v55, %s3261_s28  ;;  %3082 = vrot.lane.b32.xlu1 %v3081_v12, %s3262_s9  ;;  %v400_v55 = vmax.f32 %v368_v36, 0.0  ;;  %v1526_v12 = vsel %vm1429_vm4, %v1494_v13, %v2769_v46  ;;  %v474_v40 = vrot.slane %v399_v4, 7  ;;  %v3121_v4 = vpack.i.bf16 %v3979_v60, %v4042_v22 }
  0x9d   : > { %v1398_v10 = vsel %vm1397_vm3, 0.0, %v2794_v42 }
  0x9e   : > { %v1430_v0 = vsel %vm1429_vm4, %v1398_v10, %v2774_v41  ;;  %v2798_v25 = vpop.permute.xlu0 %2797  ;;  %v4057_v15 = vpop.permute.xlu1 %2782  ;;  %v1527_v41 = vsel %vm1429_vm4, %v1495_v45, %v2770_v5  ;;  %v4928_v5 = vrot.slane %v4045_v18, 1  ;;  %v475_v45 = vrot.slane %v400_v55, 7 }
  0x9f   : > { %v2800_v42 = vunpack.i.h.bf16 %v2798_v25  ;;  %v2799_v37 = vunpack.i.l.bf16 %v2798_v25  ;;  %v1462_v38 = vsel %vm1461_vm5, %v1430_v0, %v2779_v24  ;;  %v1463_v36 = vsel %vm1461_vm5, %v1430_v0, %v2780_v11 }
  0xa0   : > { %3077 = vrot.lane.b32.xlu0 %v4927_v9, %s3260_s25  ;;  %3092 = vrot.lane.b32.xlu1 %v3091_v6, %s3261_s28  ;;  %v4077_v25 = vsel %vm443_vm0, %v472_v51, 0.0  ;;  %v4082_v24 = vsel %vm602_vm2, %v650_v1, %v4928_v5  ;;  %v822_v11 = vrot.slane %v4045_v18, 2  ;;  %v1590_v6 = vpack.c.bf16 %v1463_v36, %v1462_v38 }
  0xa1   : > { %v1558_v46 = vsel %vm1461_vm5, %v1526_v12, %v2799_v37  ;;  %v1559_v13 = vsel %vm1461_vm5, %v1527_v41, %v2800_v42  ;;  %v3096_v42 = vpack.i.bf16 %v4025_v61, %v3933_v28  ;;  %v3111_v51 = vpack.i.bf16 %v3939_v7, %v4034_v3 }
  0xa2   : > { %v2803_v9 = vpop.permute.xlu0 %2802  ;;  %v1591_v14 = vpack.c.bf16 %v1559_v13, %v1558_v46  ;;  %v4085_v0 = vpop.permute.xlu1 %2807  ;;  %v3131_v1 = vpack.i.bf16 %v4045_v18, %v4037_v31  ;;  %v653_v55 = vrot.slane %v4077_v25, 1  ;;  %v2795_v41 = vunpack.i.h.bf16 %v4031_v43 }
  0xa3   : > { %v2805_v37 = vunpack.i.h.bf16 %v2803_v9  ;;  %v2809_v12 = vunpack.i.l.bf16 %v4085_v0  ;;  %v4929_v38 = vpack.i.bf16 %v3964_v17, %v3967_v20  ;;  %v3116_v36 = vpack.i.bf16 %v4082_v24, %v3936_v49 }
  0xa4   : > { %3087 = vrot.lane.b32.xlu0 %v3086_v39, %s3262_s9  ;;  %1862 = vmatprep.mubr.bf16.mxu0 %v1591_v14  ;;  %v824_v46 = vrot.slane %v4077_v25, 2  ;;  %v4107_v39 = vsel %vm443_vm0, 0.0, %v474_v40  ;;  %v4110_v13 = vsel %vm773_vm1, %v821_v53, %v822_v11  ;;  %v4113_v43 = vsel %vm443_vm0, %v474_v40, %v475_v45 }
  0xa5   : > { %3102 = vrot.lane.b32.xlu1 %v4929_v38, %s3260_s25  ;;  %1863 = vmatmul.mubr.bf16.vlgmr.msra.gmra.mrb[0].mxu0 %v1590_v6  ;;  %v826_v5 = vrot.slane %v4107_v39, 2  ;;  %v2804_v38 = vunpack.i.l.bf16 %v2803_v9  ;;  %v1400_v10 = vsel %vm1397_vm3, %v3384_v58, %v2809_v12  ;;  %v2775_v53 = vunpack.i.h.bf16 %v4005_v54 }
  0xa6   : > { %v2813_v14 = vpop.permute.xlu0 %2812  ;;  %v4120_v49 = vpop.permute.xlu1 %2817  ;;  %v1399_v40 = vsel %vm1397_vm3, %v3387_v59, %v2805_v37  ;;  %v1496_v9 = vsel %vm1397_vm3, %v3451_v34, %v2795_v41  ;;  %v827_v12 = vrot.slane %v4113_v43, 2  ;;  %v4135_v7 = vsel %vm443_vm0, %v475_v45, 0.0 }
  0xa7   : > { %v2815_v25 = vunpack.i.h.bf16 %v2813_v14  ;;  %v2814_v60 = vunpack.i.l.bf16 %v2813_v14  ;;  %v2819_v63 = vunpack.i.l.bf16 %v4120_v49  ;;  %v2785_v54 = vunpack.i.h.bf16 %v4057_v15 }
  0xa8   : > { %3097 = vrot.lane.b32.xlu0 %v3096_v42, %s3261_s28  ;;  %v2784_v59 = vunpack.i.l.bf16 %v4057_v15  ;;  %v829_v42 = vrot.slane %v4135_v7, 2  ;;  %v1497_v34 = vsel %vm1397_vm3, %v3454_v35, %v2804_v38  ;;  %v1528_v15 = vsel %vm1429_vm4, %v1496_v9, %v2775_v53 }
  0xa9   : > { %v1431_v58 = vsel %vm1429_vm4, %v1399_v40, %v2815_v25  ;;  %3112 = vrot.lane.b32.xlu1 %v3111_v51, %s3262_s9  ;;  %v1432_v37 = vsel %vm1429_vm4, %v1400_v10, %v2819_v63  ;;  %v4930_v40 = vrot.slane %v4045_v18, 1  ;;  %v1529_v6 = vsel %vm1429_vm4, %v1497_v34, %v2814_v60 }
  0xaa   : > { %v2823_v14 = vpop.permute.xlu0 %2822  ;;  %v4143_v51 = vpop.permute.xlu1 %2832  ;;  %v4931_v63 = vpack.i.bf16 %v3959_v27, %v3906_v2  ;;  %v1464_v35 = vsel %vm1461_vm5, %v1431_v58, %v2784_v59  ;;  %v1465_v10 = vsel %vm1461_vm5, %v1432_v37, %v2785_v54  ;;  %v4165_v60 = vsel %vm773_vm1, %v826_v5, %v827_v12 }
  0xab   : > { %v2825_v41 = vunpack.i.h.bf16 %v2823_v14  ;;  %v2824_v25 = vunpack.i.l.bf16 %v2823_v14  ;;  %v4148_v45 = vsel %vm602_vm2, %v4930_v40, %v653_v55  ;;  %v4162_v14 = vsel %vm773_vm1, %v822_v11, %v824_v46 }
  0xac   : > { %3107 = vrot.lane.b32.xlu0 %v4931_v63, %s3260_s25  ;;  %v2810_v34 = vunpack.i.h.bf16 %v4085_v0  ;;  %v4169_v9 = vsel %vm773_vm1, %v827_v12, %v829_v42  ;;  %v1593_v54 = vpack.c.bf16 %v1465_v10, %v1464_v35  ;;  %v656_v11 = vrot.slane %v4113_v43, 1 }
  0xad   : > { %3122 = vrot.lane.b32.xlu1 %v3121_v4, %s3261_s28  ;;  %v1560_v38 = vsel %vm1461_vm5, %v1528_v15, %v2824_v25  ;;  %v1561_v55 = vsel %vm1461_vm5, %v1529_v6, %v2825_v41  ;;  %v655_v6 = vrot.slane %v4107_v39, 1  ;;  %v3126_v0 = vpack.i.bf16 %v4110_v13, %v3997_v26 }
  0xae   : > { %v2828_v40 = vpop.permute.xlu0 %2827  ;;  %v1594_v53 = vpack.c.bf16 %v1561_v55, %v1560_v38  ;;  %v4173_v58 = vpop.permute.xlu1 %2842  ;;  %v2820_v12 = vunpack.i.h.bf16 %v4120_v49  ;;  %v3141_v59 = vpack.i.bf16 %v3967_v20, %v4148_v45  ;;  %v2834_v37 = vunpack.i.l.bf16 %v4143_v51 }
  0xaf   : > { %v2829_v5 = vunpack.i.l.bf16 %v2828_v40  ;;  %v1518_v41 = vsel %vm1397_vm3, %v3695_v19, %v2810_v34  ;;  %v3136_v63 = vpack.i.bf16 %v4001_v48, %v3994_v30  ;;  %v3151_v49 = vpack.i.bf16 %v4008_v52, %v4162_v14 }
  0xb0   : > { %3117 = vrot.lane.b32.xlu0 %v3116_v36, %s3262_s9  ;;  %1870 = vmatprep.mubr.bf16.mxu0 %v1594_v53  ;;  %v2830_v15 = vunpack.i.h.bf16 %v2828_v40  ;;  %v2844_v55 = vunpack.i.l.bf16 %v4173_v58  ;;  %v1550_v53 = vsel %vm1429_vm4, %v1518_v41, %v2820_v12  ;;  %v658_v46 = vrot.slane %v4135_v7, 1 }
  0xb1   : > { %3132 = vrot.lane.b32.xlu1 %v3131_v1, %s3260_s25  ;;  %1871 = vmatmul.mubr.bf16.gmra.mrb[4].mxu0 %v1593_v54  ;;  %v4194_v1 = vsel %vm602_vm2, %v655_v6, %v656_v11  ;;  %v1519_v38 = vsel %vm1397_vm3, %v3669_v16, %v2829_v5  ;;  %v1422_v6 = vsel %vm1397_vm3, %v3557_v50, %v2834_v37 }
  0xb2   : > { %v2838_v42 = vpop.permute.xlu0 %2837  ;;  %v2853_v36 = vpop.permute.xlu1 %2852  ;;  %v3146_v12 = vpack.i.bf16 %v4194_v1, %v3964_v17  ;;  %v1454_v37 = vsel %vm1429_vm4, %v1422_v6, %v2844_v55  ;;  %v3161_v7 = vpack.i.bf16 %v4113_v43, %v4107_v39 }
  0xb3   : > { %v2839_v25 = vunpack.i.l.bf16 %v2838_v42  ;;  %v2855_v35 = vunpack.i.h.bf16 %v2853_v36  ;;  %v2854_v10 = vunpack.i.l.bf16 %v2853_v36  ;;  %v2840_v34 = vunpack.i.h.bf16 %v2838_v42 }
  0xb4   : > { %3127 = vrot.lane.b32.xlu0 %v3126_v0, %s3261_s28  ;;  %v1421_v42 = vsel %vm1397_vm3, %v3548_v47, %v2830_v15 }
  0xb5   : > { %3142 = vrot.lane.b32.xlu1 %v3141_v59, %s3262_s9  ;;  %v1551_v54 = vsel %vm1429_vm4, %v1519_v38, %v2839_v25  ;;  %v1582_v36 = vsel %vm1461_vm5, %v1550_v53, %v2854_v10  ;;  %v1453_v41 = vsel %vm1429_vm4, %v1421_v42, %v2840_v34  ;;  %v2835_v34 = vunpack.i.h.bf16 %v4143_v51 }
  0xb6   : > { %v2848_v40 = vpop.permute.xlu0 %2847  ;;  %v1583_v0 = vsel %vm1461_vm5, %v1551_v54, %v2855_v35  ;;  %v2863_v5 = vpop.permute.xlu1 %2862  ;;  %v3166_v54 = vpack.i.bf16 %v4042_v22, %v4025_v61 }
  0xb7   : > { %v1627_v4 = vpack.c.bf16 %v1583_v0, %v1582_v36  ;;  %v2865_v59 = vunpack.i.h.bf16 %v2863_v5  ;;  %v2864_v20 = vunpack.i.l.bf16 %v2863_v5  ;;  %v2850_v10 = vunpack.i.h.bf16 %v2848_v40 }
  0xb8   : > { %3137 = vrot.lane.b32.xlu0 %v3136_v63, %s3260_s25  ;;  %v4223_v63 = vsel %vm602_vm2, %v656_v11, %v658_v46  ;;  %v2845_v46 = vunpack.i.h.bf16 %v4173_v58  ;;  %v2849_v36 = vunpack.i.l.bf16 %v2848_v40 }
  0xb9   : > { %3152 = vrot.lane.b32.xlu1 %v3151_v49, %s3261_s28  ;;  %1958 = vmatprep.mubr.bf16.mxu1 %v1627_v4  ;;  %v1486_v15 = vsel %vm1461_vm5, %v1453_v41, %v2864_v20  ;;  %v1487_v35 = vsel %vm1461_vm5, %v1454_v37, %v2865_v59  ;;  %v3248_v4 = vld [vmem:[%s4814_s1 + $0x88] sm:$0xff]   ;;  %v3156_v20 = vpack.i.bf16 %v4165_v60, %v4034_v3 }
  0xba   : > { %v4218_v25 = vpop.permute.xlu0 %2857  ;;  %v4225_v38 = vpop.permute.xlu1 %2872  ;;  %v1626_v55 = vpack.c.bf16 %v1487_v35, %v1486_v15  ;;  %v3171_v11 = vpack.i.bf16 %v4037_v31, %v4223_v63  ;;  %v1401_v6 = vsel %vm1397_vm3, %v3381_v57, %v2850_v10  ;;  %v3181_v57 = vpack.i.bf16 %v4082_v24, %v4169_v9 }
  0xbb   : > { %v2859_v49 = vunpack.i.l.bf16 %v4218_v25  ;;  %v2874_v51 = vunpack.i.l.bf16 %v4225_v38  ;;  %v3176_v41 = vpack.i.bf16 %v3576_v23, %v4045_v18 }
  0xbc   : > { %3147 = vrot.lane.b32.xlu0 %v3146_v12, %s3262_s9  ;;  %1959 = vmatmul.mubr.bf16.vlgmr.msra.gmra.mrb[0].mxu1 %v1626_v55 }
  0xbd   : > { %3162 = vrot.lane.b32.xlu1 %v3161_v7, %s3260_s25  ;;  %2703 = vmatpush3.bf16.msra.mxu1 %v3923_v44  ;;  %v1402_v42 = vsel %vm1397_vm3, %v3378_v56, %v2859_v49  ;;  %v1498_v44 = vsel %vm1397_vm3, %v3488_v62, %v2835_v34  ;;  %v1499_v56 = vsel %vm1397_vm3, %v3505_v8, %v2849_v36 }
  0xbe   : > { %v2868_v53 = vpop.permute.xlu0 %2867  ;;  %v2883_v5 = vpop.permute.xlu1 %2882  ;;  %2704 = vmatprep.subr.bf16.mxu1 %v3248_v4  ;;  %v1434_v7 = vsel %vm1429_vm4, %v1402_v42, %v2874_v51  ;;  %v1530_v10 = vsel %vm1429_vm4, %v1498_v44, %v2845_v46  ;;  %v4271_v34 = vpack.i.bf16 %v3557_v50, %v3548_v47  ;;  %v3186_v51 = vpack.i.bf16 %v3601_v33, %v4148_v45 }
  0xbf   : > { %v2870_v0 = vunpack.i.h.bf16 %v2868_v53  ;;  %v2869_v59 = vunpack.i.l.bf16 %v2868_v53  ;;  %v2885_v58 = vunpack.i.h.bf16 %v2883_v5  ;;  %v2884_v12 = vunpack.i.l.bf16 %v2883_v5 }
  0xc0   : > { %3157 = vrot.lane.b32.xlu0 %v3156_v20, %s3261_s28  ;;  %v3201_v47 = vpack.i.bf16 %v4107_v39, %v3573_v21 }
  0xc1   : > { %v1433_v37 = vsel %vm1429_vm4, %v1401_v6, %v2870_v0  ;;  %3172 = vrot.lane.b32.xlu1 %v3171_v11, %s3262_s9  ;;  %2705 = vmatpush3.bf16.msra.mxu1 %v3248_v4  ;;  %v1531_v55 = vsel %vm1429_vm4, %v1499_v56, %v2869_v59  ;;  %v1467_v20 = vsel %vm1461_vm5, %v1434_v7, %v2885_v58  ;;  %v2860_v11 = vunpack.i.h.bf16 %v4218_v25 }
  0xc2   : > { %v2878_v40 = vpop.permute.xlu0 %2877  ;;  %v4259_v62 = vpop.permute.xlu1 %2892  ;;  %v1466_v49 = vsel %vm1461_vm5, %v1433_v37, %v2884_v12  ;;  %v2875_v0 = vunpack.i.h.bf16 %v4225_v38  ;;  %v3196_v58 = vpack.i.bf16 %v4162_v14, %v4110_v13  ;;  %v4932_v12 = vld [vmem:[#allocation14_spill] sm:$0xff]  ;;  %v4933_v37 = vld [vmem:[#allocation17_spill] sm:$0xff] }
  0xc3   : > { %v2880_v15 = vunpack.i.h.bf16 %v2878_v40  ;;  %v2879_v35 = vunpack.i.l.bf16 %v2878_v40  ;;  %v1520_v50 = vsel %vm1397_vm3, %v3605_v32, %v2860_v11  ;;  %v2894_v25 = vunpack.i.l.bf16 %v4259_v62  ;;  %v4935_v11 = vld [vmem:[#allocation9_spill] sm:$0xff] }
  0xc4   : > { %3167 = vrot.lane.b32.xlu0 %v3166_v54, %s3260_s25  ;;  %v1596_v54 = vpack.c.bf16 %v1467_v20, %v1466_v49  ;;  %v3206_v38 = vpack.i.bf16 %v4194_v1, %v4932_v12  ;;  %v1552_v32 = vsel %vm1429_vm4, %v1520_v50, %v2875_v0 }
  0xc5   : > { %3182 = vrot.lane.b32.xlu1 %v3181_v57, %s3261_s28  ;;  %v1562_v8 = vsel %vm1461_vm5, %v1530_v10, %v2879_v35  ;;  %v1563_v4 = vsel %vm1461_vm5, %v1531_v55, %v2880_v15  ;;  %v4934_v35 = vld [vmem:[#allocation8_spill] sm:$0xff] }
  0xc6   : > { %v2888_v46 = vpop.permute.xlu0 %2887  ;;  %v1597_v53 = vpack.c.bf16 %v1563_v4, %v1562_v8  ;;  %v4274_v6 = vpop.permute.xlu1 %2902  ;;  %v1424_v10 = vsel %vm1397_vm3, %v4934_v35, %v2894_v25  ;;  %v4938_v35 = vld [vmem:[#allocation5_spill] sm:$0xff] }
  0xc7   : > { %v2889_v36 = vunpack.i.l.bf16 %v2888_v46  ;;  %v2890_v44 = vunpack.i.h.bf16 %v2888_v46  ;;  %v2904_v56 = vunpack.i.l.bf16 %v4274_v6 }
  0xc8   : > { %3177 = vrot.lane.b32.xlu0 %v3176_v41, %s3262_s9  ;;  %1878 = vmatprep.mubr.bf16.mxu0 %v1597_v53 }
  0xc9   : > { %3192 = vrot.lane.b32.xlu1 %v4271_v34, %s3260_s25  ;;  %1879 = vmatmul.mubr.bf16.gmra.mrb[8].mxu0 %v1596_v54  ;;  %v1521_v57 = vsel %vm1397_vm3, %v4933_v37, %v2889_v36  ;;  %v1423_v46 = vsel %vm1397_vm3, %v4935_v11, %v2890_v44  ;;  %v1456_v36 = vsel %vm1429_vm4, %v1424_v10, %v2904_v56  ;;  %v4936_v44 = vld [vmem:[#allocation18_spill] sm:$0xff]  ;;  %v2905_v37 = vunpack.i.h.bf16 %v4274_v6 }
  0xca   : > { %v2898_v5 = vpop.permute.xlu0 %2897  ;;  %v2913_v59 = vpop.permute.xlu1 %2912 }
  0xcb   : > { %v2899_v42 = vunpack.i.l.bf16 %v2898_v5  ;;  %v2915_v40 = vunpack.i.h.bf16 %v2913_v59  ;;  %v2914_v41 = vunpack.i.l.bf16 %v2913_v59  ;;  %v2900_v7 = vunpack.i.h.bf16 %v2898_v5 }
  0xcc   : > { %3187 = vrot.lane.b32.xlu0 %v3186_v51, %s3261_s28 }
  0xcd   : > { %v1553_v15 = vsel %vm1429_vm4, %v1521_v57, %v2899_v42  ;;  %3202 = vrot.lane.b32.xlu1 %v3201_v47, %s3262_s9  ;;  %v1584_v49 = vsel %vm1461_vm5, %v1552_v32, %v2914_v41  ;;  %v1455_v51 = vsel %vm1429_vm4, %v1423_v46, %v2900_v7  ;;  %v4937_v41 = vld [vmem:[#allocation4_spill] sm:$0xff] }
  0xce   : > { %v2908_v55 = vpop.permute.xlu0 %2907  ;;  %v1585_v20 = vsel %vm1461_vm5, %v1553_v15, %v2915_v40  ;;  %v2923_v8 = vpop.permute.xlu1 %2922  ;;  %v3216_v40 = vpack.i.bf16 %v4169_v9, %v4165_v60 }
  0xcf   : > { %v1630_v4 = vpack.c.bf16 %v1585_v20, %v1584_v49  ;;  %v2925_v53 = vunpack.i.h.bf16 %v2923_v8  ;;  %v2924_v54 = vunpack.i.l.bf16 %v2923_v8  ;;  %v2910_v25 = vunpack.i.h.bf16 %v2908_v55 }
  0xd0   : > { %3197 = vrot.lane.b32.xlu0 %v3196_v58, %s3260_s25  ;;  %v2895_v58 = vunpack.i.h.bf16 %v4259_v62  ;;  %v2909_v56 = vunpack.i.l.bf16 %v2908_v55 }
  0xd1   : > { %3207 = vrot.lane.b32.xlu1 %v3206_v38, %s3261_s28  ;;  %1966 = vmatprep.mubr.bf16.mxu1 %v1630_v4  ;;  %v1488_v47 = vsel %vm1461_vm5, %v1455_v51, %v2924_v54  ;;  %v1489_v50 = vsel %vm1461_vm5, %v1456_v36, %v2925_v53  ;;  %v3221_v38 = vpack.i.bf16 %v3669_v16, %v3695_v19  ;;  %v4939_v16 = vld [vmem:[#allocation22_spill] sm:$0xff]  ;;  %v4940_v4 = vld [vmem:[#allocation23_spill] sm:$0xff] }
  0xd2   : > { %v2918_v0 = vpop.permute.xlu0 %2917  ;;  %v2933_v5 = vpop.permute.xlu1 %2932  ;;  %v1629_v42 = vpack.c.bf16 %v1489_v50, %v1488_v47  ;;  %v1403_v32 = vsel %vm1397_vm3, %v4937_v41, %v2910_v25  ;;  %v1500_v19 = vsel %vm1397_vm3, %v4939_v16, %v2895_v58  ;;  %v1501_v11 = vsel %vm1397_vm3, %v4940_v4, %v2909_v56 }
  0xd3   : > { %v2919_v59 = vunpack.i.l.bf16 %v2918_v0  ;;  %v2934_v7 = vunpack.i.l.bf16 %v2933_v5  ;;  %v1532_v51 = vsel %vm1429_vm4, %v1500_v19, %v2905_v37  ;;  %v2920_v58 = vunpack.i.h.bf16 %v2918_v0 }
  0xd4   : > { %987 = vrot.lane.b32.xlu0 %v4113_v43, %s3262_s9  ;;  %1967 = vmatmul.mubr.bf16.gmra.mrb[4].mxu1 %v1629_v42  ;;  %v2935_v37 = vunpack.i.h.bf16 %v2933_v5 }
  0xd5   : > { %3212 = vrot.lane.b32.xlu1 %v4936_v44, %s3260_s25  ;;  %v1404_v10 = vsel %vm1397_vm3, %v4938_v35, %v2919_v59 }
  0xd6   : > { %v2928_v57 = vpop.permute.xlu0 %2927  ;;  %v2943_v62 = vpop.permute.xlu1 %2942  ;;  %v1436_v46 = vsel %vm1429_vm4, %v1404_v10, %v2934_v7  ;;  %v4942_v10 = vld [vmem:[#allocation29_spill] sm:$0xff] }
  0xd7   : > { %v2930_v15 = vunpack.i.h.bf16 %v2928_v57  ;;  %v2929_v49 = vunpack.i.l.bf16 %v2928_v57  ;;  %v2945_v20 = vunpack.i.h.bf16 %v2943_v62  ;;  %v2944_v8 = vunpack.i.l.bf16 %v2943_v62 }
  0xd8   : > { %724 = vrot.lane.b32.xlu0 %v4223_v63, %s3261_s28 }
  0xd9   : > { %v1435_v6 = vsel %vm1429_vm4, %v1403_v32, %v2930_v15  ;;  %3222 = vrot.lane.b32.xlu1 %v3221_v38, %s3262_s9  ;;  %v1533_v47 = vsel %vm1429_vm4, %v1501_v11, %v2929_v49  ;;  %v1469_v25 = vsel %vm1461_vm5, %v1436_v46, %v2945_v20 }
  0xda   : > { %v2938_v55 = vpop.permute.xlu0 %2937  ;;  %v4333_v36 = vpop.permute.xlu1 %2952  ;;  %v1468_v50 = vsel %vm1461_vm5, %v1435_v6, %v2944_v8  ;;  %v4943_v6 = vld [vmem:[#allocation16_spill] sm:$0xff] }
  0xdb   : > { %v2940_v53 = vunpack.i.h.bf16 %v2938_v55  ;;  %v2939_v54 = vunpack.i.l.bf16 %v2938_v55  ;;  %v1599_v41 = vpack.c.bf16 %v1469_v25, %v1468_v50  ;;  %v2954_v7 = vunpack.i.l.bf16 %v4333_v36 }
  0xdc   : > { %3217 = vrot.lane.b32.xlu0 %v3216_v40, %s3260_s25  ;;  %v4941_v40 = vld [vmem:[#allocation28_spill] sm:$0xff]  ;;  %s2492_s25 = sshll.u32 %s4993_s19, 8 }
  0xdd   : > { %v1564_v42 = vsel %vm1461_vm5, %v1532_v51, %v2939_v54  ;;  %v1565_v59 = vsel %vm1461_vm5, %v1533_v47, %v2940_v53  ;;  %v1522_v56 = vsel %vm1397_vm3, %v4941_v40, %v2920_v58  ;;  %v1426_v55 = vsel %vm1397_vm3, %v4943_v6, %v2954_v7  ;;  %v4944_v51 = vld [vmem:[#allocation3_spill] sm:$0xff]  ;;  %s4598_s28 = scalar_lea.vmem %s4817_s4, %s2492_s25 }
  0xde   : > { %v2948_v44 = vpop.permute.xlu0 %2947  ;;  %v1600_v38 = vpack.c.bf16 %v1565_v59, %v1564_v42  ;;  %v2963_v57 = vpop.permute.xlu1 %2962  ;;  %v1554_v16 = vsel %vm1429_vm4, %v1522_v56, %v2935_v37  ;;  %v2955_v56 = vunpack.i.h.bf16 %v4333_v36  ;;  %v4947_v6 = vld [vmem:[#allocation35_spill] sm:$0xff] }
  0xdf   : > { %v2949_v32 = vunpack.i.l.bf16 %v2948_v44  ;;  %v2950_v0 = vunpack.i.h.bf16 %v2948_v44  ;;  %v2965_v7 = vunpack.i.h.bf16 %v2963_v57 }
  0xe0   : > { %3227 = vrot.lane.b32.xlu0 %v4271_v34, %s3262_s9  ;;  %1886 = vmatprep.mubr.bf16.mxu0 %v1600_v38  ;;  %v2964_v34 = vunpack.i.l.bf16 %v2963_v57 }
  0xe1   : > { %1887 = vmatmul.mubr.bf16.gmra.mrb[12].mxu0 %v1599_v41  ;;  %v1523_v49 = vsel %vm1397_vm3, %v4942_v10, %v2949_v32  ;;  %v1425_v47 = vsel %vm1397_vm3, %v4944_v51, %v2950_v0 }
  0xe2   : > { %v2958_v15 = vpop.permute.xlu0 %2957  ;;  %v2973_v35 = vpop.permute.xlu1 %2972  ;;  %v1458_v42 = vsel %vm1429_vm4, %v1426_v55, %v2964_v34  ;;  %v1502_v55 = vsel %vm1397_vm3, %v4947_v6, %v2955_v56 }
  0xe3   : > { %v2959_v62 = vunpack.i.l.bf16 %v2958_v15  ;;  %v2975_v20 = vunpack.i.h.bf16 %v2973_v35  ;;  %v2974_v8 = vunpack.i.l.bf16 %v2973_v35  ;;  %v2960_v19 = vunpack.i.h.bf16 %v2958_v15 }
  0xe5   : > { %v1555_v5 = vsel %vm1429_vm4, %v1523_v49, %v2959_v62  ;;  %v1586_v11 = vsel %vm1461_vm5, %v1554_v16, %v2974_v8  ;;  %v1457_v59 = vsel %vm1429_vm4, %v1425_v47, %v2960_v19  ;;  %v4945_v62 = vld [vmem:[#allocation15_spill] sm:$0xff]  ;;  %v4946_v8 = vld [vmem:[#allocation21_spill] sm:$0xff]  ;;  %v1534_v47 = vsel %vm1429_vm4, %v1502_v55, %v2965_v7 }
  0xe6   : > { %v2968_v4 = vpop.permute.xlu0 %2967  ;;  %v1587_v46 = vsel %vm1461_vm5, %v1555_v5, %v2975_v20  ;;  %v2983_v53 = vpop.permute.xlu1 %2982 }
  0xe7   : > { %v1633_v54 = vpack.c.bf16 %v1587_v46, %v1586_v11  ;;  %v2985_v50 = vunpack.i.h.bf16 %v2983_v53  ;;  %v2984_v25 = vunpack.i.l.bf16 %v2983_v53  ;;  %v2970_v41 = vunpack.i.h.bf16 %v2968_v4  ;;  %v4948_v11 = vld [vmem:[#allocation36_spill] sm:$0xff] }
  0xe8   : > { %v2969_v0 = vunpack.i.l.bf16 %v2968_v4 }
  0xe9   : > { %1974 = vmatprep.mubr.bf16.mxu1 %v1633_v54  ;;  %v1490_v44 = vsel %vm1461_vm5, %v1457_v59, %v2984_v25  ;;  %v1491_v38 = vsel %vm1461_vm5, %v1458_v42, %v2985_v50  ;;  %v1405_v35 = vsel %vm1397_vm3, %v4945_v62, %v2970_v41 }
  0xea   : > { %v2978_v58 = vpop.permute.xlu0 %2977  ;;  %v2993_v32 = vpop.permute.xlu1 %2992  ;;  %v1632_v37 = vpack.c.bf16 %v1491_v38, %v1490_v44  ;;  %v1503_v46 = vsel %vm1397_vm3, %v4948_v11, %v2969_v0 }
  0xeb   : > { %v2979_v40 = vunpack.i.l.bf16 %v2978_v58  ;;  %v2994_v10 = vunpack.i.l.bf16 %v2993_v32  ;;  %v2980_v56 = vunpack.i.h.bf16 %v2978_v58  ;;  %v2995_v7 = vunpack.i.h.bf16 %v2993_v32  ;;  %v4951_v58 = vld [vmem:[#allocation25_spill] sm:$0xff] }
  0xec   : > { %1975 = vmatmul.mubr.bf16.gmra.mrb[8].mxu1 %v1632_v37 }
  0xed   : > { %v1406_v16 = vsel %vm1397_vm3, %v4946_v8, %v2979_v40 }
  0xee   : > { %v2988_v15 = vpop.permute.xlu0 %2987  ;;  %v3003_v20 = vpop.permute.xlu1 %3002  ;;  %v1438_v4 = vsel %vm1429_vm4, %v1406_v16, %v2994_v10  ;;  %v4949_v10 = vld [vmem:[#allocation40_spill] sm:$0xff] }
  0xef   : > { %v2990_v49 = vunpack.i.h.bf16 %v2988_v15  ;;  %v2989_v34 = vunpack.i.l.bf16 %v2988_v15  ;;  %v3005_v19 = vunpack.i.h.bf16 %v3003_v20  ;;  %v3004_v5 = vunpack.i.l.bf16 %v3003_v20  ;;  %v4950_v20 = vld [vmem:[#allocation41_spill] sm:$0xff] }
  0xf1   : > { %v1437_v36 = vsel %vm1429_vm4, %v1405_v35, %v2990_v49  ;;  %v1535_v50 = vsel %vm1429_vm4, %v1503_v46, %v2989_v34  ;;  %v1471_v42 = vsel %vm1461_vm5, %v1438_v4, %v3005_v19  ;;  %v1524_v49 = vsel %vm1397_vm3, %v4949_v10, %v2980_v56 }
  0xf2   : > { %v2998_v57 = vpop.permute.xlu0 %2997  ;;  %v3013_v51 = vpop.permute.xlu1 %3012  ;;  %v1470_v25 = vsel %vm1461_vm5, %v1437_v36, %v3004_v5  ;;  %v1556_v5 = vsel %vm1429_vm4, %v1524_v49, %v2995_v7 }
  0xf3   : > { %v3000_v53 = vunpack.i.h.bf16 %v2998_v57  ;;  %v2999_v54 = vunpack.i.l.bf16 %v2998_v57  ;;  %v1602_v40 = vpack.c.bf16 %v1471_v42, %v1470_v25  ;;  %v3014_v35 = vunpack.i.l.bf16 %v3013_v51  ;;  %v4953_v42 = vld [vmem:[#allocation45_spill] sm:$0xff] }
  0xf4   : > { %v3015_v16 = vunpack.i.h.bf16 %v3013_v51 }
  0xf5   : > { %v1566_v59 = vsel %vm1461_vm5, %v1534_v47, %v2999_v54  ;;  %v1567_v44 = vsel %vm1461_vm5, %v1535_v50, %v3000_v53  ;;  %v1428_v6 = vsel %vm1397_vm3, %v4951_v58, %v3014_v35  ;;  %v4952_v50 = vld [vmem:[#allocation44_spill] sm:$0xff] }
  0xf6   : > { %v3008_v38 = vpop.permute.xlu0 %3007  ;;  %v1603_v41 = vpack.c.bf16 %v1567_v44, %v1566_v59  ;;  %v3023_v37 = vpop.permute.xlu1 %3022  ;;  %v1504_v25 = vsel %vm1397_vm3, %v4952_v50, %v3015_v16 }
  0xf7   : > { %v3009_v15 = vunpack.i.l.bf16 %v3008_v38  ;;  %v3024_v34 = vunpack.i.l.bf16 %v3023_v37  ;;  %v3010_v55 = vunpack.i.h.bf16 %v3008_v38 }
  0xf8   : > { %1894 = vmatprep.mubr.bf16.mxu0 %v1603_v41  ;;  %v4954_v41 = vld [vmem:[#allocation6_spill] sm:$0xff] }
  0xf9   : > { %1895 = vmatmul.mubr.bf16.gmra.mrb[16].mxu0 %v1602_v40  ;;  %v1525_v8 = vsel %vm1397_vm3, %v4950_v20, %v3009_v15  ;;  %v1505_v59 = vsel %vm1397_vm3, %v4953_v42, %v3024_v34  ;;  %v4955_v40 = vld [vmem:[#allocation7_spill] sm:$0xff]  ;;  %v4956_v15 = vld [vmem:[#allocation20_spill] sm:$0xff] }
  0xfa   : > { %v3018_v62 = vpop.permute.xlu0 %3017  ;;  %v4378_v0 = vpop.permute.xlu1 %3032  ;;  %v1557_v4 = vsel %vm1429_vm4, %v1525_v8, %v2995_v7  ;;  %v1592_v56 = vpack.c.bf16 %v4955_v40, %v4954_v41  ;;  %v3025_v7 = vunpack.i.h.bf16 %v3023_v37 }
  0xfb   : > { %v3020_v57 = vunpack.i.h.bf16 %v3018_v62  ;;  %v3019_v11 = vunpack.i.l.bf16 %v3018_v62  ;;  %v1427_v62 = vsel %vm1397_vm3, %v4956_v15, %v3010_v55  ;;  %v3035_v50 = vunpack.i.h.bf16 %v4378_v0 }
  0xfd   : > { %v1460_v20 = vsel %vm1429_vm4, %v1428_v6, %v3020_v57  ;;  %v1459_v8 = vsel %vm1429_vm4, %v1427_v62, %v3019_v11  ;;  %v3034_v6 = vunpack.i.l.bf16 %v4378_v0  ;;  %v4959_v0 = vld [vmem:[#allocation24_spill] sm:$0xff] }
  0xfe   : > { %v3028_v19 = vpop.permute.xlu0 %3027  ;;  %v3043_v32 = vpop.permute.xlu1 %3042 }
  0xff   : > { %v3029_v36 = vunpack.i.l.bf16 %v3028_v19  ;;  %v3044_v46 = vunpack.i.l.bf16 %v3043_v32  ;;  %v3030_v53 = vunpack.i.h.bf16 %v3028_v19  ;;  %v3045_v54 = vunpack.i.h.bf16 %v3043_v32 }
 0x101   : > { %v1588_v47 = vsel %vm1461_vm5, %v1556_v5, %v3029_v36  ;;  %v1589_v51 = vsel %vm1461_vm5, %v1557_v4, %v3029_v36  ;;  %v1536_v16 = vsel %vm1429_vm4, %v1504_v25, %v3044_v46  ;;  %v1537_v34 = vsel %vm1429_vm4, %v1505_v59, %v3045_v54  ;;  %v4958_v59 = vld [vmem:[#allocation32_spill] sm:$0xff] }
 0x102   : > { %v3038_v44 = vpop.permute.xlu0 %3037  ;;  %v1636_v38 = vpack.c.bf16 %v1589_v51, %v1588_v47  ;;  %v3053_v49 = vpop.permute.xlu1 %3052  ;;  %v1492_v5 = vsel %vm1461_vm5, %v1459_v8, %v3030_v53  ;;  %v4957_v51 = vld [vmem:[#allocation27_spill] sm:$0xff] }
 0x103   : > { %v3040_v35 = vunpack.i.h.bf16 %v3038_v44  ;;  %v3039_v10 = vunpack.i.l.bf16 %v3038_v44  ;;  %v3054_v19 = vunpack.i.l.bf16 %v3053_v49  ;;  %v1407_v54 = vsel %vm1397_vm3, %v4957_v51, %v3025_v7 }
 0x104   : > { %1982 = vmatprep.mubr.bf16.mxu1 %v1636_v38  ;;  %v3055_v53 = vunpack.i.h.bf16 %v3053_v49  ;;  %v1408_v44 = vsel %vm1397_vm3, %v4958_v59, %v3034_v6  ;;  %v4966_v59 = vld [vmem:[#allocation42_spill] sm:$0xff] }
 0x105   : > { %v1493_v58 = vsel %vm1461_vm5, %v1460_v20, %v3039_v10  ;;  %v1568_v55 = vsel %vm1461_vm5, %v1536_v16, %v3040_v35  ;;  %v1569_v32 = vsel %vm1461_vm5, %v1537_v34, %v3054_v19  ;;  %v4960_v10 = vld [vmem:[#allocation30_spill] sm:$0xff]  ;;  %v4961_v20 = vld [vmem:[#allocation49_spill] sm:$0xff] }
 0x106   : > { %v3048_v37 = vpop.permute.xlu0 %3047  ;;  %v1635_v36 = vpack.c.bf16 %v1493_v58, %v1492_v5  ;;  %v3063_v11 = vpop.permute.xlu1 %3062  ;;  %v1606_v4 = vpack.c.bf16 %v1569_v32, %v1568_v55  ;;  %v1598_v49 = vpack.c.bf16 %v4960_v10, %v4959_v0  ;;  %v1506_v8 = vsel %vm1397_vm3, %v4961_v20, %v3035_v50 }
 0x107   : > { %v3049_v57 = vunpack.i.l.bf16 %v3048_v37  ;;  %v3050_v46 = vunpack.i.h.bf16 %v3048_v37  ;;  %v3064_v47 = vunpack.i.l.bf16 %v3063_v11  ;;  %v4962_v37 = vld [vmem:[#allocation13_spill] sm:$0xff]  ;;  %v3065_v6 = vunpack.i.h.bf16 %v3063_v11 }
 0x108   : > { %1983 = vmatmul.mubr.bf16.gmra.mrb[12].mxu1 %v1635_v36  ;;  %1902 = vmatprep.mubr.bf16.mxu0 %v1606_v4  ;;  %v4963_v36 = vld [vmem:[#allocation11_spill] sm:$0xff] }
 0x109   : > { %2706 = vmatprep.mubr.msk.bf16.mxu1 %vm1397_vm3, %v1592_v56  ;;  %v1439_v25 = vsel %vm1429_vm4, %v1407_v54, %v3049_v57  ;;  %v1440_v40 = vsel %vm1429_vm4, %v1408_v44, %v3050_v46  ;;  %v1507_v15 = vsel %vm1397_vm3, %v3933_v28, %v3064_v47  ;;  %v4964_v32 = vpack.c.bf16 %v4962_v37, %v4963_v36 }
 0x10a   : > { %v3058_v42 = vpop.permute.xlu0 %3057  ;;  %v3073_v41 = vpop.permute.xlu1 %3072  ;;  %v1472_v35 = vsel %vm1461_vm5, %v1439_v25, %v3055_v53 }
 0x10b   : > { %v3059_v38 = vunpack.i.l.bf16 %v3058_v42  ;;  %v3075_v62 = vunpack.i.h.bf16 %v3073_v41  ;;  %v3074_v7 = vunpack.i.l.bf16 %v3073_v41  ;;  %v3060_v28 = vunpack.i.h.bf16 %v3058_v42  ;;  %v4965_v42 = vld [vmem:[#allocation37_spill] sm:$0xff] }
 0x10c   : > { %v1601_v44 = vpack.c.bf16 %v4966_v59, %v4965_v42 }
 0x10d   : > { %v1473_v56 = vsel %vm1461_vm5, %v1440_v40, %v3059_v38  ;;  %v1538_v34 = vsel %vm1429_vm4, %v1506_v8, %v3074_v7  ;;  %v1539_v5 = vsel %vm1429_vm4, %v1507_v15, %v3075_v62  ;;  %v4967_v38 = vld [vmem:[#allocation39_spill] sm:$0xff] }
 0x10e   : > { %v3068_v16 = vpop.permute.xlu0 %3067  ;;  %v1605_v19 = vpack.c.bf16 %v1473_v56, %v1472_v35  ;;  %v3083_v58 = vpop.permute.xlu1 %3082  ;;  %v1570_v4 = vsel %vm1461_vm5, %v1538_v34, %v3060_v28  ;;  %v1409_v41 = vsel %vm1397_vm3, %v4967_v38, %v3065_v6  ;;  %v4968_v7 = vld [vmem:[#allocation43_spill] sm:$0xff]  ;;  %v4969_v34 = vld [vmem:[#allocation46_spill] sm:$0xff]  ;;  %v4973_v38 = vld [vmem:[#allocation48_spill] sm:$0xff] }
 0x10f   : > { %v3084_v55 = vunpack.i.l.bf16 %v3083_v58  ;;  %v3069_v47 = vunpack.i.l.bf16 %v3068_v16  ;;  %v3085_v11 = vunpack.i.h.bf16 %v3083_v58  ;;  %v3070_v40 = vunpack.i.h.bf16 %v3068_v16  ;;  %v4971_v58 = vld [vmem:[#allocation53_spill] sm:$0xff] }
 0x110   : > { %1903 = vmatmul.mubr.bf16.gmra.mrb[20].mxu0 %v1605_v19  ;;  %2707 = vmatmul.mubr.msk.bf16.vlgmr.msra.gmra.mrb[16].mxu1 %vm1397_vm3, %v4964_v32 }
 0x111   : > { %2710 = vmatprep.mubr.msk.bf16.mxu1 %vm1397_vm3, %v1598_v49  ;;  %v1571_v46 = vsel %vm1461_vm5, %v1539_v5, %v3084_v55  ;;  %v1410_v35 = vsel %vm1397_vm3, %v4968_v7, %v3069_v47  ;;  %v4970_v5 = vpack.c.bf16 %v3891_v29, %v4969_v34  ;;  %v1508_v28 = vsel %vm1397_vm3, %v4971_v58, %v3070_v40  ;;  %v4975_v7 = vld [vmem:[#allocation47_spill] sm:$0xff] }
 0x112   : > { %v3078_v57 = vpop.permute.xlu0 %3077  ;;  %v3093_v54 = vpop.permute.xlu1 %3092  ;;  %v1609_v53 = vpack.c.bf16 %v1571_v46, %v1570_v4 }
 0x113   : > { %v3079_v51 = vunpack.i.l.bf16 %v3078_v57  ;;  %v3080_v50 = vunpack.i.h.bf16 %v3078_v57  ;;  %v3094_v25 = vunpack.i.l.bf16 %v3093_v54  ;;  %v3095_v4 = vunpack.i.h.bf16 %v3093_v54 }
 0x114   : > { %1910 = vmatprep.mubr.bf16.mxu0 %v1609_v53 }
 0x115   : > { %v1441_v15 = vsel %vm1429_vm4, %v1409_v41, %v3079_v51  ;;  %v1442_v10 = vsel %vm1429_vm4, %v1410_v35, %v3080_v50  ;;  %v1509_v49 = vsel %vm1397_vm3, %v3997_v26, %v3094_v25  ;;  %v1411_v41 = vsel %vm1397_vm3, %v4973_v38, %v3095_v4 }
 0x116   : > { %v3088_v62 = vpop.permute.xlu0 %3087  ;;  %v1474_v19 = vsel %vm1461_vm5, %v1441_v15, %v3085_v11  ;;  %v4974_v11 = vpack.c.bf16 %v4001_v48, %v3994_v30 }
 0x117   : > { %v3089_v56 = vunpack.i.l.bf16 %v3088_v62  ;;  %v3103_v0 = vpop.permute.xlu1 %3102  ;;  %v3090_v6 = vunpack.i.h.bf16 %v3088_v62 }
 0x118   : > { %v3105_v20 = vunpack.i.h.bf16 %v3103_v0  ;;  %v3104_v8 = vunpack.i.l.bf16 %v3103_v0  ;;  %2711 = vmatmul.mubr.msk.bf16.gmra.mrb[20].mxu1 %vm1397_vm3, %v1601_v44  ;;  %v4972_v44 = vpack.c.bf16 %v3959_v27, %v3906_v2 }
 0x119   : > { %v1475_v16 = vsel %vm1461_vm5, %v1442_v10, %v3089_v56  ;;  %2714 = vmatprep.mubr.msk.bf16.mxu1 %vm1397_vm3, %v4970_v5 }
 0x11a   : > { %v3098_v55 = vpop.permute.xlu0 %3097  ;;  %v1608_v37 = vpack.c.bf16 %v1475_v16, %v1474_v19  ;;  %v1540_v26 = vsel %vm1429_vm4, %v1508_v28, %v3104_v8  ;;  %v1541_v36 = vsel %vm1429_vm4, %v1509_v49, %v3105_v20 }
 0x11b   : > { %v3113_v32 = vpop.permute.xlu1 %3112  ;;  %v1572_v47 = vsel %vm1461_vm5, %v1540_v26, %v3090_v6  ;;  %v3099_v51 = vunpack.i.l.bf16 %v3098_v55  ;;  %v3100_v40 = vunpack.i.h.bf16 %v3098_v55 }
 0x11c   : > { %v3114_v57 = vunpack.i.l.bf16 %v3113_v32  ;;  %1911 = vmatmul.mubr.bf16.gmra.mrb[24].mxu0 %v1608_v37  ;;  %v3115_v54 = vunpack.i.h.bf16 %v3113_v32  ;;  %v4977_v37 = vpack.c.bf16 %v4162_v14, %v4110_v13  ;;  %v1622_v13 = vpack.c.bf16 %v4932_v12, %v3601_v33 }
 0x11d   : > { %v1412_v35 = vsel %vm1397_vm3, %v4975_v7, %v3099_v51  ;;  %v1510_v20 = vsel %vm1397_vm3, %v4008_v52, %v3100_v40 }
 0x11e   : > { %v3108_v46 = vpop.permute.xlu0 %3107  ;;  %v1573_v29 = vsel %vm1461_vm5, %v1541_v36, %v3114_v57 }
 0x11f   : > { %v3109_v53 = vunpack.i.l.bf16 %v3108_v46  ;;  %v3123_v50 = vpop.permute.xlu1 %3122  ;;  %v1612_v25 = vpack.c.bf16 %v1573_v29, %v1572_v47  ;;  %v3110_v42 = vunpack.i.h.bf16 %v3108_v46 }
 0x120   : > { %v3124_v59 = vunpack.i.l.bf16 %v3123_v50  ;;  %2715 = vmatmul.mubr.msk.bf16.gmra.mrb[24].mxu1 %vm1397_vm3, %v4972_v44  ;;  %v3125_v55 = vunpack.i.h.bf16 %v3123_v50  ;;  %v4979_v50 = vld [vmem:[#allocation50_spill] sm:$0xff] }
 0x121   : > { %1918 = vmatprep.mubr.bf16.mxu0 %v1612_v25  ;;  %2718 = vmatprep.mubr.msk.bf16.mxu1 %vm1397_vm3, %v4974_v11  ;;  %v1443_v15 = vsel %vm1429_vm4, %v1411_v41, %v3109_v53  ;;  %v1444_v56 = vsel %vm1429_vm4, %v1412_v35, %v3110_v42  ;;  %v4980_v11 = vpack.c.bf16 %v4169_v9, %v4165_v60  ;;  %v4981_v9 = vld [vmem:[#allocation10_spill] sm:$0xff] }
 0x122   : > { %v3118_v62 = vpop.permute.xlu0 %3117  ;;  %v1511_v0 = vsel %vm1397_vm3, %v4034_v3, %v3124_v59  ;;  %v1476_v30 = vsel %vm1461_vm5, %v1443_v15, %v3115_v54  ;;  %v4976_v3 = vpack.c.bf16 %v4042_v22, %v4025_v61  ;;  %v4978_v22 = vld [vmem:[#allocation51_spill] sm:$0xff] }
 0x123   : > { %v3119_v2 = vunpack.i.l.bf16 %v3118_v62  ;;  %v3133_v27 = vpop.permute.xlu1 %3132  ;;  %v3120_v58 = vunpack.i.h.bf16 %v3118_v62  ;;  %v1413_v61 = vsel %vm1397_vm3, %v4978_v22, %v3125_v55 }
 0x124   : > { %v3135_v10 = vunpack.i.h.bf16 %v3133_v27  ;;  %v3134_v49 = vunpack.i.l.bf16 %v3133_v27  ;;  %v4982_v27 = vld [vmem:[#allocation12_spill] sm:$0xff] }
 0x125   : > { %v1477_v48 = vsel %vm1461_vm5, %v1444_v56, %v3119_v2  ;;  %v1625_v56 = vpack.c.bf16 %v4982_v27, %v4981_v9  ;;  %v4991_v9 = vld [vmem:[#allocation2_spill] sm:$0xff] }
 0x126   : > { %v3128_v8 = vpop.permute.xlu0 %3127  ;;  %v1611_v19 = vpack.c.bf16 %v1477_v48, %v1476_v30  ;;  %v1542_v16 = vsel %vm1429_vm4, %v1510_v20, %v3134_v49  ;;  %v1543_v34 = vsel %vm1429_vm4, %v1511_v0, %v3135_v10  ;;  %v4983_v10 = vld [vmem:[#allocation19_spill] sm:$0xff]  ;;  %v4984_v49 = vld [vmem:[#allocation26_spill] sm:$0xff]  ;;  %v1637_v27 = vpack.c.bf16 %v4991_v9, %v4991_v9 }
 0x127   : > { %v3143_v5 = vpop.permute.xlu1 %3142  ;;  %v1574_v26 = vsel %vm1461_vm5, %v1542_v16, %v3120_v58  ;;  %v3129_v32 = vunpack.i.l.bf16 %v3128_v8  ;;  %v3130_v14 = vunpack.i.h.bf16 %v3128_v8  ;;  %v1628_v30 = vpack.c.bf16 %v4984_v49, %v4983_v10 }
 0x128   : > { %v3144_v28 = vunpack.i.l.bf16 %v3143_v5  ;;  %1919 = vmatmul.mubr.bf16.gmra.mrb[28].mxu0 %v1611_v19  ;;  %2719 = vmatmul.mubr.msk.bf16.gmra.mrb[28].mxu1 %vm1397_vm3, %v4976_v3  ;;  %v3145_v29 = vunpack.i.h.bf16 %v3143_v5 }
 0x129   : > { %2722 = vmatprep.mubr.msk.bf16.mxu1 %vm1397_vm3, %v4977_v37  ;;  %v1414_v25 = vsel %vm1397_vm3, %v4979_v50, %v3129_v32  ;;  %v1512_v40 = vsel %vm1397_vm3, %v4082_v24, %v3130_v14 }
 0x12a   : > { %v3138_v52 = vpop.permute.xlu0 %3137  ;;  %v1575_v36 = vsel %vm1461_vm5, %v1543_v34, %v3144_v28  ;;  %v4985_v28 = vld [vmem:[#allocation52_spill] sm:$0xff] }
 0x12b   : > { %v3139_v6 = vunpack.i.l.bf16 %v3138_v52  ;;  %v3153_v57 = vpop.permute.xlu1 %3152  ;;  %v1615_v4 = vpack.c.bf16 %v1575_v36, %v1574_v26  ;;  %v3140_v46 = vunpack.i.h.bf16 %v3138_v52 }
 0x12c   : > { %v3154_v47 = vunpack.i.l.bf16 %v3153_v57  ;;  %v3155_v0 = vunpack.i.h.bf16 %v3153_v57  ;;  %v4986_v57 = vld [vmem:[#allocation31_spill] sm:$0xff] }
 0x12d   : > { %1926 = vmatprep.mubr.bf16.mxu0 %v1615_v4  ;;  %v1445_v51 = vsel %vm1429_vm4, %v1413_v61, %v3139_v6  ;;  %v1446_v44 = vsel %vm1429_vm4, %v1414_v25, %v3140_v46  ;;  %v4987_v4 = vld [vmem:[#allocation38_spill] sm:$0xff] }
 0x12e   : > { %v3148_v53 = vpop.permute.xlu0 %3147  ;;  %v1513_v38 = vsel %vm1397_vm3, %v4148_v45, %v3154_v47  ;;  %v1478_v33 = vsel %vm1461_vm5, %v1445_v51, %v3145_v29  ;;  %v1415_v3 = vsel %vm1397_vm3, %v4985_v28, %v3155_v0  ;;  %v1631_v46 = vpack.c.bf16 %v4987_v4, %v4986_v57 }
 0x12f   : > { %v3149_v42 = vunpack.i.l.bf16 %v3148_v53  ;;  %v3163_v59 = vpop.permute.xlu1 %3162  ;;  %v3150_v2 = vunpack.i.h.bf16 %v3148_v53 }
 0x130   : > { %v3165_v41 = vunpack.i.h.bf16 %v3163_v59  ;;  %v3164_v54 = vunpack.i.l.bf16 %v3163_v59  ;;  %2723 = vmatmul.mubr.msk.bf16.gmra.mrb[32].mxu1 %vm1397_vm3, %v4980_v11 }
 0x131   : > { %v1479_v12 = vsel %vm1461_vm5, %v1446_v44, %v3149_v42  ;;  %2726 = vmatprep.mubr.msk.bf16.mxu1 %vm1397_vm3, %v1622_v13 }
 0x132   : > { %v3158_v15 = vpop.permute.xlu0 %3157  ;;  %v1614_v62 = vpack.c.bf16 %v1479_v12, %v1478_v33  ;;  %v1544_v45 = vsel %vm1429_vm4, %v1512_v40, %v3164_v54  ;;  %v1545_v7 = vsel %vm1429_vm4, %v1513_v38, %v3165_v41  ;;  %v4988_v41 = vld [vmem:[#allocation34_spill] sm:$0xff]  ;;  %v4989_v54 = vld [vmem:[#allocation33_spill] sm:$0xff] }
 0x133   : > { %v3173_v35 = vpop.permute.xlu1 %3172  ;;  %v1576_v24 = vsel %vm1461_vm5, %v1544_v45, %v3150_v2  ;;  %v3159_v8 = vunpack.i.l.bf16 %v3158_v15  ;;  %v3160_v37 = vunpack.i.h.bf16 %v3158_v15  ;;  %v4990_v11 = vpack.c.bf16 %v4988_v41, %v4989_v54 }
 0x134   : > { %v3174_v60 = vunpack.i.l.bf16 %v3173_v35  ;;  %1927 = vmatmul.mubr.bf16.gmra.mrb[32].mxu0 %v1614_v62  ;;  %v3175_v55 = vunpack.i.h.bf16 %v3173_v35 }
 0x135   : > { %v1416_v36 = vsel %vm1397_vm3, %v3964_v17, %v3159_v8  ;;  %v1514_v51 = vsel %vm1397_vm3, %v4194_v1, %v3160_v37 }
 0x136   : > { %v3168_v48 = vpop.permute.xlu0 %3167  ;;  %v1577_v20 = vsel %vm1461_vm5, %v1545_v7, %v3174_v60 }
 0x137   : > { %v3169_v19 = vunpack.i.l.bf16 %v3168_v48  ;;  %v3183_v16 = vpop.permute.xlu1 %3182  ;;  %v1618_v34 = vpack.c.bf16 %v1577_v20, %v1576_v24  ;;  %v3170_v5 = vunpack.i.h.bf16 %v3168_v48 }
 0x138   : > { %v3184_v58 = vunpack.i.l.bf16 %v3183_v16  ;;  %2727 = vmatmul.mubr.msk.bf16.gmra.mrb[36].mxu1 %vm1397_vm3, %v1625_v56  ;;  %v3185_v59 = vunpack.i.h.bf16 %v3183_v16 }
 0x139   : > { %1934 = vmatprep.mubr.bf16.mxu0 %v1618_v34  ;;  %2730 = vmatprep.mubr.msk.bf16.mxu1 %vm1397_vm3, %v1628_v30  ;;  %v1447_v52 = vsel %vm1429_vm4, %v1415_v3, %v3169_v19  ;;  %v1448_v47 = vsel %vm1429_vm4, %v1416_v36, %v3170_v5 }
 0x13a   : > { %v3178_v26 = vpop.permute.xlu0 %3177  ;;  %v1515_v22 = vsel %vm1397_vm3, %v4223_v63, %v3184_v58  ;;  %v1480_v13 = vsel %vm1461_vm5, %v1447_v52, %v3175_v55  ;;  %v1417_v35 = vsel %vm1397_vm3, %v4037_v31, %v3185_v59 }
 0x13b   : > { %v3179_v32 = vunpack.i.l.bf16 %v3178_v26  ;;  %v3193_v6 = vpop.permute.xlu1 %3192  ;;  %v3180_v44 = vunpack.i.h.bf16 %v3178_v26 }
 0x13c   : > { %v3195_v61 = vunpack.i.h.bf16 %v3193_v6  ;;  %v3194_v29 = vunpack.i.l.bf16 %v3193_v6 }
 0x13d   : > { %v1481_v14 = vsel %vm1461_vm5, %v1448_v47, %v3179_v32 }
 0x13e   : > { %v3188_v17 = vpop.permute.xlu0 %3187  ;;  %v1617_v53 = vpack.c.bf16 %v1481_v14, %v1480_v13  ;;  %v1546_v50 = vsel %vm1429_vm4, %v1514_v51, %v3194_v29  ;;  %v1547_v25 = vsel %vm1429_vm4, %v1515_v22, %v3195_v61 }
 0x13f   : > { %v3203_v42 = vpop.permute.xlu1 %3202  ;;  %v3189_v38 = vunpack.i.l.bf16 %v3188_v17  ;;  %v1578_v12 = vsel %vm1461_vm5, %v1546_v50, %v3180_v44  ;;  %v3190_v24 = vunpack.i.h.bf16 %v3188_v17 }
 0x140   : > { %v3204_v63 = vunpack.i.l.bf16 %v3203_v42  ;;  %1935 = vmatmul.mubr.bf16.gmra.mrb[36].mxu0 %v1617_v53  ;;  %2731 = vmatmul.mubr.msk.bf16.gmra.mrb[40].mxu1 %vm1397_vm3, %v1631_v46  ;;  %v3205_v1 = vunpack.i.h.bf16 %v3203_v42 }
 0x141   : > { %2734 = vmatprep.mubr.msk.bf16.mxu1 %vm1397_vm3, %v4990_v11  ;;  %v1418_v60 = vsel %vm1397_vm3, %v4045_v18, %v3189_v38  ;;  %v1516_v5 = vsel %vm1397_vm3, %v3576_v23, %v3190_v24 }
 0x142   : > { %v3198_v33 = vpop.permute.xlu0 %3197  ;;  %v1579_v40 = vsel %vm1461_vm5, %v1547_v25, %v3204_v63 }
 0x143   : > { %v3200_v15 = vunpack.i.h.bf16 %v3198_v33  ;;  %v3199_v62 = vunpack.i.l.bf16 %v3198_v33  ;;  %v3208_v45 = vpop.permute.xlu1 %3207  ;;  %v1621_v7 = vpack.c.bf16 %v1579_v40, %v1578_v12 }
 0x144   : > { %v3209_v2 = vunpack.i.l.bf16 %v3208_v45  ;;  %v3210_v52 = vunpack.i.h.bf16 %v3208_v45 }
 0x145   : > { %1942 = vmatprep.mubr.bf16.mxu0 %v1621_v7  ;;  %v1449_v56 = vsel %vm1429_vm4, %v1417_v35, %v3199_v62  ;;  %v1450_v0 = vsel %vm1429_vm4, %v1418_v60, %v3200_v15 }
 0x146   : > { %v988_v10 = vpop.permute.xlu0 %987  ;;  %v1482_v49 = vsel %vm1461_vm5, %v1449_v56, %v3205_v1  ;;  %v1517_v31 = vsel %vm1397_vm3, %v3573_v21, %v3209_v2  ;;  %v1419_v57 = vsel %vm1397_vm3, %v4107_v39, %v3210_v52 }
 0x147   : > { %v1483_v30 = vsel %vm1461_vm5, %v1450_v0, %v988_v10  ;;  %v3213_v48 = vpop.permute.xlu1 %3212 }
 0x148   : > { %v1620_v20 = vpack.c.bf16 %v1483_v30, %v1482_v49  ;;  %v3215_v18 = vunpack.i.h.bf16 %v3213_v48  ;;  %2735 = vmatmul.mubr.msk.bf16.gmra.mrb[44].mxu1 %vm1397_vm3, %v1637_v27  ;;  %v3214_v8 = vunpack.i.l.bf16 %v3213_v48 }
 0x14a   : > { %v725_v19 = vpop.permute.xlu0 %724  ;;  %1943 = vmatmul.mubr.bf16.gmra.mrb[40].mxu0 %v1620_v20  ;;  %v1549_v16 = vsel %vm1429_vm4, %v1517_v31, %v3215_v18  ;;  %v1548_v3 = vsel %vm1429_vm4, %v1516_v5, %v3214_v8 }
 0x14b   : > { %v3223_v34 = vpop.permute.xlu1 %3222  ;;  %v1420_v23 = vsel %vm1397_vm3, %v4113_v43, %v725_v19 }
 0x14c   : > { %v3225_v58 = vunpack.i.h.bf16 %v3223_v34  ;;  %v3224_v28 = vunpack.i.l.bf16 %v3223_v34 }
 0x14e   : > { %v3218_v55 = vpop.permute.xlu0 %3217  ;;  %v1580_v21 = vsel %vm1461_vm5, %v1548_v3, %v3224_v28  ;;  %v1581_v37 = vsel %vm1461_vm5, %v1549_v16, %v3225_v58 }
 0x14f   : > { %v1624_v26 = vpack.c.bf16 %v1581_v37, %v1580_v21  ;;  %v3220_v36 = vunpack.i.h.bf16 %v3218_v55  ;;  %v3219_v32 = vunpack.i.l.bf16 %v3218_v55 }
 0x151   : > { %1950 = vmatprep.mubr.bf16.mxu0 %v1624_v26  ;;  %v1452_v47 = vsel %vm1429_vm4, %v1420_v23, %v3220_v36  ;;  %v1451_v22 = vsel %vm1429_vm4, %v1419_v57, %v3219_v32 }
 0x152   : > { %v3228_v6 = vpop.permute.xlu0 %3227 }
 0x153   : > { %v3230_v4 = vunpack.i.h.bf16 %v3228_v6  ;;  %v3229_v46 = vunpack.i.l.bf16 %v3228_v6 }
 0x155   : > { %v1484_v61 = vsel %vm1461_vm5, %v1451_v22, %v3229_v46  ;;  %v1485_v29 = vsel %vm1461_vm5, %v1452_v47, %v3230_v4 }
 0x156   : > { %v1623_v13 = vpack.c.bf16 %v1485_v29, %v1484_v61 }
 0x158   : > { %1951 = vmatmul.mubr.bf16.gmra.mrb[44].mxu0 %v1623_v13 }
 0x178   : > { %v2588_v14 = vpop.f32.mrb[0].mxu0 }
 0x179   : > { %v2589_v51 = vpop.f32.mrb[1].mxu0 }
 0x17a   : > { %v2590_v17 = vadd.f32 %v2589_v51, %v2588_v14  ;;  %v2591_v53 = vpop.f32.mrb[2].mxu0 }
 0x17b   : > { %v2592_v39 = vpop.f32.mrb[3].mxu0 }
 0x17c   : > { %v4566_v50 = vadd.f32 %v2592_v39, %v2591_v53 }
 0x184   : > { %v2594_v43 = vpop.f32.mrb[4].mxu0 }
 0x185   : > { %v2595_v25 = vpop.f32.mrb[5].mxu0 }
 0x186   : > { %v2596_v42 = vadd.f32 %v2595_v25, %v2594_v43  ;;  %v2597_v59 = vpop.f32.mrb[6].mxu0 }
 0x187   : > { %v2598_v44 = vpop.f32.mrb[7].mxu0 }
 0x188   : > { %v2599_v38 = vadd.f32 %v2598_v44, %v2597_v59 }
 0x18f   : > { %v2660_v63 = vpop.f32.mrb[0].mxu1 }
 0x190   : > { %v2661_v41 = vpop.f32.mrb[1].mxu1 }
 0x191   : > { %v4568_v54 = vadd.f32 %v2661_v41, %v2660_v63  ;;  %v2663_v11 = vpop.f32.mrb[2].mxu1 }
 0x192   : > { %v2664_v1 = vpop.f32.mrb[3].mxu1 }
 0x193   : > { %v4570_v33 = vadd.f32 %v2664_v1, %v2663_v11 }
 0x19c   : > { %v2600_v12 = vpop.f32.mrb[8].mxu0 }
 0x19d   : > { %v2601_v40 = vpop.f32.mrb[9].mxu0 }
 0x19e   : > { %v4572_v15 = vadd.f32 %v2601_v40, %v2600_v12  ;;  %v2603_v62 = vpop.f32.mrb[10].mxu0 }
 0x19f   : > { %v2604_v45 = vpop.f32.mrb[11].mxu0 }
 0x1a0   : > { %v4574_v7 = vadd.f32 %v2604_v45, %v2603_v62 }
 0x1a7   : > { %v2666_v35 = vpop.f32.mrb[4].mxu1 }
 0x1a8   : > { %v2667_v2 = vpop.f32.mrb[5].mxu1 }
 0x1a9   : > { %v4576_v60 = vadd.f32 %v2667_v2, %v2666_v35  ;;  %v2669_v9 = vpop.f32.mrb[6].mxu1 }
 0x1aa   : > { %v2670_v27 = vpop.f32.mrb[7].mxu1 }
 0x1ab   : > { %v4578_v56 = vadd.f32 %v2670_v27, %v2669_v9 }
 0x1b4   : > { %v2606_v0 = vpop.f32.mrb[12].mxu0 }
 0x1b5   : > { %v2607_v10 = vpop.f32.mrb[13].mxu0 }
 0x1b6   : > { %v2608_v49 = vadd.f32 %v2607_v10, %v2606_v0  ;;  %v2609_v30 = vpop.f32.mrb[14].mxu0 }
 0x1b7   : > { %v2610_v48 = vpop.f32.mrb[15].mxu0 }
 0x1b8   : > { %v4580_v24 = vadd.f32 %v2610_v48, %v2609_v30 }
 0x1bf   : > { %v2672_v31 = vpop.f32.mrb[8].mxu1 }
 0x1c0   : > { %v2673_v20 = vpop.f32.mrb[9].mxu1 }
 0x1c1   : > { %v4582_v18 = vadd.f32 %v2673_v20, %v2672_v31  ;;  %v2675_v8 = vpop.f32.mrb[10].mxu1 }
 0x1c2   : > { %v2676_v19 = vpop.f32.mrb[11].mxu1 }
 0x1c3   : > { %v4584_v16 = vadd.f32 %v2676_v19, %v2675_v8 }
 0x1cc   : > { %v2612_v34 = vpop.f32.mrb[16].mxu0 }
 0x1cd   : > { %v2613_v5 = vpop.f32.mrb[17].mxu0 }
 0x1ce   : > { %v4586_v58 = vadd.f32 %v2613_v5, %v2612_v34  ;;  %v2615_v28 = vpop.f32.mrb[18].mxu0 }
 0x1cf   : > { %v2616_v3 = vpop.f32.mrb[19].mxu0 }
 0x1d0   : > { %v4588_v55 = vadd.f32 %v2616_v3, %v2615_v28 }
 0x1db   : > { %v2678_v21 = vpop.f32.mrb[12].mxu1 }
 0x1dc   : > { %v2679_v37 = vpop.f32.mrb[13].mxu1 }
 0x1dd   : > { %v4590_v52 = vadd.f32 %v2679_v37, %v2678_v21  ;;  %v2681_v26 = vpop.f32.mrb[14].mxu1 }
 0x1de   : > { %v2682_v36 = vpop.f32.mrb[15].mxu1 }
 0x1df   : > { %v4592_v32 = vadd.f32 %v2682_v36, %v2681_v26 }
 0x1e3   : > { %v2618_v6 = vpop.f32.mrb[20].mxu0  ;;  %v2708_v57 = vpop.f32.mrb[16].mxu1 }
 0x1e4   : > { %v2034_v23 = vadd.f32 %v2708_v57, %v2596_v42  ;;  %v2619_v4 = vpop.f32.mrb[21].mxu0  ;;  %v2025_v46 = vpop.f32.mrb[17].mxu1 }
 0x1e5   : > { %v4600_v47 = vadd.f32 %v2619_v4, %v2618_v6  ;;  %v2026_v22 = vadd.f32 %v2590_v17, %v2025_v46  ;;  %v2621_v61 = vpop.f32.mrb[22].mxu0  ;;  %v2709_v29 = vpop.f32.mrb[18].mxu1 }
 0x1e6   : > { %2154 = vst.msk [vmem:[%s4598_s28 + $0x10] sm:$0xff] %vm1397_vm3, %v2034_v23  ;;  %v2037_v13 = vadd.f32 %v2709_v29, %v2599_v38  ;;  %v2622_v14 = vpop.f32.mrb[23].mxu0  ;;  %v2028_v51 = vpop.f32.mrb[19].mxu1  ;;  %v2255_v25 = vmul.f32 %v2034_v23, %v2034_v23  ;;  %v2187_v63 = vsel %vm1397_vm3, %v2034_v23, 0.0 }
 0x1e7   : > { %2152 = vst.msk [vmem:[%s4598_s28] sm:$0xff] %vm1397_vm3, %v2026_v22  ;;  %v2253_v53 = vmul.f32 %v2026_v22, %v2026_v22  ;;  %v2623_v39 = vadd.f32 %v2622_v14, %v2621_v61  ;;  %v2029_v43 = vadd.f32 %v4566_v50, %v2028_v51  ;;  %v2184_v42 = vsel %vm1397_vm3, %v2026_v22, 0.0 }
 0x1e8   : > { %2155 = vst.msk [vmem:[%s4598_s28 + $0x18] sm:$0xff] %vm1397_vm3, %v2037_v13  ;;  %v2256_v44 = vmul.f32 %v2037_v13, %v2037_v13  ;;  %v2288_v45 = vsel %vm1397_vm3, %v2255_v25, 0.0  ;;  %v2189_v35 = vsel %vm1397_vm3, %v2037_v13, 0.0 }
 0x1e9   : > { %2153 = vst.msk [vmem:[%s4598_s28 + $0x8] sm:$0xff] %vm1397_vm3, %v2029_v43  ;;  %v2185_v17 = vsel %vm1397_vm3, %v2029_v43, 0.0  ;;  %v2254_v59 = vmul.f32 %v2029_v43, %v2029_v43  ;;  %v2285_v41 = vsel %vm1397_vm3, %v2253_v53, 0.0 }
 0x1ea   : > { %v2186_v38 = vadd.f32 %v2185_v17, %v2184_v42  ;;  %v2290_v27 = vsel %vm1397_vm3, %v2256_v44, 0.0 }
 0x1eb   : > { %v2286_v50 = vsel %vm1397_vm3, %v2254_v59, 0.0  ;;  %v2712_v11 = vpop.f32.mrb[20].mxu1 }
 0x1ec   : > { %v2188_v1 = vadd.f32 %v2187_v63, %v2186_v38  ;;  %v2287_v12 = vadd.f32 %v2286_v50, %v2285_v41  ;;  %v2050_v40 = vadd.f32 %v2712_v11, %v2608_v49  ;;  %v2041_v62 = vpop.f32.mrb[21].mxu1 }
 0x1ed   : > { %v2042_v2 = vadd.f32 %v4572_v15, %v2041_v62  ;;  %v2713_v9 = vpop.f32.mrb[22].mxu1 }
 0x1ee   : > { %v2289_v0 = vadd.f32 %v2288_v45, %v2287_v12  ;;  %2158 = vst.msk [vmem:[%s4598_s28 + $0x30] sm:$0xff] %vm1397_vm3, %v2050_v40  ;;  %v2190_v10 = vadd.f32 %v2189_v35, %v2188_v1  ;;  %v2044_v30 = vpop.f32.mrb[23].mxu1  ;;  %v2053_v31 = vadd.f32 %v2713_v9, %v4580_v24  ;;  %v2259_v5 = vmul.f32 %v2050_v40, %v2050_v40 }
 0x1ef   : > { %2156 = vst.msk [vmem:[%s4598_s28 + $0x20] sm:$0xff] %vm1397_vm3, %v2042_v2  ;;  %v2191_v49 = vsel %vm1397_vm3, %v2042_v2, 0.0  ;;  %v2257_v48 = vmul.f32 %v2042_v2, %v2042_v2  ;;  %v2045_v20 = vadd.f32 %v4574_v7, %v2044_v30  ;;  %v2624_v15 = vpop.f32.mrb[24].mxu0  ;;  %v2195_v6 = vsel %vm1397_vm3, %v2050_v40, 0.0 }
 0x1f0   : > { %v2192_v8 = vadd.f32 %v2191_v49, %v2190_v10  ;;  %v2291_v19 = vadd.f32 %v2290_v27, %v2289_v0  ;;  %v2625_v34 = vpop.f32.mrb[25].mxu0  ;;  %2159 = vst.msk [vmem:[%s4598_s28 + $0x38] sm:$0xff] %vm1397_vm3, %v2053_v31  ;;  %v2260_v4 = vmul.f32 %v2053_v31, %v2053_v31  ;;  %v2197_v13 = vsel %vm1397_vm3, %v2053_v31, 0.0 }
 0x1f1   : > { %v2292_v28 = vsel %vm1397_vm3, %v2257_v48, 0.0  ;;  %2157 = vst.msk [vmem:[%s4598_s28 + $0x28] sm:$0xff] %vm1397_vm3, %v2045_v20  ;;  %v2193_v3 = vsel %vm1397_vm3, %v2045_v20, 0.0  ;;  %v2627_v21 = vpop.f32.mrb[26].mxu0  ;;  %v2258_v36 = vmul.f32 %v2045_v20, %v2045_v20  ;;  %v2626_v24 = vadd.f32 %v2625_v34, %v2624_v15 }
 0x1f2   : > { %v2293_v37 = vadd.f32 %v2292_v28, %v2291_v19  ;;  %v2194_v26 = vadd.f32 %v2193_v3, %v2192_v8  ;;  %v2628_v7 = vpop.f32.mrb[27].mxu0  ;;  %v2296_v43 = vsel %vm1397_vm3, %v2259_v5, 0.0  ;;  %v2298_v63 = vsel %vm1397_vm3, %v2260_v4, 0.0 }
 0x1f3   : > { %v2629_v57 = vadd.f32 %v2628_v7, %v2627_v21  ;;  %v2716_v23 = vpop.f32.mrb[24].mxu1  ;;  %v2294_v22 = vsel %vm1397_vm3, %v2258_v36, 0.0 }
 0x1f4   : > { %v2196_v46 = vadd.f32 %v2195_v6, %v2194_v26  ;;  %v2066_v61 = vadd.f32 %v2716_v23, %v4600_v47  ;;  %v2057_v29 = vpop.f32.mrb[25].mxu1  ;;  %v2295_v14 = vadd.f32 %v2294_v22, %v2293_v37 }
 0x1f5   : > { %v2058_v51 = vadd.f32 %v4586_v58, %v2057_v29  ;;  %v2717_v53 = vpop.f32.mrb[26].mxu1 }
 0x1f6   : > { %2162 = vst.msk [vmem:[%s4598_s28 + $0x50] sm:$0xff] %vm1397_vm3, %v2066_v61  ;;  %v2198_v25 = vadd.f32 %v2197_v13, %v2196_v46  ;;  %v2069_v42 = vadd.f32 %v2717_v53, %v2623_v39  ;;  %v2060_v17 = vpop.f32.mrb[27].mxu1  ;;  %v2297_v59 = vadd.f32 %v2296_v43, %v2295_v14  ;;  %v2263_v1 = vmul.f32 %v2066_v61, %v2066_v61 }
 0x1f7   : > { %2160 = vst.msk [vmem:[%s4598_s28 + $0x40] sm:$0xff] %vm1397_vm3, %v2058_v51  ;;  %v2199_v47 = vsel %vm1397_vm3, %v2058_v51, 0.0  ;;  %v2261_v44 = vmul.f32 %v2058_v51, %v2058_v51  ;;  %v2061_v38 = vadd.f32 %v4588_v55, %v2060_v17  ;;  %v2203_v40 = vsel %vm1397_vm3, %v2066_v61, 0.0 }
 0x1f8   : > { %v2200_v58 = vadd.f32 %v2199_v47, %v2198_v25  ;;  %2163 = vst.msk [vmem:[%s4598_s28 + $0x58] sm:$0xff] %vm1397_vm3, %v2069_v42  ;;  %v2299_v41 = vadd.f32 %v2298_v63, %v2297_v59  ;;  %v2264_v2 = vmul.f32 %v2069_v42, %v2069_v42  ;;  %v2205_v10 = vsel %vm1397_vm3, %v2069_v42, 0.0 }
 0x1f9   : > { %v2300_v50 = vsel %vm1397_vm3, %v2261_v44, 0.0  ;;  %2161 = vst.msk [vmem:[%s4598_s28 + $0x48] sm:$0xff] %vm1397_vm3, %v2061_v38  ;;  %v2201_v39 = vsel %vm1397_vm3, %v2061_v38, 0.0  ;;  %v2262_v11 = vmul.f32 %v2061_v38, %v2061_v38  ;;  %v2304_v15 = vsel %vm1397_vm3, %v2263_v1, 0.0 }
 0x1fa   : > { %v2202_v12 = vadd.f32 %v2201_v39, %v2200_v58  ;;  %v2301_v62 = vadd.f32 %v2300_v50, %v2299_v41  ;;  %v2306_v37 = vsel %vm1397_vm3, %v2264_v2, 0.0 }
 0x1fb   : > { %v2302_v55 = vsel %vm1397_vm3, %v2262_v11, 0.0  ;;  %v2630_v45 = vpop.f32.mrb[28].mxu0  ;;  %v2720_v35 = vpop.f32.mrb[28].mxu1 }
 0x1fc   : > { %v2204_v9 = vadd.f32 %v2203_v40, %v2202_v12  ;;  %v2631_v27 = vpop.f32.mrb[29].mxu0  ;;  %v2073_v0 = vpop.f32.mrb[29].mxu1  ;;  %v2303_v30 = vadd.f32 %v2302_v55, %v2301_v62 }
 0x1fd   : > { %v2632_v49 = vadd.f32 %v2631_v27, %v2630_v45  ;;  %v2074_v48 = vadd.f32 %v2626_v24, %v2073_v0  ;;  %v2633_v31 = vpop.f32.mrb[30].mxu0  ;;  %v2721_v20 = vpop.f32.mrb[30].mxu1 }
 0x1fe   : > { %v2206_v8 = vadd.f32 %v2205_v10, %v2204_v9  ;;  %v2634_v19 = vpop.f32.mrb[31].mxu0  ;;  %v2076_v34 = vpop.f32.mrb[31].mxu1  ;;  %v2305_v5 = vadd.f32 %v2304_v15, %v2303_v30 }
 0x1ff   : > { %v2082_v28 = vadd.f32 %v2720_v35, %v2632_v49  ;;  %2164 = vst.msk [vmem:[%s4598_s28 + $0x60] sm:$0xff] %vm1397_vm3, %v2074_v48  ;;  %v2207_v3 = vsel %vm1397_vm3, %v2074_v48, 0.0  ;;  %v2265_v21 = vmul.f32 %v2074_v48, %v2074_v48  ;;  %v2635_v36 = vadd.f32 %v2634_v19, %v2633_v31 }
 0x200   : > { %v2208_v26 = vadd.f32 %v2207_v3, %v2206_v8  ;;  %v2077_v24 = vadd.f32 %v2629_v57, %v2076_v34  ;;  %v2307_v7 = vadd.f32 %v2306_v37, %v2305_v5 }
 0x201   : > { %2166 = vst.msk [vmem:[%s4598_s28 + $0x70] sm:$0xff] %vm1397_vm3, %v2082_v28  ;;  %v2308_v6 = vsel %vm1397_vm3, %v2265_v21, 0.0  ;;  %v2267_v23 = vmul.f32 %v2082_v28, %v2082_v28  ;;  %v2085_v4 = vadd.f32 %v2721_v20, %v2635_v36  ;;  %v2211_v14 = vsel %vm1397_vm3, %v2082_v28, 0.0 }
 0x202   : > { %2165 = vst.msk [vmem:[%s4598_s28 + $0x68] sm:$0xff] %vm1397_vm3, %v2077_v24  ;;  %v2209_v46 = vsel %vm1397_vm3, %v2077_v24, 0.0  ;;  %v2266_v22 = vmul.f32 %v2077_v24, %v2077_v24  ;;  %v2309_v61 = vadd.f32 %v2308_v6, %v2307_v7 }
 0x203   : > { %v2210_v29 = vadd.f32 %v2209_v46, %v2208_v26  ;;  %v2724_v13 = vpop.f32.mrb[32].mxu1  ;;  %2167 = vst.msk [vmem:[%s4598_s28 + $0x78] sm:$0xff] %vm1397_vm3, %v2085_v4  ;;  %v2268_v57 = vmul.f32 %v2085_v4, %v2085_v4  ;;  %v2312_v17 = vsel %vm1397_vm3, %v2267_v23, 0.0  ;;  %v2213_v59 = vsel %vm1397_vm3, %v2085_v4, 0.0 }
 0x204   : > { %v2310_v51 = vsel %vm1397_vm3, %v2266_v22, 0.0  ;;  %v2089_v53 = vpop.f32.mrb[33].mxu1 }
 0x205   : > { %v2212_v43 = vadd.f32 %v2211_v14, %v2210_v29  ;;  %v2311_v25 = vadd.f32 %v2310_v51, %v2309_v61  ;;  %v2725_v42 = vpop.f32.mrb[34].mxu1  ;;  %v2314_v58 = vsel %vm1397_vm3, %v2268_v57, 0.0 }
 0x206   : > { %v2092_v47 = vpop.f32.mrb[35].mxu1 }
 0x207   : > { %v2313_v44 = vadd.f32 %v2312_v17, %v2311_v25  ;;  %v2636_v38 = vpop.f32.mrb[32].mxu0  ;;  %v2214_v63 = vadd.f32 %v2213_v59, %v2212_v43 }
 0x208   : > { %v2637_v41 = vpop.f32.mrb[33].mxu0 }
 0x209   : > { %v2638_v50 = vadd.f32 %v2637_v41, %v2636_v38  ;;  %v2639_v39 = vpop.f32.mrb[34].mxu0  ;;  %v2315_v11 = vadd.f32 %v2314_v58, %v2313_v44 }
 0x20a   : > { %v2640_v1 = vpop.f32.mrb[35].mxu0 }
 0x20b   : > { %v2641_v12 = vadd.f32 %v2640_v1, %v2639_v39  ;;  %v2090_v40 = vadd.f32 %v2638_v50, %v2089_v53  ;;  %v4673_v62 = vpop.f32.mrb[36].mxu1 }
 0x20c   : > { %v4675_v55 = vpop.f32.mrb[37].mxu1 }
 0x20d   : > { %2168 = vst.msk [vmem:[%s4598_s28 + $0x80] sm:$0xff] %vm1397_vm3, %v2090_v40  ;;  %v2215_v45 = vsel %vm1397_vm3, %v2090_v40, 0.0  ;;  %v2269_v35 = vmul.f32 %v2090_v40, %v2090_v40  ;;  %v2093_v2 = vadd.f32 %v2641_v12, %v2092_v47  ;;  %v4680_v9 = vpop.f32.mrb[38].mxu1 }
 0x20e   : > { %v2216_v27 = vadd.f32 %v2215_v45, %v2214_v63  ;;  %v4682_v0 = vpop.f32.mrb[39].mxu1 }
 0x20f   : > { %v2316_v10 = vsel %vm1397_vm3, %v2269_v35, 0.0  ;;  %2169 = vst.msk [vmem:[%s4598_s28 + $0x88] sm:$0xff] %vm1397_vm3, %v2093_v2  ;;  %v2217_v30 = vsel %vm1397_vm3, %v2093_v2, 0.0  ;;  %v2270_v49 = vmul.f32 %v2093_v2, %v2093_v2 }
 0x210   : > { %v2317_v48 = vadd.f32 %v2316_v10, %v2315_v11  ;;  %v2218_v31 = vadd.f32 %v2217_v30, %v2216_v27 }
 0x211   : > { %v2318_v20 = vsel %vm1397_vm3, %v2270_v49, 0.0 }
 0x212   : > { %v2319_v15 = vadd.f32 %v2318_v20, %v2317_v48 }
 0x213   : > { %v2642_v8 = vpop.f32.mrb[36].mxu0  ;;  %v2732_v19 = vpop.f32.mrb[40].mxu1 }
 0x214   : > { %v4690_v34 = vadd.f32 %v2732_v19, %v4576_v60  ;;  %v2643_v5 = vpop.f32.mrb[37].mxu0  ;;  %v2121_v28 = vpop.f32.mrb[41].mxu1 }
 0x215   : > { %v2644_v3 = vadd.f32 %v2643_v5, %v2642_v8  ;;  %v4693_v21 = vadd.f32 %v4568_v54, %v2121_v28  ;;  %v2645_v37 = vpop.f32.mrb[38].mxu0  ;;  %v2733_v26 = vpop.f32.mrb[42].mxu1 }
 0x216   : > { %2178 = vst.msk [vmem:[%s4598_s28 + $0xd0] sm:$0xff] %vm1397_vm3, %v4690_v34  ;;  %v4699_v36 = vadd.f32 %v2733_v26, %v4578_v56  ;;  %v2646_v24 = vpop.f32.mrb[39].mxu0  ;;  %v2124_v60 = vpop.f32.mrb[43].mxu1 }
 0x217   : > { %v2098_v7 = vadd.f32 %v2724_v13, %v2644_v3  ;;  %2176 = vst.msk [vmem:[%s4598_s28 + $0xc0] sm:$0xff] %vm1397_vm3, %v4693_v21  ;;  %v2647_v6 = vadd.f32 %v2646_v24, %v2645_v37  ;;  %v4708_v54 = vadd.f32 %v4570_v33, %v2124_v60  ;;  %v2277_v19 = vmul.f32 %v4693_v21, %v4693_v21 }
 0x218   : > { %2179 = vst.msk [vmem:[%s4598_s28 + $0xd8] sm:$0xff] %vm1397_vm3, %v4699_v36  ;;  %v2231_v26 = vsel %vm1397_vm3, %v4693_v21, 0.0  ;;  %v2235_v21 = vsel %vm1397_vm3, %v4690_v34, 0.0 }
 0x219   : > { %2170 = vst.msk [vmem:[%s4598_s28 + $0x90] sm:$0xff] %vm1397_vm3, %v2098_v7  ;;  %v2219_v23 = vsel %vm1397_vm3, %v2098_v7, 0.0  ;;  %v2271_v4 = vmul.f32 %v2098_v7, %v2098_v7  ;;  %v2101_v56 = vadd.f32 %v2725_v42, %v2647_v6  ;;  %2177 = vst.msk [vmem:[%s4598_s28 + $0xc8] sm:$0xff] %vm1397_vm3, %v4708_v54  ;;  %v2278_v24 = vmul.f32 %v4708_v54, %v4708_v54 }
 0x21a   : > { %v2220_v46 = vadd.f32 %v2219_v23, %v2218_v31  ;;  %v2279_v6 = vmul.f32 %v4690_v34, %v4690_v34  ;;  %v2332_v23 = vsel %vm1397_vm3, %v2277_v19, 0.0 }
 0x21b   : > { %v2320_v22 = vsel %vm1397_vm3, %v2271_v4, 0.0  ;;  %2171 = vst.msk [vmem:[%s4598_s28 + $0x98] sm:$0xff] %vm1397_vm3, %v2101_v56  ;;  %v2221_v61 = vsel %vm1397_vm3, %v2101_v56, 0.0  ;;  %v2272_v33 = vmul.f32 %v2101_v56, %v2101_v56  ;;  %v2736_v29 = vpop.f32.mrb[44].mxu1  ;;  %v2233_v4 = vsel %vm1397_vm3, %v4708_v54, 0.0 }
 0x21c   : > { %v2321_v13 = vadd.f32 %v2320_v22, %v2319_v15  ;;  %v2222_v14 = vadd.f32 %v2221_v61, %v2220_v46  ;;  %v4721_v57 = vadd.f32 %v2736_v29, %v4590_v52  ;;  %v2137_v51 = vpop.f32.mrb[45].mxu1  ;;  %v2280_v22 = vmul.f32 %v4699_v36, %v4699_v36 }
 0x21d   : > { %v2322_v53 = vsel %vm1397_vm3, %v2272_v33, 0.0  ;;  %v4725_v43 = vadd.f32 %v4582_v18, %v2137_v51  ;;  %v2648_v25 = vpop.f32.mrb[40].mxu0  ;;  %v2737_v42 = vpop.f32.mrb[46].mxu1  ;;  %v2334_v61 = vsel %vm1397_vm3, %v2278_v24, 0.0 }
 0x21e   : > { %v2323_v17 = vadd.f32 %v2322_v53, %v2321_v13  ;;  %2182 = vst.msk [vmem:[%s4598_s28 + $0xf0] sm:$0xff] %vm1397_vm3, %v4721_v57  ;;  %v4731_v59 = vadd.f32 %v2737_v42, %v4592_v32  ;;  %v2649_v47 = vpop.f32.mrb[41].mxu0  ;;  %v2140_v52 = vpop.f32.mrb[47].mxu1  ;;  %v2336_v13 = vsel %vm1397_vm3, %v2279_v6, 0.0 }
 0x21f   : > { %2180 = vst.msk [vmem:[%s4598_s28 + $0xe0] sm:$0xff] %vm1397_vm3, %v4725_v43  ;;  %v2650_v44 = vadd.f32 %v2649_v47, %v2648_v25  ;;  %v4737_v18 = vadd.f32 %v4584_v16, %v2140_v52  ;;  %v2651_v38 = vpop.f32.mrb[42].mxu0  ;;  %v2281_v54 = vmul.f32 %v4725_v43, %v4725_v43  ;;  %v2338_v25 = vsel %vm1397_vm3, %v2280_v22, 0.0 }
 0x220   : > { %2183 = vst.msk [vmem:[%s4598_s28 + $0xf8] sm:$0xff] %vm1397_vm3, %v4731_v59  ;;  %v2652_v63 = vpop.f32.mrb[43].mxu0  ;;  %v2239_v34 = vsel %vm1397_vm3, %v4725_v43, 0.0  ;;  %v2283_v52 = vmul.f32 %v4721_v57, %v4721_v57  ;;  %v2284_v43 = vmul.f32 %v4731_v59, %v4731_v59 }
 0x221   : > { %v2106_v58 = vadd.f32 %v2650_v44, %v4675_v55  ;;  %2181 = vst.msk [vmem:[%s4598_s28 + $0xe8] sm:$0xff] %vm1397_vm3, %v4737_v18  ;;  %v2653_v32 = vadd.f32 %v2652_v63, %v2651_v38  ;;  %v2282_v42 = vmul.f32 %v4737_v18, %v4737_v18  ;;  %v2241_v44 = vsel %vm1397_vm3, %v4737_v18, 0.0 }
 0x223   : > { %2172 = vst.msk [vmem:[%s4598_s28 + $0xa0] sm:$0xff] %vm1397_vm3, %v2106_v58  ;;  %v2223_v41 = vsel %vm1397_vm3, %v2106_v58, 0.0  ;;  %v2273_v50 = vmul.f32 %v2106_v58, %v2106_v58  ;;  %v2109_v16 = vadd.f32 %v2653_v32, %v4682_v0  ;;  %v2243_v58 = vsel %vm1397_vm3, %v4721_v57, 0.0 }
 0x224   : > { %v2224_v39 = vadd.f32 %v2223_v41, %v2222_v14  ;;  %v2237_v14 = vsel %vm1397_vm3, %v4699_v36, 0.0  ;;  %v2340_v36 = vsel %vm1397_vm3, %v2281_v54, 0.0  ;;  %v2342_v32 = vsel %vm1397_vm3, %v2282_v42, 0.0 }
 0x225   : > { %v2324_v11 = vsel %vm1397_vm3, %v2273_v50, 0.0  ;;  %2173 = vst.msk [vmem:[%s4598_s28 + $0xa8] sm:$0xff] %vm1397_vm3, %v2109_v16  ;;  %v2225_v12 = vsel %vm1397_vm3, %v2109_v16, 0.0  ;;  %v2274_v40 = vmul.f32 %v2109_v16, %v2109_v16  ;;  %v2245_v16 = vsel %vm1397_vm3, %v4731_v59, 0.0 }
 0x226   : > { %v2325_v1 = vadd.f32 %v2324_v11, %v2323_v17  ;;  %v2226_v55 = vadd.f32 %v2225_v12, %v2224_v39  ;;  %v2344_v39 = vsel %vm1397_vm3, %v2283_v52, 0.0 }
 0x227   : > { %v2326_v45 = vsel %vm1397_vm3, %v2274_v40, 0.0 }
 0x228   : > { %v2327_v35 = vadd.f32 %v2326_v45, %v2325_v1  ;;  %v2346_v1 = vsel %vm1397_vm3, %v2284_v43, 0.0 }
 0x22b   : > { %v2654_v2 = vpop.f32.mrb[44].mxu0 }
 0x22c   : > { %v2655_v27 = vpop.f32.mrb[45].mxu0 }
 0x22d   : > { %v2656_v10 = vadd.f32 %v2655_v27, %v2654_v2  ;;  %v2657_v30 = vpop.f32.mrb[46].mxu0 }
 0x22e   : > { %v2658_v49 = vpop.f32.mrb[47].mxu0 }
 0x22f   : > { %v2114_v0 = vadd.f32 %v4673_v62, %v2656_v10  ;;  %v2659_v48 = vadd.f32 %v2658_v49, %v2657_v30 }
 0x231   : > { %2174 = vst.msk [vmem:[%s4598_s28 + $0xb0] sm:$0xff] %vm1397_vm3, %v2114_v0  ;;  %v2227_v31 = vsel %vm1397_vm3, %v2114_v0, 0.0  ;;  %v2275_v20 = vmul.f32 %v2114_v0, %v2114_v0  ;;  %v2117_v15 = vadd.f32 %v4680_v9, %v2659_v48 }
 0x232   : > { %v2228_v8 = vadd.f32 %v2227_v31, %v2226_v55 }
 0x233   : > { %v2328_v5 = vsel %vm1397_vm3, %v2275_v20, 0.0  ;;  %2175 = vst.msk [vmem:[%s4598_s28 + $0xb8] sm:$0xff] %vm1397_vm3, %v2117_v15  ;;  %v2229_v28 = vsel %vm1397_vm3, %v2117_v15, 0.0  ;;  %v2276_v3 = vmul.f32 %v2117_v15, %v2117_v15 }
 0x234   : > { %v2329_v62 = vadd.f32 %v2328_v5, %v2327_v35  ;;  %v2230_v37 = vadd.f32 %v2229_v28, %v2228_v8 }
 0x235   : > { %v2330_v9 = vsel %vm1397_vm3, %v2276_v3, 0.0 }
 0x236   : > { %v2232_v60 = vadd.f32 %v2231_v26, %v2230_v37  ;;  %v2331_v7 = vadd.f32 %v2330_v9, %v2329_v62 }
 0x238   : > { %v2234_v56 = vadd.f32 %v2233_v4, %v2232_v60  ;;  %v2333_v46 = vadd.f32 %v2332_v23, %v2331_v7 }
 0x23a   : > { %v2236_v33 = vadd.f32 %v2235_v21, %v2234_v56  ;;  %v2335_v29 = vadd.f32 %v2334_v61, %v2333_v46 }
 0x23c   : > { %v2238_v51 = vadd.f32 %v2237_v14, %v2236_v33  ;;  %v2337_v53 = vadd.f32 %v2336_v13, %v2335_v29 }
 0x23e   : > { %v2240_v17 = vadd.f32 %v2239_v34, %v2238_v51  ;;  %v2339_v47 = vadd.f32 %v2338_v25, %v2337_v53 }
 0x240   : > { %v2242_v38 = vadd.f32 %v2241_v44, %v2240_v17  ;;  %v2341_v63 = vadd.f32 %v2340_v36, %v2339_v47 }
 0x242   : > { %v2244_v41 = vadd.f32 %v2243_v58, %v2242_v38  ;;  %v2343_v50 = vadd.f32 %v2342_v32, %v2341_v63 }
 0x244   : > { %v2246_v11 = vadd.f32 %v2245_v16, %v2244_v41  ;;  %v2345_v18 = vadd.f32 %v2344_v39, %v2343_v50 }
 0x246   : > { %v2247_v12 = vrot.slane %v2246_v11, 4  ;;  %v2347_v40 = vadd.f32 %v2346_v1, %v2345_v18 }
 0x248   : > { %v2248_v57 = vadd.f32 %v2247_v12, %v2246_v11  ;;  %v2348_v55 = vrot.slane %v2347_v40, 4 }
 0x24a   : > { %v2249_v45 = vrot.slane %v2248_v57, 2  ;;  %v2349_v35 = vadd.f32 %v2348_v55, %v2347_v40 }
 0x24c   : > { %v2250_v2 = vadd.f32 %v2249_v45, %v2248_v57  ;;  %v2350_v27 = vrot.slane %v2349_v35, 2 }
 0x24e   : > { %v2251_v10 = vrot.slane %v2250_v2, 1  ;;  %v2351_v30 = vadd.f32 %v2350_v27, %v2349_v35 }
 0x250   : > { %v2352_v49 = vrot.slane %v2351_v30, 1  ;;  %v2252_v59 = vadd.f32 %v2251_v10, %v2250_v2 }
 0x252   : > { %v2353_v0 = vadd.f32 %v2352_v49, %v2351_v30 }
 0x254   : > { %v2354_v48 = vsel %vm443_vm0, %v2252_v59, %v2353_v0 }
 0x255   : > { %2356 = vst.msk [vmem:[%s235_s8] sm:$0x3] %vm2355_vm6, %v2354_v48 }
 0x256 PF: > { %s16_s18 = sadd.s32 1, %s3257_s18  }
 0x257   : > { %p13_p4 = scmp.ge.s32.totalorder %s16_s18, 4  }
 0x259   :  { %15 = sbr.rel (!%p13_p4) target bundleno = 1 (0x1), region = 78 }

</bundles_post_ra>
